<compile_context>
chip_gen: v7x
topology: tpu7x:2x2x1
jax: 0.10.0
libtpu: 0.0.40
codegen_flags: <defaults>
</compile_context>

<pallas_src>
import functools

import jax
import jax.numpy as jnp
from jax.experimental import pallas as pl
from jax.experimental.pallas import tpu as pltpu


def _round_up(x, m):
    return ((x + m - 1) // m) * m


# --------------------------------------------------------------------------
# Kernel
# --------------------------------------------------------------------------
def _bilstm_kernel(xf_ref, xb_ref, wih_ref, whh_ref, b_ref, hout_ref,
                   hf_scr, cf_scr, hb_scr, cb_scr, xgf_scr, xgb_scr,
                   *, hp, chunk, bpad, nchunks, seq_len, ragged):
    c = pl.program_id(0)          # time-chunk index (sequential recurrence)

    @pl.when(c == 0)
    def _():
        hf_scr[...] = jnp.zeros_like(hf_scr)
        cf_scr[...] = jnp.zeros_like(cf_scr)
        hb_scr[...] = jnp.zeros_like(hb_scr)
        cb_scr[...] = jnp.zeros_like(cb_scr)

    # One fat bf16 MXU matmul per direction for the whole chunk's input
    # projection (f32 accumulation), bias folded in once per chunk.
    xgf_scr[...] = jnp.dot(xf_ref[...], wih_ref[0],
                           preferred_element_type=jnp.float32) + b_ref[0]
    xgb_scr[...] = jnp.dot(xb_ref[...], wih_ref[1],
                           preferred_element_type=jnp.float32) + b_ref[1]

    whh_f = whh_ref[0]            # (Hp, 4Hp) bf16, resident
    whh_b = whh_ref[1]

    h_f = hf_scr[...]
    c_f = cf_scr[...]
    h_b = hb_scr[...]
    c_b = cb_scr[...]

    for step in range(chunk):     # fully unrolled; static slices only
        rf = step * bpad                       # forward: local step 0..chunk-1
        rb = (chunk - 1 - step) * bpad         # backward: chunk-1..0

        # Two independent recurrent chains — interleaved so the scheduler can
        # hide one chain's EUP latency behind the other's MXU/VPU work.
        gf = xgf_scr[rf:rf + bpad, :] + jnp.dot(
            h_f.astype(jnp.bfloat16), whh_f, preferred_element_type=jnp.float32)
        gb = xgb_scr[rb:rb + bpad, :] + jnp.dot(
            h_b.astype(jnp.bfloat16), whh_b, preferred_element_type=jnp.float32)

        # Gate slabs start at multiples of Hp (128-aligned) -> free views.
        i_f = jax.nn.sigmoid(gf[:, 0 * hp:1 * hp])
        i_b = jax.nn.sigmoid(gb[:, 0 * hp:1 * hp])
        f_f = jax.nn.sigmoid(gf[:, 1 * hp:2 * hp])
        f_b = jax.nn.sigmoid(gb[:, 1 * hp:2 * hp])
        g_f = jnp.tanh(gf[:, 2 * hp:3 * hp])
        g_b = jnp.tanh(gb[:, 2 * hp:3 * hp])
        o_f = jax.nn.sigmoid(gf[:, 3 * hp:4 * hp])
        o_b = jax.nn.sigmoid(gb[:, 3 * hp:4 * hp])

        c_f_new = f_f * c_f + i_f * g_f
        c_b_new = f_b * c_b + i_b * g_b
        h_f_new = o_f * jnp.tanh(c_f_new)
        h_b_new = o_b * jnp.tanh(c_b_new)

        if ragged:
            # Timesteps past the real sequence length (zero-padded tail) must
            # not modify the carried state.  Forward pad steps are at the end
            # of its walk; backward pad steps are at the start of its walk.
            t_f = c * chunk + step
            t_b = (nchunks - 1 - c) * chunk + (chunk - 1 - step)
            v_f = t_f < seq_len
            v_b = t_b < seq_len
            h_f = jnp.where(v_f, h_f_new, h_f)
            c_f = jnp.where(v_f, c_f_new, c_f)
            h_b = jnp.where(v_b, h_b_new, h_b)
            c_b = jnp.where(v_b, c_b_new, c_b)
        else:
            h_f, c_f, h_b, c_b = h_f_new, c_f_new, h_b_new, c_b_new

    hf_scr[...] = h_f
    cf_scr[...] = c_f
    hb_scr[...] = h_b
    cb_scr[...] = c_b

    @pl.when(c == nchunks - 1)
    def _():
        hout_ref[0] = h_f.astype(hout_ref.dtype)
        hout_ref[1] = h_b.astype(hout_ref.dtype)


# --------------------------------------------------------------------------
# VMEM-budget-aware tiling
# --------------------------------------------------------------------------
def _vmem_capacity_bytes():
    try:
        info = pltpu.get_tpu_info()
        cap = int(getattr(info, "vmem_capacity_bytes", 0) or 0)
    except Exception:
        cap = 0
    if cap <= 0:
        cap = 64 << 20            # conservative fallback (v7x per-TC VMEM)
    return cap


def _footprint_bytes(chunk, bpad, d, hp):
    g = 4 * hp
    xg = 2 * chunk * bpad * g * 4                       # f32 gate scratch (x2 dirs)
    xblk = 2 * 2 * chunk * bpad * d * 2                 # 2 dirs x double-buffered bf16
    w = 2 * (2 * d * g * 2 + 2 * hp * g * 2 + 2 * g * 4)  # double-buffered weights
    state = 4 * bpad * hp * 4                           # h/c carries
    out = 2 * 2 * bpad * hp * 4
    return xg + xblk + w + state + out


def _pick_chunk(T, bpad, d, hp, budget, cap=32):
    cmax = 1
    for cand in range(1, min(T, cap) + 1):
        if _footprint_bytes(cand, bpad, d, hp) <= budget:
            cmax = cand
    # Prefer an exact divisor of T (no wasted padded timesteps) when one is
    # reasonably close to the VMEM-limited maximum; otherwise pad T.
    for cand in range(cmax, 0, -1):
        if T % cand == 0:
            if 2 * cand >= cmax:
                return cand
            break
    return cmax


def _prepare_params(params, hidden, hp):
    """Natural layout -> kernel layout: gate slabs padded to hp (128-aligned),
    weights cast to bf16, recurrent weight rows padded to hp."""
    def pad_gate_dim(w):
        lead = w.shape[:-1]
        w4 = w.reshape(lead + (4, hidden))
        w4 = jnp.pad(w4, [(0, 0)] * len(lead) + [(0, 0), (0, hp - hidden)])
        return w4.reshape(lead + (4 * hp,))

    wih = pad_gate_dim(params["wih"]).astype(jnp.bfloat16)            # (2, D, 4Hp)
    whh = pad_gate_dim(params["whh"])                                  # (2, H, 4Hp)
    whh = jnp.pad(whh, ((0, 0), (0, hp - hidden), (0, 0))).astype(jnp.bfloat16)
    b = pad_gate_dim(params["b"]).astype(jnp.float32)                  # (2, 1, 4Hp)
    return wih, whh, b


# --------------------------------------------------------------------------
# Host wrapper
# --------------------------------------------------------------------------
def bilstm_layer(x, params, *, chunk=None):
    """x: (B, T, D) batch_first, like the torch module. Returns h_n (2, B, H)."""
    B, T, D = x.shape
    assert T >= 1, "empty sequence not supported"
    H = params["whh"].shape[1]
    Hp = _round_up(H, 128)
    G = 4 * Hp
    Bp = _round_up(B, 8)                       # pad batch to full sublanes

    vmem_cap = _vmem_capacity_bytes()
    vmem_limit = min(int(vmem_cap * 0.8), 100 << 20)
    if chunk is None:
        chunk = _pick_chunk(T, Bp, D, Hp, int(vmem_limit * 0.85))
    Tp = _round_up(T, chunk)
    nchunks = Tp // chunk
    ragged = Tp != T

    # Cast to bf16 BEFORE the transpose/pad: halves the host-side relayout
    # HBM traffic and the kernel's x DMA.
    x_tm = jnp.transpose(x.astype(jnp.bfloat16), (1, 0, 2))        # (T, B, D)
    x_tm = jnp.pad(x_tm, ((0, Tp - T), (0, Bp - B), (0, 0)))
    x_chunks = x_tm.reshape(nchunks, chunk * Bp, D)                 # contiguous

    wih_p, whh_p, b_p = _prepare_params(params, H, Hp)

    kernel = functools.partial(_bilstm_kernel, hp=Hp, chunk=chunk, bpad=Bp,
                               nchunks=nchunks, seq_len=T, ragged=ragged)

    flops = 2 * Tp * 2 * Bp * (D + Hp) * G
    transcendentals = 2 * Tp * 5 * Bp * Hp
    bytes_accessed = (2 * x_chunks.size + 2 * wih_p.size + 2 * whh_p.size
                      + 4 * b_p.size + 4 * 2 * Bp * Hp)

    h_n = pl.pallas_call(
        kernel,
        out_shape=jax.ShapeDtypeStruct((2, Bp, Hp), jnp.float32),
        grid_spec=pltpu.PrefetchScalarGridSpec(
            num_scalar_prefetch=0,
            grid=(nchunks,),
            in_specs=[
                # forward x chunk
                pl.BlockSpec((None, chunk * Bp, D), lambda c: (c, 0, 0)),
                # backward x chunk: walks chunks in reverse, no reversed copy
                pl.BlockSpec((None, chunk * Bp, D),
                             lambda c: (nchunks - 1 - c, 0, 0)),
                pl.BlockSpec((2, D, G), lambda c: (0, 0, 0)),    # W_ih (bf16)
                pl.BlockSpec((2, Hp, G), lambda c: (0, 0, 0)),   # W_hh (bf16)
                pl.BlockSpec((2, 1, G), lambda c: (0, 0, 0)),    # bias (f32)
            ],
            out_specs=pl.BlockSpec((2, Bp, Hp), lambda c: (0, 0, 0)),
            scratch_shapes=[
                pltpu.VMEM((Bp, Hp), jnp.float32),               # h fwd
                pltpu.VMEM((Bp, Hp), jnp.float32),               # c fwd
                pltpu.VMEM((Bp, Hp), jnp.float32),               # h bwd
                pltpu.VMEM((Bp, Hp), jnp.float32),               # c bwd
                pltpu.VMEM((chunk * Bp, G), jnp.float32),        # xg fwd
                pltpu.VMEM((chunk * Bp, G), jnp.float32),        # xg bwd
            ],
        ),
        compiler_params=pltpu.CompilerParams(
            dimension_semantics=("arbitrary",),   # true recurrence over chunks
            vmem_limit_bytes=vmem_limit,
        ),
        cost_estimate=pl.CostEstimate(flops=flops,
                                      transcendentals=transcendentals,
                                      bytes_accessed=bytes_accessed),
    )(x_chunks, x_chunks, wih_p, whh_p, b_p)

    return h_n[:, :B, :H]


# ---------------- pure-JAX reference (for correctness check) ----------------
def _lstm_ref_dir(x_tm, w_ih, w_hh, b, H):
    def step(carry, x_t):
        h, c = carry
        gates = x_t @ w_ih + h @ w_hh + b[0]
        i = jax.nn.sigmoid(gates[:, :H])
        f = jax.nn.sigmoid(gates[:, H:2 * H])
        g = jnp.tanh(gates[:, 2 * H:3 * H])
        o = jax.nn.sigmoid(gates[:, 3 * H:])
        c = f * c + i * g
        h = o * jnp.tanh(c)
        return (h, c), None

    B = x_tm.shape[1]
    init = (jnp.zeros((B, H), jnp.float32), jnp.zeros((B, H), jnp.float32))
    (h, _), _ = jax.lax.scan(step, init, x_tm)
    return h


def bilstm_ref(x, params, H):
    x_tm = jnp.transpose(x, (1, 0, 2))
    h_f = _lstm_ref_dir(x_tm, params["wih"][0], params["whh"][0],
                        params["b"][0], H)
    h_b = _lstm_ref_dir(x_tm[::-1], params["wih"][1], params["whh"][1],
                        params["b"][1], H)
    return jnp.stack([h_f, h_b], axis=0)


def init_params(key, input_size, hidden_size):
    """Mirrors torch.nn.LSTM's U(-1/sqrt(H), 1/sqrt(H)) init, stored stacked
    over directions and pre-transposed: wih (2, D, 4H), whh (2, H, 4H),
    b (2, 1, 4H) with b = b_ih + b_hh, gate order [i, f, g, o]."""
    stdv = 1.0 / jnp.sqrt(jnp.float32(hidden_size))
    keys = jax.random.split(key, 8)
    u = lambda k, shape: jax.random.uniform(k, shape, jnp.float32, -stdv, stdv)
    D, H = input_size, hidden_size
    return {
        "wih": jnp.stack([u(keys[0], (D, 4 * H)), u(keys[4], (D, 4 * H))]),
        "whh": jnp.stack([u(keys[1], (H, 4 * H)), u(keys[5], (H, 4 * H))]),
        "b": jnp.stack([u(keys[2], (1, 4 * H)) + u(keys[3], (1, 4 * H)),
                        u(keys[6], (1, 4 * H)) + u(keys[7], (1, 4 * H))]),
    }


if __name__ == "__main__":
    # Small shapes consistent with the module's forward: x is (B, T, input_size).
    B, T, D, H = 2, 8, 16, 32
    key = jax.random.PRNGKey(0)
    kx, kp, kx2 = jax.random.split(key, 3)
    x = jax.random.normal(kx, (B, T, D), jnp.float32)
    params = init_params(kp, D, H)

    h_n = jax.block_until_ready(jax.jit(bilstm_layer)(x, params))
    assert h_n.shape == (2, B, H), h_n.shape
    h_ref = bilstm_ref(x, params, H)
    err = float(jnp.max(jnp.abs(h_n - h_ref)))
    # Tolerance deliberately loosened vs. the f32 reference: matmuls run in
    # bf16 with f32 accumulation (intentional precision trade-off).
    assert err < 4e-2, err

    # Ragged path: T not a multiple of chunk, batch not a multiple of 8.
    B2, T2 = 3, 11
    x2 = jax.random.normal(kx2, (B2, T2, D), jnp.float32)
    h_n2 = jax.block_until_ready(
        jax.jit(functools.partial(bilstm_layer, chunk=4))(x2, params))
    assert h_n2.shape == (2, B2, H), h_n2.shape
    h_ref2 = bilstm_ref(x2, params, H)
    err2 = float(jnp.max(jnp.abs(h_n2 - h_ref2)))
    assert err2 < 4e-2, err2

    print("KERNEL_OK")
</pallas_src>

<mosaic_0001>
module attributes {stable_mosaic.version = 11 : i64} {
  func.func @_bilstm_kernel(%arg0: i32, %arg1: memref<1x64x16xbf16, #tpu.memory_space<vmem>>, %arg2: memref<1x64x16xbf16, #tpu.memory_space<vmem>>, %arg3: memref<2x16x512xbf16, #tpu.memory_space<vmem>>, %arg4: memref<2x128x512xbf16, #tpu.memory_space<vmem>>, %arg5: memref<2x1x512xf32, #tpu.memory_space<vmem>>, %arg6: memref<2x8x128xf32, #tpu.memory_space<vmem>>, %arg7: memref<8x128xf32, #tpu.memory_space<vmem>>, %arg8: memref<8x128xf32, #tpu.memory_space<vmem>>, %arg9: memref<8x128xf32, #tpu.memory_space<vmem>>, %arg10: memref<8x128xf32, #tpu.memory_space<vmem>>, %arg11: memref<64x512xf32, #tpu.memory_space<vmem>>, %arg12: memref<64x512xf32, #tpu.memory_space<vmem>>) attributes {dimension_semantics = [#tpu.dimension_semantics<arbitrary>], iteration_bounds = array<i64: 1>, scalar_prefetch = 0 : i64, scratch_operands = 6 : i64, tpu.core_type = #tpu.core_type<tc>, window_params = [{transform_indices = @transform_0, window_bounds = array<i64: 1, 64, 16>}, {transform_indices = @transform_1, window_bounds = array<i64: 1, 64, 16>}, {pipeline_mode = #tpu.pipeline_mode<synchronous>, transform_indices = @transform_2, window_bounds = array<i64: 2, 16, 512>}, {pipeline_mode = #tpu.pipeline_mode<synchronous>, transform_indices = @transform_3, window_bounds = array<i64: 2, 128, 512>}, {pipeline_mode = #tpu.pipeline_mode<synchronous>, transform_indices = @transform_4, window_bounds = array<i64: 2, 1, 512>}, {pipeline_mode = #tpu.pipeline_mode<synchronous>, transform_indices = @transform_5, window_bounds = array<i64: 2, 8, 128>}]} {
    %c0_i32 = arith.constant 0 : i32
    %0 = arith.cmpi eq, %arg0, %c0_i32 : i32
    %1 = arith.extui %0 : i1 to i32
    %c0_i32_0 = arith.constant 0 : i32
    %2 = arith.cmpi ne, %1, %c0_i32_0 : i32
    scf.if %2 {
      %cst_135 = arith.constant 0.000000e+00 : f32
      %502 = vector.broadcast %cst_135 : f32 to vector<8x128xf32>
      %c0_136 = arith.constant 0 : index
      %c0_137 = arith.constant 0 : index
      %503 = vector.load %arg7[%c0_136, %c0_137] : memref<8x128xf32, #tpu.memory_space<vmem>>, vector<8x128xf32>
      tpu.vector_store %arg7[%c0_136, %c0_137], %502 {strides = array<i32>} : memref<8x128xf32, #tpu.memory_space<vmem>>, vector<8x128xf32>,
      %cst_138 = arith.constant 0.000000e+00 : f32
      %504 = vector.broadcast %cst_138 : f32 to vector<8x128xf32>
      %c0_139 = arith.constant 0 : index
      %c0_140 = arith.constant 0 : index
      %505 = vector.load %arg8[%c0_139, %c0_140] : memref<8x128xf32, #tpu.memory_space<vmem>>, vector<8x128xf32>
      tpu.vector_store %arg8[%c0_139, %c0_140], %504 {strides = array<i32>} : memref<8x128xf32, #tpu.memory_space<vmem>>, vector<8x128xf32>,
      %cst_141 = arith.constant 0.000000e+00 : f32
      %506 = vector.broadcast %cst_141 : f32 to vector<8x128xf32>
      %c0_142 = arith.constant 0 : index
      %c0_143 = arith.constant 0 : index
      %507 = vector.load %arg9[%c0_142, %c0_143] : memref<8x128xf32, #tpu.memory_space<vmem>>, vector<8x128xf32>
      tpu.vector_store %arg9[%c0_142, %c0_143], %506 {strides = array<i32>} : memref<8x128xf32, #tpu.memory_space<vmem>>, vector<8x128xf32>,
      %cst_144 = arith.constant 0.000000e+00 : f32
      %508 = vector.broadcast %cst_144 : f32 to vector<8x128xf32>
      %c0_145 = arith.constant 0 : index
      %c0_146 = arith.constant 0 : index
      %509 = vector.load %arg10[%c0_145, %c0_146] : memref<8x128xf32, #tpu.memory_space<vmem>>, vector<8x128xf32>
      tpu.vector_store %arg10[%c0_145, %c0_146], %508 {strides = array<i32>} : memref<8x128xf32, #tpu.memory_space<vmem>>, vector<8x128xf32>,
    } else {
    }
    %c0 = arith.constant 0 : index
    %c0_1 = arith.constant 0 : index
    %c0_2 = arith.constant 0 : index
    %3 = vector.load %arg1[%c0, %c0_1, %c0_2] : memref<1x64x16xbf16, #tpu.memory_space<vmem>>, vector<1x64x16xbf16>
    %4 = vector.shape_cast %3 : vector<1x64x16xbf16> to vector<64x16xbf16>
    %c0_3 = arith.constant 0 : index
    %c0_4 = arith.constant 0 : index
    %c0_5 = arith.constant 0 : index
    %5 = vector.load %arg3[%c0_3, %c0_4, %c0_5] : memref<2x16x512xbf16, #tpu.memory_space<vmem>>, vector<1x16x512xbf16>
    %6 = vector.shape_cast %5 : vector<1x16x512xbf16> to vector<16x512xbf16>
    %cst = arith.constant dense<0.000000e+00> : vector<64x512xf32>
    %7 = tpu.matmul %4, %6, %cst {dimension_numbers = #tpu.dot_dimension_numbers<[1], [0], [0], [1], [0, 0, 1, 1], [], []>} : vector<64x16xbf16>, vector<16x512xbf16>, vector<64x512xf32> -> vector<64x512xf32>
    %c0_6 = arith.constant 0 : index
    %c0_7 = arith.constant 0 : index
    %c0_8 = arith.constant 0 : index
    %8 = vector.load %arg5[%c0_6, %c0_7, %c0_8] : memref<2x1x512xf32, #tpu.memory_space<vmem>>, vector<1x1x512xf32>
    %9 = vector.shape_cast %8 : vector<1x1x512xf32> to vector<1x512xf32>
    %10 = vector.broadcast %9 : vector<1x512xf32> to vector<64x512xf32>
    %11 = arith.addf %7, %10 : vector<64x512xf32>
    %c0_9 = arith.constant 0 : index
    %c0_10 = arith.constant 0 : index
    %12 = vector.load %arg11[%c0_9, %c0_10] : memref<64x512xf32, #tpu.memory_space<vmem>>, vector<64x512xf32>
    tpu.vector_store %arg11[%c0_9, %c0_10], %11 {strides = array<i32>} : memref<64x512xf32, #tpu.memory_space<vmem>>, vector<64x512xf32>,
    %c0_11 = arith.constant 0 : index
    %c0_12 = arith.constant 0 : index
    %c0_13 = arith.constant 0 : index
    %13 = vector.load %arg2[%c0_11, %c0_12, %c0_13] : memref<1x64x16xbf16, #tpu.memory_space<vmem>>, vector<1x64x16xbf16>
    %14 = vector.shape_cast %13 : vector<1x64x16xbf16> to vector<64x16xbf16>
    %c1 = arith.constant 1 : index
    %c0_14 = arith.constant 0 : index
    %c0_15 = arith.constant 0 : index
    %15 = vector.load %arg3[%c1, %c0_14, %c0_15] : memref<2x16x512xbf16, #tpu.memory_space<vmem>>, vector<1x16x512xbf16>
    %16 = vector.shape_cast %15 : vector<1x16x512xbf16> to vector<16x512xbf16>
    %cst_16 = arith.constant dense<0.000000e+00> : vector<64x512xf32>
    %17 = tpu.matmul %14, %16, %cst_16 {dimension_numbers = #tpu.dot_dimension_numbers<[1], [0], [0], [1], [0, 0, 1, 1], [], []>} : vector<64x16xbf16>, vector<16x512xbf16>, vector<64x512xf32> -> vector<64x512xf32>
    %c1_17 = arith.constant 1 : index
    %c0_18 = arith.constant 0 : index
    %c0_19 = arith.constant 0 : index
    %18 = vector.load %arg5[%c1_17, %c0_18, %c0_19] : memref<2x1x512xf32, #tpu.memory_space<vmem>>, vector<1x1x512xf32>
    %19 = vector.shape_cast %18 : vector<1x1x512xf32> to vector<1x512xf32>
    %20 = vector.broadcast %19 : vector<1x512xf32> to vector<64x512xf32>
    %21 = arith.addf %17, %20 : vector<64x512xf32>
    %c0_20 = arith.constant 0 : index
    %c0_21 = arith.constant 0 : index
    %22 = vector.load %arg12[%c0_20, %c0_21] : memref<64x512xf32, #tpu.memory_space<vmem>>, vector<64x512xf32>
    tpu.vector_store %arg12[%c0_20, %c0_21], %21 {strides = array<i32>} : memref<64x512xf32, #tpu.memory_space<vmem>>, vector<64x512xf32>,
    %c0_22 = arith.constant 0 : index
    %c0_23 = arith.constant 0 : index
    %c0_24 = arith.constant 0 : index
    %23 = vector.load %arg4[%c0_22, %c0_23, %c0_24] : memref<2x128x512xbf16, #tpu.memory_space<vmem>>, vector<1x128x512xbf16>
    %24 = vector.shape_cast %23 : vector<1x128x512xbf16> to vector<128x512xbf16>
    %c1_25 = arith.constant 1 : index
    %c0_26 = arith.constant 0 : index
    %c0_27 = arith.constant 0 : index
    %25 = vector.load %arg4[%c1_25, %c0_26, %c0_27] : memref<2x128x512xbf16, #tpu.memory_space<vmem>>, vector<1x128x512xbf16>
    %26 = vector.shape_cast %25 : vector<1x128x512xbf16> to vector<128x512xbf16>
    %c0_28 = arith.constant 0 : index
    %c0_29 = arith.constant 0 : index
    %27 = vector.load %arg7[%c0_28, %c0_29] : memref<8x128xf32, #tpu.memory_space<vmem>>, vector<8x128xf32>
    %c0_30 = arith.constant 0 : index
    %c0_31 = arith.constant 0 : index
    %28 = vector.load %arg8[%c0_30, %c0_31] : memref<8x128xf32, #tpu.memory_space<vmem>>, vector<8x128xf32>
    %c0_32 = arith.constant 0 : index
    %c0_33 = arith.constant 0 : index
    %29 = vector.load %arg9[%c0_32, %c0_33] : memref<8x128xf32, #tpu.memory_space<vmem>>, vector<8x128xf32>
    %c0_34 = arith.constant 0 : index
    %c0_35 = arith.constant 0 : index
    %30 = vector.load %arg10[%c0_34, %c0_35] : memref<8x128xf32, #tpu.memory_space<vmem>>, vector<8x128xf32>
    %c0_36 = arith.constant 0 : index
    %c0_37 = arith.constant 0 : index
    %31 = vector.load %arg11[%c0_36, %c0_37] : memref<64x512xf32, #tpu.memory_space<vmem>>, vector<8x512xf32>
    %32 = arith.truncf %27 : vector<8x128xf32> to vector<8x128xbf16>
    %cst_38 = arith.constant dense<0.000000e+00> : vector<8x512xf32>
    %33 = tpu.matmul %32, %24, %cst_38 {dimension_numbers = #tpu.dot_dimension_numbers<[1], [0], [0], [1], [0, 0, 1, 1], [], []>} : vector<8x128xbf16>, vector<128x512xbf16>, vector<8x512xf32> -> vector<8x512xf32>
    %34 = arith.addf %31, %33 : vector<8x512xf32>
    %c56 = arith.constant 56 : index
    %c0_39 = arith.constant 0 : index
    %35 = vector.load %arg12[%c56, %c0_39] : memref<64x512xf32, #tpu.memory_space<vmem>>, vector<8x512xf32>
    %36 = arith.truncf %29 : vector<8x128xf32> to vector<8x128xbf16>
    %cst_40 = arith.constant dense<0.000000e+00> : vector<8x512xf32>
    %37 = tpu.matmul %36, %26, %cst_40 {dimension_numbers = #tpu.dot_dimension_numbers<[1], [0], [0], [1], [0, 0, 1, 1], [], []>} : vector<8x128xbf16>, vector<128x512xbf16>, vector<8x512xf32> -> vector<8x512xf32>
    %38 = arith.addf %35, %37 : vector<8x512xf32>
    %39 = vector.extract_strided_slice %34 {offsets = [0, 0], sizes = [8, 128], strides = [1, 1]} : vector<8x512xf32> to vector<8x128xf32>
    %40 = arith.negf %39 : vector<8x128xf32>
    %41 = math.exp %40 : vector<8x128xf32>
    %cst_41 = arith.constant 1.000000e+00 : f32
    %42 = vector.broadcast %cst_41 : f32 to vector<8x128xf32>
    %43 = arith.addf %42, %41 : vector<8x128xf32>
    %44 = arith.divf %42, %43 : vector<8x128xf32>
    %45 = vector.extract_strided_slice %38 {offsets = [0, 0], sizes = [8, 128], strides = [1, 1]} : vector<8x512xf32> to vector<8x128xf32>
    %46 = arith.negf %45 : vector<8x128xf32>
    %47 = math.exp %46 : vector<8x128xf32>
    %cst_42 = arith.constant 1.000000e+00 : f32
    %48 = vector.broadcast %cst_42 : f32 to vector<8x128xf32>
    %49 = arith.addf %48, %47 : vector<8x128xf32>
    %50 = arith.divf %48, %49 : vector<8x128xf32>
    %51 = vector.extract_strided_slice %34 {offsets = [0, 128], sizes = [8, 128], strides = [1, 1]} : vector<8x512xf32> to vector<8x128xf32>
    %52 = arith.negf %51 : vector<8x128xf32>
    %53 = math.exp %52 : vector<8x128xf32>
    %cst_43 = arith.constant 1.000000e+00 : f32
    %54 = vector.broadcast %cst_43 : f32 to vector<8x128xf32>
    %55 = arith.addf %54, %53 : vector<8x128xf32>
    %56 = arith.divf %54, %55 : vector<8x128xf32>
    %57 = vector.extract_strided_slice %38 {offsets = [0, 128], sizes = [8, 128], strides = [1, 1]} : vector<8x512xf32> to vector<8x128xf32>
    %58 = arith.negf %57 : vector<8x128xf32>
    %59 = math.exp %58 : vector<8x128xf32>
    %cst_44 = arith.constant 1.000000e+00 : f32
    %60 = vector.broadcast %cst_44 : f32 to vector<8x128xf32>
    %61 = arith.addf %60, %59 : vector<8x128xf32>
    %62 = arith.divf %60, %61 : vector<8x128xf32>
    %63 = vector.extract_strided_slice %34 {offsets = [0, 256], sizes = [8, 128], strides = [1, 1]} : vector<8x512xf32> to vector<8x128xf32>
    %64 = math.tanh %63 : vector<8x128xf32>
    %65 = vector.extract_strided_slice %38 {offsets = [0, 256], sizes = [8, 128], strides = [1, 1]} : vector<8x512xf32> to vector<8x128xf32>
    %66 = math.tanh %65 : vector<8x128xf32>
    %67 = vector.extract_strided_slice %34 {offsets = [0, 384], sizes = [8, 128], strides = [1, 1]} : vector<8x512xf32> to vector<8x128xf32>
    %68 = arith.negf %67 : vector<8x128xf32>
    %69 = math.exp %68 : vector<8x128xf32>
    %cst_45 = arith.constant 1.000000e+00 : f32
    %70 = vector.broadcast %cst_45 : f32 to vector<8x128xf32>
    %71 = arith.addf %70, %69 : vector<8x128xf32>
    %72 = arith.divf %70, %71 : vector<8x128xf32>
    %73 = vector.extract_strided_slice %38 {offsets = [0, 384], sizes = [8, 128], strides = [1, 1]} : vector<8x512xf32> to vector<8x128xf32>
    %74 = arith.negf %73 : vector<8x128xf32>
    %75 = math.exp %74 : vector<8x128xf32>
    %cst_46 = arith.constant 1.000000e+00 : f32
    %76 = vector.broadcast %cst_46 : f32 to vector<8x128xf32>
    %77 = arith.addf %76, %75 : vector<8x128xf32>
    %78 = arith.divf %76, %77 : vector<8x128xf32>
    %79 = arith.mulf %56, %28 : vector<8x128xf32>
    %80 = arith.mulf %44, %64 : vector<8x128xf32>
    %81 = arith.addf %79, %80 : vector<8x128xf32>
    %82 = arith.mulf %62, %30 : vector<8x128xf32>
    %83 = arith.mulf %50, %66 : vector<8x128xf32>
    %84 = arith.addf %82, %83 : vector<8x128xf32>
    %85 = math.tanh %81 : vector<8x128xf32>
    %86 = arith.mulf %72, %85 : vector<8x128xf32>
    %87 = math.tanh %84 : vector<8x128xf32>
    %88 = arith.mulf %78, %87 : vector<8x128xf32>
    %c8 = arith.constant 8 : index
    %c0_47 = arith.constant 0 : index
    %89 = vector.load %arg11[%c8, %c0_47] : memref<64x512xf32, #tpu.memory_space<vmem>>, vector<8x512xf32>
    %90 = arith.truncf %86 : vector<8x128xf32> to vector<8x128xbf16>
    %cst_48 = arith.constant dense<0.000000e+00> : vector<8x512xf32>
    %91 = tpu.matmul %90, %24, %cst_48 {dimension_numbers = #tpu.dot_dimension_numbers<[1], [0], [0], [1], [0, 0, 1, 1], [], []>} : vector<8x128xbf16>, vector<128x512xbf16>, vector<8x512xf32> -> vector<8x512xf32>
    %92 = arith.addf %89, %91 : vector<8x512xf32>
    %c48 = arith.constant 48 : index
    %c0_49 = arith.constant 0 : index
    %93 = vector.load %arg12[%c48, %c0_49] : memref<64x512xf32, #tpu.memory_space<vmem>>, vector<8x512xf32>
    %94 = arith.truncf %88 : vector<8x128xf32> to vector<8x128xbf16>
    %cst_50 = arith.constant dense<0.000000e+00> : vector<8x512xf32>
    %95 = tpu.matmul %94, %26, %cst_50 {dimension_numbers = #tpu.dot_dimension_numbers<[1], [0], [0], [1], [0, 0, 1, 1], [], []>} : vector<8x128xbf16>, vector<128x512xbf16>, vector<8x512xf32> -> vector<8x512xf32>
    %96 = arith.addf %93, %95 : vector<8x512xf32>
    %97 = vector.extract_strided_slice %92 {offsets = [0, 0], sizes = [8, 128], strides = [1, 1]} : vector<8x512xf32> to vector<8x128xf32>
    %98 = arith.negf %97 : vector<8x128xf32>
    %99 = math.exp %98 : vector<8x128xf32>
    %cst_51 = arith.constant 1.000000e+00 : f32
    %100 = vector.broadcast %cst_51 : f32 to vector<8x128xf32>
    %101 = arith.addf %100, %99 : vector<8x128xf32>
    %102 = arith.divf %100, %101 : vector<8x128xf32>
    %103 = vector.extract_strided_slice %96 {offsets = [0, 0], sizes = [8, 128], strides = [1, 1]} : vector<8x512xf32> to vector<8x128xf32>
    %104 = arith.negf %103 : vector<8x128xf32>
    %105 = math.exp %104 : vector<8x128xf32>
    %cst_52 = arith.constant 1.000000e+00 : f32
    %106 = vector.broadcast %cst_52 : f32 to vector<8x128xf32>
    %107 = arith.addf %106, %105 : vector<8x128xf32>
    %108 = arith.divf %106, %107 : vector<8x128xf32>
    %109 = vector.extract_strided_slice %92 {offsets = [0, 128], sizes = [8, 128], strides = [1, 1]} : vector<8x512xf32> to vector<8x128xf32>
    %110 = arith.negf %109 : vector<8x128xf32>
    %111 = math.exp %110 : vector<8x128xf32>
    %cst_53 = arith.constant 1.000000e+00 : f32
    %112 = vector.broadcast %cst_53 : f32 to vector<8x128xf32>
    %113 = arith.addf %112, %111 : vector<8x128xf32>
    %114 = arith.divf %112, %113 : vector<8x128xf32>
    %115 = vector.extract_strided_slice %96 {offsets = [0, 128], sizes = [8, 128], strides = [1, 1]} : vector<8x512xf32> to vector<8x128xf32>
    %116 = arith.negf %115 : vector<8x128xf32>
    %117 = math.exp %116 : vector<8x128xf32>
    %cst_54 = arith.constant 1.000000e+00 : f32
    %118 = vector.broadcast %cst_54 : f32 to vector<8x128xf32>
    %119 = arith.addf %118, %117 : vector<8x128xf32>
    %120 = arith.divf %118, %119 : vector<8x128xf32>
    %121 = vector.extract_strided_slice %92 {offsets = [0, 256], sizes = [8, 128], strides = [1, 1]} : vector<8x512xf32> to vector<8x128xf32>
    %122 = math.tanh %121 : vector<8x128xf32>
    %123 = vector.extract_strided_slice %96 {offsets = [0, 256], sizes = [8, 128], strides = [1, 1]} : vector<8x512xf32> to vector<8x128xf32>
    %124 = math.tanh %123 : vector<8x128xf32>
    %125 = vector.extract_strided_slice %92 {offsets = [0, 384], sizes = [8, 128], strides = [1, 1]} : vector<8x512xf32> to vector<8x128xf32>
    %126 = arith.negf %125 : vector<8x128xf32>
    %127 = math.exp %126 : vector<8x128xf32>
    %cst_55 = arith.constant 1.000000e+00 : f32
    %128 = vector.broadcast %cst_55 : f32 to vector<8x128xf32>
    %129 = arith.addf %128, %127 : vector<8x128xf32>
    %130 = arith.divf %128, %129 : vector<8x128xf32>
    %131 = vector.extract_strided_slice %96 {offsets = [0, 384], sizes = [8, 128], strides = [1, 1]} : vector<8x512xf32> to vector<8x128xf32>
    %132 = arith.negf %131 : vector<8x128xf32>
    %133 = math.exp %132 : vector<8x128xf32>
    %cst_56 = arith.constant 1.000000e+00 : f32
    %134 = vector.broadcast %cst_56 : f32 to vector<8x128xf32>
    %135 = arith.addf %134, %133 : vector<8x128xf32>
    %136 = arith.divf %134, %135 : vector<8x128xf32>
    %137 = arith.mulf %114, %81 : vector<8x128xf32>
    %138 = arith.mulf %102, %122 : vector<8x128xf32>
    %139 = arith.addf %137, %138 : vector<8x128xf32>
    %140 = arith.mulf %120, %84 : vector<8x128xf32>
    %141 = arith.mulf %108, %124 : vector<8x128xf32>
    %142 = arith.addf %140, %141 : vector<8x128xf32>
    %143 = math.tanh %139 : vector<8x128xf32>
    %144 = arith.mulf %130, %143 : vector<8x128xf32>
    %145 = math.tanh %142 : vector<8x128xf32>
    %146 = arith.mulf %136, %145 : vector<8x128xf32>
    %c16 = arith.constant 16 : index
    %c0_57 = arith.constant 0 : index
    %147 = vector.load %arg11[%c16, %c0_57] : memref<64x512xf32, #tpu.memory_space<vmem>>, vector<8x512xf32>
    %148 = arith.truncf %144 : vector<8x128xf32> to vector<8x128xbf16>
    %cst_58 = arith.constant dense<0.000000e+00> : vector<8x512xf32>
    %149 = tpu.matmul %148, %24, %cst_58 {dimension_numbers = #tpu.dot_dimension_numbers<[1], [0], [0], [1], [0, 0, 1, 1], [], []>} : vector<8x128xbf16>, vector<128x512xbf16>, vector<8x512xf32> -> vector<8x512xf32>
    %150 = arith.addf %147, %149 : vector<8x512xf32>
    %c40 = arith.constant 40 : index
    %c0_59 = arith.constant 0 : index
    %151 = vector.load %arg12[%c40, %c0_59] : memref<64x512xf32, #tpu.memory_space<vmem>>, vector<8x512xf32>
    %152 = arith.truncf %146 : vector<8x128xf32> to vector<8x128xbf16>
    %cst_60 = arith.constant dense<0.000000e+00> : vector<8x512xf32>
    %153 = tpu.matmul %152, %26, %cst_60 {dimension_numbers = #tpu.dot_dimension_numbers<[1], [0], [0], [1], [0, 0, 1, 1], [], []>} : vector<8x128xbf16>, vector<128x512xbf16>, vector<8x512xf32> -> vector<8x512xf32>
    %154 = arith.addf %151, %153 : vector<8x512xf32>
    %155 = vector.extract_strided_slice %150 {offsets = [0, 0], sizes = [8, 128], strides = [1, 1]} : vector<8x512xf32> to vector<8x128xf32>
    %156 = arith.negf %155 : vector<8x128xf32>
    %157 = math.exp %156 : vector<8x128xf32>
    %cst_61 = arith.constant 1.000000e+00 : f32
    %158 = vector.broadcast %cst_61 : f32 to vector<8x128xf32>
    %159 = arith.addf %158, %157 : vector<8x128xf32>
    %160 = arith.divf %158, %159 : vector<8x128xf32>
    %161 = vector.extract_strided_slice %154 {offsets = [0, 0], sizes = [8, 128], strides = [1, 1]} : vector<8x512xf32> to vector<8x128xf32>
    %162 = arith.negf %161 : vector<8x128xf32>
    %163 = math.exp %162 : vector<8x128xf32>
    %cst_62 = arith.constant 1.000000e+00 : f32
    %164 = vector.broadcast %cst_62 : f32 to vector<8x128xf32>
    %165 = arith.addf %164, %163 : vector<8x128xf32>
    %166 = arith.divf %164, %165 : vector<8x128xf32>
    %167 = vector.extract_strided_slice %150 {offsets = [0, 128], sizes = [8, 128], strides = [1, 1]} : vector<8x512xf32> to vector<8x128xf32>
    %168 = arith.negf %167 : vector<8x128xf32>
    %169 = math.exp %168 : vector<8x128xf32>
    %cst_63 = arith.constant 1.000000e+00 : f32
    %170 = vector.broadcast %cst_63 : f32 to vector<8x128xf32>
    %171 = arith.addf %170, %169 : vector<8x128xf32>
    %172 = arith.divf %170, %171 : vector<8x128xf32>
    %173 = vector.extract_strided_slice %154 {offsets = [0, 128], sizes = [8, 128], strides = [1, 1]} : vector<8x512xf32> to vector<8x128xf32>
    %174 = arith.negf %173 : vector<8x128xf32>
    %175 = math.exp %174 : vector<8x128xf32>
    %cst_64 = arith.constant 1.000000e+00 : f32
    %176 = vector.broadcast %cst_64 : f32 to vector<8x128xf32>
    %177 = arith.addf %176, %175 : vector<8x128xf32>
    %178 = arith.divf %176, %177 : vector<8x128xf32>
    %179 = vector.extract_strided_slice %150 {offsets = [0, 256], sizes = [8, 128], strides = [1, 1]} : vector<8x512xf32> to vector<8x128xf32>
    %180 = math.tanh %179 : vector<8x128xf32>
    %181 = vector.extract_strided_slice %154 {offsets = [0, 256], sizes = [8, 128], strides = [1, 1]} : vector<8x512xf32> to vector<8x128xf32>
    %182 = math.tanh %181 : vector<8x128xf32>
    %183 = vector.extract_strided_slice %150 {offsets = [0, 384], sizes = [8, 128], strides = [1, 1]} : vector<8x512xf32> to vector<8x128xf32>
    %184 = arith.negf %183 : vector<8x128xf32>
    %185 = math.exp %184 : vector<8x128xf32>
    %cst_65 = arith.constant 1.000000e+00 : f32
    %186 = vector.broadcast %cst_65 : f32 to vector<8x128xf32>
    %187 = arith.addf %186, %185 : vector<8x128xf32>
    %188 = arith.divf %186, %187 : vector<8x128xf32>
    %189 = vector.extract_strided_slice %154 {offsets = [0, 384], sizes = [8, 128], strides = [1, 1]} : vector<8x512xf32> to vector<8x128xf32>
    %190 = arith.negf %189 : vector<8x128xf32>
    %191 = math.exp %190 : vector<8x128xf32>
    %cst_66 = arith.constant 1.000000e+00 : f32
    %192 = vector.broadcast %cst_66 : f32 to vector<8x128xf32>
    %193 = arith.addf %192, %191 : vector<8x128xf32>
    %194 = arith.divf %192, %193 : vector<8x128xf32>
    %195 = arith.mulf %172, %139 : vector<8x128xf32>
    %196 = arith.mulf %160, %180 : vector<8x128xf32>
    %197 = arith.addf %195, %196 : vector<8x128xf32>
    %198 = arith.mulf %178, %142 : vector<8x128xf32>
    %199 = arith.mulf %166, %182 : vector<8x128xf32>
    %200 = arith.addf %198, %199 : vector<8x128xf32>
    %201 = math.tanh %197 : vector<8x128xf32>
    %202 = arith.mulf %188, %201 : vector<8x128xf32>
    %203 = math.tanh %200 : vector<8x128xf32>
    %204 = arith.mulf %194, %203 : vector<8x128xf32>
    %c24 = arith.constant 24 : index
    %c0_67 = arith.constant 0 : index
    %205 = vector.load %arg11[%c24, %c0_67] : memref<64x512xf32, #tpu.memory_space<vmem>>, vector<8x512xf32>
    %206 = arith.truncf %202 : vector<8x128xf32> to vector<8x128xbf16>
    %cst_68 = arith.constant dense<0.000000e+00> : vector<8x512xf32>
    %207 = tpu.matmul %206, %24, %cst_68 {dimension_numbers = #tpu.dot_dimension_numbers<[1], [0], [0], [1], [0, 0, 1, 1], [], []>} : vector<8x128xbf16>, vector<128x512xbf16>, vector<8x512xf32> -> vector<8x512xf32>
    %208 = arith.addf %205, %207 : vector<8x512xf32>
    %c32 = arith.constant 32 : index
    %c0_69 = arith.constant 0 : index
    %209 = vector.load %arg12[%c32, %c0_69] : memref<64x512xf32, #tpu.memory_space<vmem>>, vector<8x512xf32>
    %210 = arith.truncf %204 : vector<8x128xf32> to vector<8x128xbf16>
    %cst_70 = arith.constant dense<0.000000e+00> : vector<8x512xf32>
    %211 = tpu.matmul %210, %26, %cst_70 {dimension_numbers = #tpu.dot_dimension_numbers<[1], [0], [0], [1], [0, 0, 1, 1], [], []>} : vector<8x128xbf16>, vector<128x512xbf16>, vector<8x512xf32> -> vector<8x512xf32>
    %212 = arith.addf %209, %211 : vector<8x512xf32>
    %213 = vector.extract_strided_slice %208 {offsets = [0, 0], sizes = [8, 128], strides = [1, 1]} : vector<8x512xf32> to vector<8x128xf32>
    %214 = arith.negf %213 : vector<8x128xf32>
    %215 = math.exp %214 : vector<8x128xf32>
    %cst_71 = arith.constant 1.000000e+00 : f32
    %216 = vector.broadcast %cst_71 : f32 to vector<8x128xf32>
    %217 = arith.addf %216, %215 : vector<8x128xf32>
    %218 = arith.divf %216, %217 : vector<8x128xf32>
    %219 = vector.extract_strided_slice %212 {offsets = [0, 0], sizes = [8, 128], strides = [1, 1]} : vector<8x512xf32> to vector<8x128xf32>
    %220 = arith.negf %219 : vector<8x128xf32>
    %221 = math.exp %220 : vector<8x128xf32>
    %cst_72 = arith.constant 1.000000e+00 : f32
    %222 = vector.broadcast %cst_72 : f32 to vector<8x128xf32>
    %223 = arith.addf %222, %221 : vector<8x128xf32>
    %224 = arith.divf %222, %223 : vector<8x128xf32>
    %225 = vector.extract_strided_slice %208 {offsets = [0, 128], sizes = [8, 128], strides = [1, 1]} : vector<8x512xf32> to vector<8x128xf32>
    %226 = arith.negf %225 : vector<8x128xf32>
    %227 = math.exp %226 : vector<8x128xf32>
    %cst_73 = arith.constant 1.000000e+00 : f32
    %228 = vector.broadcast %cst_73 : f32 to vector<8x128xf32>
    %229 = arith.addf %228, %227 : vector<8x128xf32>
    %230 = arith.divf %228, %229 : vector<8x128xf32>
    %231 = vector.extract_strided_slice %212 {offsets = [0, 128], sizes = [8, 128], strides = [1, 1]} : vector<8x512xf32> to vector<8x128xf32>
    %232 = arith.negf %231 : vector<8x128xf32>
    %233 = math.exp %232 : vector<8x128xf32>
    %cst_74 = arith.constant 1.000000e+00 : f32
    %234 = vector.broadcast %cst_74 : f32 to vector<8x128xf32>
    %235 = arith.addf %234, %233 : vector<8x128xf32>
    %236 = arith.divf %234, %235 : vector<8x128xf32>
    %237 = vector.extract_strided_slice %208 {offsets = [0, 256], sizes = [8, 128], strides = [1, 1]} : vector<8x512xf32> to vector<8x128xf32>
    %238 = math.tanh %237 : vector<8x128xf32>
    %239 = vector.extract_strided_slice %212 {offsets = [0, 256], sizes = [8, 128], strides = [1, 1]} : vector<8x512xf32> to vector<8x128xf32>
    %240 = math.tanh %239 : vector<8x128xf32>
    %241 = vector.extract_strided_slice %208 {offsets = [0, 384], sizes = [8, 128], strides = [1, 1]} : vector<8x512xf32> to vector<8x128xf32>
    %242 = arith.negf %241 : vector<8x128xf32>
    %243 = math.exp %242 : vector<8x128xf32>
    %cst_75 = arith.constant 1.000000e+00 : f32
    %244 = vector.broadcast %cst_75 : f32 to vector<8x128xf32>
    %245 = arith.addf %244, %243 : vector<8x128xf32>
    %246 = arith.divf %244, %245 : vector<8x128xf32>
    %247 = vector.extract_strided_slice %212 {offsets = [0, 384], sizes = [8, 128], strides = [1, 1]} : vector<8x512xf32> to vector<8x128xf32>
    %248 = arith.negf %247 : vector<8x128xf32>
    %249 = math.exp %248 : vector<8x128xf32>
    %cst_76 = arith.constant 1.000000e+00 : f32
    %250 = vector.broadcast %cst_76 : f32 to vector<8x128xf32>
    %251 = arith.addf %250, %249 : vector<8x128xf32>
    %252 = arith.divf %250, %251 : vector<8x128xf32>
    %253 = arith.mulf %230, %197 : vector<8x128xf32>
    %254 = arith.mulf %218, %238 : vector<8x128xf32>
    %255 = arith.addf %253, %254 : vector<8x128xf32>
    %256 = arith.mulf %236, %200 : vector<8x128xf32>
    %257 = arith.mulf %224, %240 : vector<8x128xf32>
    %258 = arith.addf %256, %257 : vector<8x128xf32>
    %259 = math.tanh %255 : vector<8x128xf32>
    %260 = arith.mulf %246, %259 : vector<8x128xf32>
    %261 = math.tanh %258 : vector<8x128xf32>
    %262 = arith.mulf %252, %261 : vector<8x128xf32>
    %c32_77 = arith.constant 32 : index
    %c0_78 = arith.constant 0 : index
    %263 = vector.load %arg11[%c32_77, %c0_78] : memref<64x512xf32, #tpu.memory_space<vmem>>, vector<8x512xf32>
    %264 = arith.truncf %260 : vector<8x128xf32> to vector<8x128xbf16>
    %cst_79 = arith.constant dense<0.000000e+00> : vector<8x512xf32>
    %265 = tpu.matmul %264, %24, %cst_79 {dimension_numbers = #tpu.dot_dimension_numbers<[1], [0], [0], [1], [0, 0, 1, 1], [], []>} : vector<8x128xbf16>, vector<128x512xbf16>, vector<8x512xf32> -> vector<8x512xf32>
    %266 = arith.addf %263, %265 : vector<8x512xf32>
    %c24_80 = arith.constant 24 : index
    %c0_81 = arith.constant 0 : index
    %267 = vector.load %arg12[%c24_80, %c0_81] : memref<64x512xf32, #tpu.memory_space<vmem>>, vector<8x512xf32>
    %268 = arith.truncf %262 : vector<8x128xf32> to vector<8x128xbf16>
    %cst_82 = arith.constant dense<0.000000e+00> : vector<8x512xf32>
    %269 = tpu.matmul %268, %26, %cst_82 {dimension_numbers = #tpu.dot_dimension_numbers<[1], [0], [0], [1], [0, 0, 1, 1], [], []>} : vector<8x128xbf16>, vector<128x512xbf16>, vector<8x512xf32> -> vector<8x512xf32>
    %270 = arith.addf %267, %269 : vector<8x512xf32>
    %271 = vector.extract_strided_slice %266 {offsets = [0, 0], sizes = [8, 128], strides = [1, 1]} : vector<8x512xf32> to vector<8x128xf32>
    %272 = arith.negf %271 : vector<8x128xf32>
    %273 = math.exp %272 : vector<8x128xf32>
    %cst_83 = arith.constant 1.000000e+00 : f32
    %274 = vector.broadcast %cst_83 : f32 to vector<8x128xf32>
    %275 = arith.addf %274, %273 : vector<8x128xf32>
    %276 = arith.divf %274, %275 : vector<8x128xf32>
    %277 = vector.extract_strided_slice %270 {offsets = [0, 0], sizes = [8, 128], strides = [1, 1]} : vector<8x512xf32> to vector<8x128xf32>
    %278 = arith.negf %277 : vector<8x128xf32>
    %279 = math.exp %278 : vector<8x128xf32>
    %cst_84 = arith.constant 1.000000e+00 : f32
    %280 = vector.broadcast %cst_84 : f32 to vector<8x128xf32>
    %281 = arith.addf %280, %279 : vector<8x128xf32>
    %282 = arith.divf %280, %281 : vector<8x128xf32>
    %283 = vector.extract_strided_slice %266 {offsets = [0, 128], sizes = [8, 128], strides = [1, 1]} : vector<8x512xf32> to vector<8x128xf32>
    %284 = arith.negf %283 : vector<8x128xf32>
    %285 = math.exp %284 : vector<8x128xf32>
    %cst_85 = arith.constant 1.000000e+00 : f32
    %286 = vector.broadcast %cst_85 : f32 to vector<8x128xf32>
    %287 = arith.addf %286, %285 : vector<8x128xf32>
    %288 = arith.divf %286, %287 : vector<8x128xf32>
    %289 = vector.extract_strided_slice %270 {offsets = [0, 128], sizes = [8, 128], strides = [1, 1]} : vector<8x512xf32> to vector<8x128xf32>
    %290 = arith.negf %289 : vector<8x128xf32>
    %291 = math.exp %290 : vector<8x128xf32>
    %cst_86 = arith.constant 1.000000e+00 : f32
    %292 = vector.broadcast %cst_86 : f32 to vector<8x128xf32>
    %293 = arith.addf %292, %291 : vector<8x128xf32>
    %294 = arith.divf %292, %293 : vector<8x128xf32>
    %295 = vector.extract_strided_slice %266 {offsets = [0, 256], sizes = [8, 128], strides = [1, 1]} : vector<8x512xf32> to vector<8x128xf32>
    %296 = math.tanh %295 : vector<8x128xf32>
    %297 = vector.extract_strided_slice %270 {offsets = [0, 256], sizes = [8, 128], strides = [1, 1]} : vector<8x512xf32> to vector<8x128xf32>
    %298 = math.tanh %297 : vector<8x128xf32>
    %299 = vector.extract_strided_slice %266 {offsets = [0, 384], sizes = [8, 128], strides = [1, 1]} : vector<8x512xf32> to vector<8x128xf32>
    %300 = arith.negf %299 : vector<8x128xf32>
    %301 = math.exp %300 : vector<8x128xf32>
    %cst_87 = arith.constant 1.000000e+00 : f32
    %302 = vector.broadcast %cst_87 : f32 to vector<8x128xf32>
    %303 = arith.addf %302, %301 : vector<8x128xf32>
    %304 = arith.divf %302, %303 : vector<8x128xf32>
    %305 = vector.extract_strided_slice %270 {offsets = [0, 384], sizes = [8, 128], strides = [1, 1]} : vector<8x512xf32> to vector<8x128xf32>
    %306 = arith.negf %305 : vector<8x128xf32>
    %307 = math.exp %306 : vector<8x128xf32>
    %cst_88 = arith.constant 1.000000e+00 : f32
    %308 = vector.broadcast %cst_88 : f32 to vector<8x128xf32>
    %309 = arith.addf %308, %307 : vector<8x128xf32>
    %310 = arith.divf %308, %309 : vector<8x128xf32>
    %311 = arith.mulf %288, %255 : vector<8x128xf32>
    %312 = arith.mulf %276, %296 : vector<8x128xf32>
    %313 = arith.addf %311, %312 : vector<8x128xf32>
    %314 = arith.mulf %294, %258 : vector<8x128xf32>
    %315 = arith.mulf %282, %298 : vector<8x128xf32>
    %316 = arith.addf %314, %315 : vector<8x128xf32>
    %317 = math.tanh %313 : vector<8x128xf32>
    %318 = arith.mulf %304, %317 : vector<8x128xf32>
    %319 = math.tanh %316 : vector<8x128xf32>
    %320 = arith.mulf %310, %319 : vector<8x128xf32>
    %c40_89 = arith.constant 40 : index
    %c0_90 = arith.constant 0 : index
    %321 = vector.load %arg11[%c40_89, %c0_90] : memref<64x512xf32, #tpu.memory_space<vmem>>, vector<8x512xf32>
    %322 = arith.truncf %318 : vector<8x128xf32> to vector<8x128xbf16>
    %cst_91 = arith.constant dense<0.000000e+00> : vector<8x512xf32>
    %323 = tpu.matmul %322, %24, %cst_91 {dimension_numbers = #tpu.dot_dimension_numbers<[1], [0], [0], [1], [0, 0, 1, 1], [], []>} : vector<8x128xbf16>, vector<128x512xbf16>, vector<8x512xf32> -> vector<8x512xf32>
    %324 = arith.addf %321, %323 : vector<8x512xf32>
    %c16_92 = arith.constant 16 : index
    %c0_93 = arith.constant 0 : index
    %325 = vector.load %arg12[%c16_92, %c0_93] : memref<64x512xf32, #tpu.memory_space<vmem>>, vector<8x512xf32>
    %326 = arith.truncf %320 : vector<8x128xf32> to vector<8x128xbf16>
    %cst_94 = arith.constant dense<0.000000e+00> : vector<8x512xf32>
    %327 = tpu.matmul %326, %26, %cst_94 {dimension_numbers = #tpu.dot_dimension_numbers<[1], [0], [0], [1], [0, 0, 1, 1], [], []>} : vector<8x128xbf16>, vector<128x512xbf16>, vector<8x512xf32> -> vector<8x512xf32>
    %328 = arith.addf %325, %327 : vector<8x512xf32>
    %329 = vector.extract_strided_slice %324 {offsets = [0, 0], sizes = [8, 128], strides = [1, 1]} : vector<8x512xf32> to vector<8x128xf32>
    %330 = arith.negf %329 : vector<8x128xf32>
    %331 = math.exp %330 : vector<8x128xf32>
    %cst_95 = arith.constant 1.000000e+00 : f32
    %332 = vector.broadcast %cst_95 : f32 to vector<8x128xf32>
    %333 = arith.addf %332, %331 : vector<8x128xf32>
    %334 = arith.divf %332, %333 : vector<8x128xf32>
    %335 = vector.extract_strided_slice %328 {offsets = [0, 0], sizes = [8, 128], strides = [1, 1]} : vector<8x512xf32> to vector<8x128xf32>
    %336 = arith.negf %335 : vector<8x128xf32>
    %337 = math.exp %336 : vector<8x128xf32>
    %cst_96 = arith.constant 1.000000e+00 : f32
    %338 = vector.broadcast %cst_96 : f32 to vector<8x128xf32>
    %339 = arith.addf %338, %337 : vector<8x128xf32>
    %340 = arith.divf %338, %339 : vector<8x128xf32>
    %341 = vector.extract_strided_slice %324 {offsets = [0, 128], sizes = [8, 128], strides = [1, 1]} : vector<8x512xf32> to vector<8x128xf32>
    %342 = arith.negf %341 : vector<8x128xf32>
    %343 = math.exp %342 : vector<8x128xf32>
    %cst_97 = arith.constant 1.000000e+00 : f32
    %344 = vector.broadcast %cst_97 : f32 to vector<8x128xf32>
    %345 = arith.addf %344, %343 : vector<8x128xf32>
    %346 = arith.divf %344, %345 : vector<8x128xf32>
    %347 = vector.extract_strided_slice %328 {offsets = [0, 128], sizes = [8, 128], strides = [1, 1]} : vector<8x512xf32> to vector<8x128xf32>
    %348 = arith.negf %347 : vector<8x128xf32>
    %349 = math.exp %348 : vector<8x128xf32>
    %cst_98 = arith.constant 1.000000e+00 : f32
    %350 = vector.broadcast %cst_98 : f32 to vector<8x128xf32>
    %351 = arith.addf %350, %349 : vector<8x128xf32>
    %352 = arith.divf %350, %351 : vector<8x128xf32>
    %353 = vector.extract_strided_slice %324 {offsets = [0, 256], sizes = [8, 128], strides = [1, 1]} : vector<8x512xf32> to vector<8x128xf32>
    %354 = math.tanh %353 : vector<8x128xf32>
    %355 = vector.extract_strided_slice %328 {offsets = [0, 256], sizes = [8, 128], strides = [1, 1]} : vector<8x512xf32> to vector<8x128xf32>
    %356 = math.tanh %355 : vector<8x128xf32>
    %357 = vector.extract_strided_slice %324 {offsets = [0, 384], sizes = [8, 128], strides = [1, 1]} : vector<8x512xf32> to vector<8x128xf32>
    %358 = arith.negf %357 : vector<8x128xf32>
    %359 = math.exp %358 : vector<8x128xf32>
    %cst_99 = arith.constant 1.000000e+00 : f32
    %360 = vector.broadcast %cst_99 : f32 to vector<8x128xf32>
    %361 = arith.addf %360, %359 : vector<8x128xf32>
    %362 = arith.divf %360, %361 : vector<8x128xf32>
    %363 = vector.extract_strided_slice %328 {offsets = [0, 384], sizes = [8, 128], strides = [1, 1]} : vector<8x512xf32> to vector<8x128xf32>
    %364 = arith.negf %363 : vector<8x128xf32>
    %365 = math.exp %364 : vector<8x128xf32>
    %cst_100 = arith.constant 1.000000e+00 : f32
    %366 = vector.broadcast %cst_100 : f32 to vector<8x128xf32>
    %367 = arith.addf %366, %365 : vector<8x128xf32>
    %368 = arith.divf %366, %367 : vector<8x128xf32>
    %369 = arith.mulf %346, %313 : vector<8x128xf32>
    %370 = arith.mulf %334, %354 : vector<8x128xf32>
    %371 = arith.addf %369, %370 : vector<8x128xf32>
    %372 = arith.mulf %352, %316 : vector<8x128xf32>
    %373 = arith.mulf %340, %356 : vector<8x128xf32>
    %374 = arith.addf %372, %373 : vector<8x128xf32>
    %375 = math.tanh %371 : vector<8x128xf32>
    %376 = arith.mulf %362, %375 : vector<8x128xf32>
    %377 = math.tanh %374 : vector<8x128xf32>
    %378 = arith.mulf %368, %377 : vector<8x128xf32>
    %c48_101 = arith.constant 48 : index
    %c0_102 = arith.constant 0 : index
    %379 = vector.load %arg11[%c48_101, %c0_102] : memref<64x512xf32, #tpu.memory_space<vmem>>, vector<8x512xf32>
    %380 = arith.truncf %376 : vector<8x128xf32> to vector<8x128xbf16>
    %cst_103 = arith.constant dense<0.000000e+00> : vector<8x512xf32>
    %381 = tpu.matmul %380, %24, %cst_103 {dimension_numbers = #tpu.dot_dimension_numbers<[1], [0], [0], [1], [0, 0, 1, 1], [], []>} : vector<8x128xbf16>, vector<128x512xbf16>, vector<8x512xf32> -> vector<8x512xf32>
    %382 = arith.addf %379, %381 : vector<8x512xf32>
    %c8_104 = arith.constant 8 : index
    %c0_105 = arith.constant 0 : index
    %383 = vector.load %arg12[%c8_104, %c0_105] : memref<64x512xf32, #tpu.memory_space<vmem>>, vector<8x512xf32>
    %384 = arith.truncf %378 : vector<8x128xf32> to vector<8x128xbf16>
    %cst_106 = arith.constant dense<0.000000e+00> : vector<8x512xf32>
    %385 = tpu.matmul %384, %26, %cst_106 {dimension_numbers = #tpu.dot_dimension_numbers<[1], [0], [0], [1], [0, 0, 1, 1], [], []>} : vector<8x128xbf16>, vector<128x512xbf16>, vector<8x512xf32> -> vector<8x512xf32>
    %386 = arith.addf %383, %385 : vector<8x512xf32>
    %387 = vector.extract_strided_slice %382 {offsets = [0, 0], sizes = [8, 128], strides = [1, 1]} : vector<8x512xf32> to vector<8x128xf32>
    %388 = arith.negf %387 : vector<8x128xf32>
    %389 = math.exp %388 : vector<8x128xf32>
    %cst_107 = arith.constant 1.000000e+00 : f32
    %390 = vector.broadcast %cst_107 : f32 to vector<8x128xf32>
    %391 = arith.addf %390, %389 : vector<8x128xf32>
    %392 = arith.divf %390, %391 : vector<8x128xf32>
    %393 = vector.extract_strided_slice %386 {offsets = [0, 0], sizes = [8, 128], strides = [1, 1]} : vector<8x512xf32> to vector<8x128xf32>
    %394 = arith.negf %393 : vector<8x128xf32>
    %395 = math.exp %394 : vector<8x128xf32>
    %cst_108 = arith.constant 1.000000e+00 : f32
    %396 = vector.broadcast %cst_108 : f32 to vector<8x128xf32>
    %397 = arith.addf %396, %395 : vector<8x128xf32>
    %398 = arith.divf %396, %397 : vector<8x128xf32>
    %399 = vector.extract_strided_slice %382 {offsets = [0, 128], sizes = [8, 128], strides = [1, 1]} : vector<8x512xf32> to vector<8x128xf32>
    %400 = arith.negf %399 : vector<8x128xf32>
    %401 = math.exp %400 : vector<8x128xf32>
    %cst_109 = arith.constant 1.000000e+00 : f32
    %402 = vector.broadcast %cst_109 : f32 to vector<8x128xf32>
    %403 = arith.addf %402, %401 : vector<8x128xf32>
    %404 = arith.divf %402, %403 : vector<8x128xf32>
    %405 = vector.extract_strided_slice %386 {offsets = [0, 128], sizes = [8, 128], strides = [1, 1]} : vector<8x512xf32> to vector<8x128xf32>
    %406 = arith.negf %405 : vector<8x128xf32>
    %407 = math.exp %406 : vector<8x128xf32>
    %cst_110 = arith.constant 1.000000e+00 : f32
    %408 = vector.broadcast %cst_110 : f32 to vector<8x128xf32>
    %409 = arith.addf %408, %407 : vector<8x128xf32>
    %410 = arith.divf %408, %409 : vector<8x128xf32>
    %411 = vector.extract_strided_slice %382 {offsets = [0, 256], sizes = [8, 128], strides = [1, 1]} : vector<8x512xf32> to vector<8x128xf32>
    %412 = math.tanh %411 : vector<8x128xf32>
    %413 = vector.extract_strided_slice %386 {offsets = [0, 256], sizes = [8, 128], strides = [1, 1]} : vector<8x512xf32> to vector<8x128xf32>
    %414 = math.tanh %413 : vector<8x128xf32>
    %415 = vector.extract_strided_slice %382 {offsets = [0, 384], sizes = [8, 128], strides = [1, 1]} : vector<8x512xf32> to vector<8x128xf32>
    %416 = arith.negf %415 : vector<8x128xf32>
    %417 = math.exp %416 : vector<8x128xf32>
    %cst_111 = arith.constant 1.000000e+00 : f32
    %418 = vector.broadcast %cst_111 : f32 to vector<8x128xf32>
    %419 = arith.addf %418, %417 : vector<8x128xf32>
    %420 = arith.divf %418, %419 : vector<8x128xf32>
    %421 = vector.extract_strided_slice %386 {offsets = [0, 384], sizes = [8, 128], strides = [1, 1]} : vector<8x512xf32> to vector<8x128xf32>
    %422 = arith.negf %421 : vector<8x128xf32>
    %423 = math.exp %422 : vector<8x128xf32>
    %cst_112 = arith.constant 1.000000e+00 : f32
    %424 = vector.broadcast %cst_112 : f32 to vector<8x128xf32>
    %425 = arith.addf %424, %423 : vector<8x128xf32>
    %426 = arith.divf %424, %425 : vector<8x128xf32>
    %427 = arith.mulf %404, %371 : vector<8x128xf32>
    %428 = arith.mulf %392, %412 : vector<8x128xf32>
    %429 = arith.addf %427, %428 : vector<8x128xf32>
    %430 = arith.mulf %410, %374 : vector<8x128xf32>
    %431 = arith.mulf %398, %414 : vector<8x128xf32>
    %432 = arith.addf %430, %431 : vector<8x128xf32>
    %433 = math.tanh %429 : vector<8x128xf32>
    %434 = arith.mulf %420, %433 : vector<8x128xf32>
    %435 = math.tanh %432 : vector<8x128xf32>
    %436 = arith.mulf %426, %435 : vector<8x128xf32>
    %c56_113 = arith.constant 56 : index
    %c0_114 = arith.constant 0 : index
    %437 = vector.load %arg11[%c56_113, %c0_114] : memref<64x512xf32, #tpu.memory_space<vmem>>, vector<8x512xf32>
    %438 = arith.truncf %434 : vector<8x128xf32> to vector<8x128xbf16>
    %cst_115 = arith.constant dense<0.000000e+00> : vector<8x512xf32>
    %439 = tpu.matmul %438, %24, %cst_115 {dimension_numbers = #tpu.dot_dimension_numbers<[1], [0], [0], [1], [0, 0, 1, 1], [], []>} : vector<8x128xbf16>, vector<128x512xbf16>, vector<8x512xf32> -> vector<8x512xf32>
    %440 = arith.addf %437, %439 : vector<8x512xf32>
    %c0_116 = arith.constant 0 : index
    %c0_117 = arith.constant 0 : index
    %441 = vector.load %arg12[%c0_116, %c0_117] : memref<64x512xf32, #tpu.memory_space<vmem>>, vector<8x512xf32>
    %442 = arith.truncf %436 : vector<8x128xf32> to vector<8x128xbf16>
    %cst_118 = arith.constant dense<0.000000e+00> : vector<8x512xf32>
    %443 = tpu.matmul %442, %26, %cst_118 {dimension_numbers = #tpu.dot_dimension_numbers<[1], [0], [0], [1], [0, 0, 1, 1], [], []>} : vector<8x128xbf16>, vector<128x512xbf16>, vector<8x512xf32> -> vector<8x512xf32>
    %444 = arith.addf %441, %443 : vector<8x512xf32>
    %445 = vector.extract_strided_slice %440 {offsets = [0, 0], sizes = [8, 128], strides = [1, 1]} : vector<8x512xf32> to vector<8x128xf32>
    %446 = arith.negf %445 : vector<8x128xf32>
    %447 = math.exp %446 : vector<8x128xf32>
    %cst_119 = arith.constant 1.000000e+00 : f32
    %448 = vector.broadcast %cst_119 : f32 to vector<8x128xf32>
    %449 = arith.addf %448, %447 : vector<8x128xf32>
    %450 = arith.divf %448, %449 : vector<8x128xf32>
    %451 = vector.extract_strided_slice %444 {offsets = [0, 0], sizes = [8, 128], strides = [1, 1]} : vector<8x512xf32> to vector<8x128xf32>
    %452 = arith.negf %451 : vector<8x128xf32>
    %453 = math.exp %452 : vector<8x128xf32>
    %cst_120 = arith.constant 1.000000e+00 : f32
    %454 = vector.broadcast %cst_120 : f32 to vector<8x128xf32>
    %455 = arith.addf %454, %453 : vector<8x128xf32>
    %456 = arith.divf %454, %455 : vector<8x128xf32>
    %457 = vector.extract_strided_slice %440 {offsets = [0, 128], sizes = [8, 128], strides = [1, 1]} : vector<8x512xf32> to vector<8x128xf32>
    %458 = arith.negf %457 : vector<8x128xf32>
    %459 = math.exp %458 : vector<8x128xf32>
    %cst_121 = arith.constant 1.000000e+00 : f32
    %460 = vector.broadcast %cst_121 : f32 to vector<8x128xf32>
    %461 = arith.addf %460, %459 : vector<8x128xf32>
    %462 = arith.divf %460, %461 : vector<8x128xf32>
    %463 = vector.extract_strided_slice %444 {offsets = [0, 128], sizes = [8, 128], strides = [1, 1]} : vector<8x512xf32> to vector<8x128xf32>
    %464 = arith.negf %463 : vector<8x128xf32>
    %465 = math.exp %464 : vector<8x128xf32>
    %cst_122 = arith.constant 1.000000e+00 : f32
    %466 = vector.broadcast %cst_122 : f32 to vector<8x128xf32>
    %467 = arith.addf %466, %465 : vector<8x128xf32>
    %468 = arith.divf %466, %467 : vector<8x128xf32>
    %469 = vector.extract_strided_slice %440 {offsets = [0, 256], sizes = [8, 128], strides = [1, 1]} : vector<8x512xf32> to vector<8x128xf32>
    %470 = math.tanh %469 : vector<8x128xf32>
    %471 = vector.extract_strided_slice %444 {offsets = [0, 256], sizes = [8, 128], strides = [1, 1]} : vector<8x512xf32> to vector<8x128xf32>
    %472 = math.tanh %471 : vector<8x128xf32>
    %473 = vector.extract_strided_slice %440 {offsets = [0, 384], sizes = [8, 128], strides = [1, 1]} : vector<8x512xf32> to vector<8x128xf32>
    %474 = arith.negf %473 : vector<8x128xf32>
    %475 = math.exp %474 : vector<8x128xf32>
    %cst_123 = arith.constant 1.000000e+00 : f32
    %476 = vector.broadcast %cst_123 : f32 to vector<8x128xf32>
    %477 = arith.addf %476, %475 : vector<8x128xf32>
    %478 = arith.divf %476, %477 : vector<8x128xf32>
    %479 = vector.extract_strided_slice %444 {offsets = [0, 384], sizes = [8, 128], strides = [1, 1]} : vector<8x512xf32> to vector<8x128xf32>
    %480 = arith.negf %479 : vector<8x128xf32>
    %481 = math.exp %480 : vector<8x128xf32>
    %cst_124 = arith.constant 1.000000e+00 : f32
    %482 = vector.broadcast %cst_124 : f32 to vector<8x128xf32>
    %483 = arith.addf %482, %481 : vector<8x128xf32>
    %484 = arith.divf %482, %483 : vector<8x128xf32>
    %485 = arith.mulf %462, %429 : vector<8x128xf32>
    %486 = arith.mulf %450, %470 : vector<8x128xf32>
    %487 = arith.addf %485, %486 : vector<8x128xf32>
    %488 = arith.mulf %468, %432 : vector<8x128xf32>
    %489 = arith.mulf %456, %472 : vector<8x128xf32>
    %490 = arith.addf %488, %489 : vector<8x128xf32>
    %491 = math.tanh %487 : vector<8x128xf32>
    %492 = arith.mulf %478, %491 : vector<8x128xf32>
    %493 = math.tanh %490 : vector<8x128xf32>
    %494 = arith.mulf %484, %493 : vector<8x128xf32>
    %c0_125 = arith.constant 0 : index
    %c0_126 = arith.constant 0 : index
    %495 = vector.load %arg7[%c0_125, %c0_126] : memref<8x128xf32, #tpu.memory_space<vmem>>, vector<8x128xf32>
    tpu.vector_store %arg7[%c0_125, %c0_126], %492 {strides = array<i32>} : memref<8x128xf32, #tpu.memory_space<vmem>>, vector<8x128xf32>,
    %c0_127 = arith.constant 0 : index
    %c0_128 = arith.constant 0 : index
    %496 = vector.load %arg8[%c0_127, %c0_128] : memref<8x128xf32, #tpu.memory_space<vmem>>, vector<8x128xf32>
    tpu.vector_store %arg8[%c0_127, %c0_128], %487 {strides = array<i32>} : memref<8x128xf32, #tpu.memory_space<vmem>>, vector<8x128xf32>,
    %c0_129 = arith.constant 0 : index
    %c0_130 = arith.constant 0 : index
    %497 = vector.load %arg9[%c0_129, %c0_130] : memref<8x128xf32, #tpu.memory_space<vmem>>, vector<8x128xf32>
    tpu.vector_store %arg9[%c0_129, %c0_130], %494 {strides = array<i32>} : memref<8x128xf32, #tpu.memory_space<vmem>>, vector<8x128xf32>,
    %c0_131 = arith.constant 0 : index
    %c0_132 = arith.constant 0 : index
    %498 = vector.load %arg10[%c0_131, %c0_132] : memref<8x128xf32, #tpu.memory_space<vmem>>, vector<8x128xf32>
    tpu.vector_store %arg10[%c0_131, %c0_132], %490 {strides = array<i32>} : memref<8x128xf32, #tpu.memory_space<vmem>>, vector<8x128xf32>,
    %c0_i32_133 = arith.constant 0 : i32
    %499 = arith.cmpi eq, %arg0, %c0_i32_133 : i32
    %500 = arith.extui %499 : i1 to i32
    %c0_i32_134 = arith.constant 0 : i32
    %501 = arith.cmpi ne, %500, %c0_i32_134 : i32
    scf.if %501 {
      %c0_135 = arith.constant 0 : index
      %c0_136 = arith.constant 0 : index
      %c0_137 = arith.constant 0 : index
      %502 = vector.load %arg6[%c0_135, %c0_136, %c0_137] : memref<2x8x128xf32, #tpu.memory_space<vmem>>, vector<1x8x128xf32>
      %503 = vector.shape_cast %502 : vector<1x8x128xf32> to vector<8x128xf32>
      %504 = vector.shape_cast %492 : vector<8x128xf32> to vector<1x8x128xf32>
      tpu.vector_store %arg6[%c0_135, %c0_136, %c0_137], %504 {strides = array<i32>} : memref<2x8x128xf32, #tpu.memory_space<vmem>>, vector<1x8x128xf32>,
      %c1_138 = arith.constant 1 : index
      %c0_139 = arith.constant 0 : index
      %c0_140 = arith.constant 0 : index
      %505 = vector.load %arg6[%c1_138, %c0_139, %c0_140] : memref<2x8x128xf32, #tpu.memory_space<vmem>>, vector<1x8x128xf32>
      %506 = vector.shape_cast %505 : vector<1x8x128xf32> to vector<8x128xf32>
      %507 = vector.shape_cast %494 : vector<8x128xf32> to vector<1x8x128xf32>
      tpu.vector_store %arg6[%c1_138, %c0_139, %c0_140], %507 {strides = array<i32>} : memref<2x8x128xf32, #tpu.memory_space<vmem>>, vector<1x8x128xf32>,
    } else {
    }
    return
  }
  func.func @transform_0(%arg0: i32) -> (i32, i32, i32) {
    %c0_i32 = arith.constant 0 : i32
    %c0_i32_0 = arith.constant 0 : i32
    %c0_i32_1 = arith.constant 0 : i32
    return %arg0, %c0_i32, %c0_i32_0 : i32, i32, i32
  }
  func.func @transform_1(%arg0: i32) -> (i32, i32, i32) {
    %c0_i32 = arith.constant 0 : i32
    %0 = arith.subi %c0_i32, %arg0 : i32
    %c0_i32_0 = arith.constant 0 : i32
    %c0_i32_1 = arith.constant 0 : i32
    %c0_i32_2 = arith.constant 0 : i32
    return %0, %c0_i32_0, %c0_i32_1 : i32, i32, i32
  }
  func.func @transform_2(%arg0: i32) -> (i32, i32, i32) {
    %c0_i32 = arith.constant 0 : i32
    %c0_i32_0 = arith.constant 0 : i32
    %c0_i32_1 = arith.constant 0 : i32
    %c0_i32_2 = arith.constant 0 : i32
    return %c0_i32, %c0_i32_0, %c0_i32_1 : i32, i32, i32
  }
  func.func @transform_3(%arg0: i32) -> (i32, i32, i32) {
    %c0_i32 = arith.constant 0 : i32
    %c0_i32_0 = arith.constant 0 : i32
    %c0_i32_1 = arith.constant 0 : i32
    %c0_i32_2 = arith.constant 0 : i32
    return %c0_i32, %c0_i32_0, %c0_i32_1 : i32, i32, i32
  }
  func.func @transform_4(%arg0: i32) -> (i32, i32, i32) {
    %c0_i32 = arith.constant 0 : i32
    %c0_i32_0 = arith.constant 0 : i32
    %c0_i32_1 = arith.constant 0 : i32
    %c0_i32_2 = arith.constant 0 : i32
    return %c0_i32, %c0_i32_0, %c0_i32_1 : i32, i32, i32
  }
  func.func @transform_5(%arg0: i32) -> (i32, i32, i32) {
    %c0_i32 = arith.constant 0 : i32
    %c0_i32_0 = arith.constant 0 : i32
    %c0_i32_1 = arith.constant 0 : i32
    %c0_i32_2 = arith.constant 0 : i32
    return %c0_i32, %c0_i32_0, %c0_i32_1 : i32, i32, i32
  }
}

</mosaic_0001>

<bundles_post_ra>
// kernel: bilstm_layer.1
= control target key start
LH: loop header
LB: loop body
LE: loop exit
PB: predicated region body
PF: predicated region fallthrough
CT: control target
= control target key end

     0   :  { %v5303_v1 = vmov 0   ;;  %vm123_vm0 = vcmask 130048   ;;  %v5305_v55 = vmov 0.0|0.0   ;;  %s5297_s2 = inlined_call_operand.vmem [shape: bf16[2,16,512], index: 2, kind: input, shape index: {}]   ;;  %s5298_s0 = inlined_call_operand.vmem [shape: bf16[1,64,16], index: 0, kind: input, shape index: {}, may-alias: {0,1}]   ;;  %s5299_s3 = inlined_call_operand.vmem [shape: bf16[2,128,512], index: 3, kind: input, shape index: {}]   ;;  %s5300_s1 = inlined_call_operand.vmem [shape: bf16[1,64,16], index: 1, kind: input, shape index: {}, may-alias: {0,1}]   ;;  %s5301_s4 = inlined_call_operand.vmem [shape: f32[2,1,512], index: 4, kind: input, shape index: {}]   ;;  %s5302_s5 = inlined_call_operand.vmem [shape: f32[2,8,128], index: 5, kind: output, shape index: {}]  }
   0x1   :  { %v3013_v0 = vld [vmem:[%s5297_s2 + $0x4] ss:$16 sps:$4 sm:$0xff]   ;;  %168 = vmatprep.mubr.bf16.mxu0 %v5303_v1  ;;  %241 = vmatprep.mubr.bf16.mxu1 %v5303_v1  ;;  %v3015_v2 = vld [vmem:[%s5297_s2 + $0xc] ss:$16 sps:$4 sm:$0xff]   ;;  %v3017_v3 = vld [vmem:[%s5297_s2] ss:$16 sps:$4 sm:$0xff]  }
   0x2   :  { %136 = vmatprep.subr.bf16.mxu0 %v3013_v0  ;;  %v3018_v4 = vld [vmem:[%s5297_s2 + $0x8] ss:$16 sps:$4 sm:$0xff]   ;;  %209 = vmatprep.subr.bf16.mxu1 %v3015_v2  ;;  %v3019_v5 = vld [vmem:[%s5298_s0] sm:$0xff]   ;;  %v3026_v9 = vld [vmem:[%s5297_s2 + $0x2c] ss:$16 sps:$4 sm:$0xff]  }
   0x3   :  { %137 = vmatpush1.bf16.msra.mxu0 %v3017_v3  ;;  %210 = vmatpush1.bf16.msra.mxu1 %v3018_v4  ;;  %v3020_v6 = vld [vmem:[%s5297_s2 + $0x20] ss:$16 sps:$4 sm:$0xff]   ;;  %v3022_v7 = vld [vmem:[%s5297_s2 + $0x24] ss:$16 sps:$4 sm:$0xff]   ;;  %v3024_v8 = vld [vmem:[%s5297_s2 + $0x28] ss:$16 sps:$4 sm:$0xff]  }
   0x4   :  { %402 = vmatprep.subr.bf16.mxu0 %v3022_v7  ;;  %v3023_v10 = vld [vmem:[%s5298_s0 + $0x8] sm:$0xff]   ;;  %475 = vmatprep.subr.bf16.mxu1 %v3026_v9  ;;  %v3584_v11 = vld [vmem:[%s5299_s3 + $0x4] ss:$16 sps:$4 sm:$0xff]   ;;  %v3028_v14 = vld [vmem:[%s5298_s0 + $0x18] sm:$0xff]  }
   0x5   :  { %v3589_v12 = vld [vmem:[%s5299_s3 + $0xc] ss:$16 sps:$4 sm:$0xff]   ;;  %v3027_v13 = vld [vmem:[%s5298_s0 + $0x10] sm:$0xff]   ;;  %v3033_v15 = vld [vmem:[%s5300_s1] sm:$0xff]  }
   0x6   :  { %2837 = vmatmul.mubr.msk.bf16.vlgmr.msra.gmra.mrb[0].mxu0 %vm123_vm0, %v3019_v5  ;;  %2841 = vmatmul.mubr.msk.bf16.vlgmr.msra.gmra.mrb[0].mxu1 %vm123_vm0, %v3019_v5  ;;  %v3617_v16 = vld [vmem:[%s5299_s3] ss:$16 sps:$4 sm:$0xff]   ;;  %v3622_v17 = vld [vmem:[%s5299_s3 + $0x8] ss:$16 sps:$4 sm:$0xff]   ;;  %v3627_v18 = vld [vmem:[%s5299_s3 + $0x24] ss:$16 sps:$4 sm:$0xff]  }
   0x7   :  { %403 = vmatpush1.bf16.msra.mxu0 %v3020_v6  ;;  %178 = vmatprep.mubr.bf16.mxu0 %v5303_v1  ;;  %v3632_v19 = vld [vmem:[%s5299_s3 + $0x2c] ss:$16 sps:$4 sm:$0xff]   ;;  %v3639_v20 = vld [vmem:[%s5299_s3 + $0x20] ss:$16 sps:$4 sm:$0xff]   ;;  %v3644_v21 = vld [vmem:[%s5299_s3 + $0x28] ss:$16 sps:$4 sm:$0xff]  }
   0x8   :  { %251 = vmatprep.mubr.bf16.mxu1 %v5303_v1  ;;  %476 = vmatpush1.bf16.msra.mxu1 %v3024_v8  ;;  %5396 = vst [vmem:[#allocation8_spill] sm:$0xff] %v3639_v20  ;;  %5397 = vst [vmem:[#allocation9_spill] sm:$0xff] %v3644_v21  ;;  %v3651_v22 = vld [vmem:[%s5299_s3 + $0x44] ss:$16 sps:$4 sm:$0xff]   ;;  %v3658_v23 = vld [vmem:[%s5299_s3 + $0x4c] ss:$16 sps:$4 sm:$0xff]  }
   0x9   :  { %814 = vmatprep.subr.bf16.mxu0 %v3584_v11  ;;  %855 = vmatprep.subr.bf16.mxu1 %v3589_v12  ;;  %5398 = vst [vmem:[#allocation10_spill] sm:$0xff] %v3651_v22  ;;  %5399 = vst [vmem:[#allocation11_spill] sm:$0xff] %v3658_v23  ;;  %v3046_v24 = vld [vmem:[%s5300_s1 + $0x8] sm:$0xff]   ;;  %v3668_v25 = vld [vmem:[%s5299_s3 + $0x40] ss:$16 sps:$4 sm:$0xff]  }
   0xa   :  { %5400 = vst [vmem:[#allocation12_spill] sm:$0xff] %v3668_v25  ;;  %v3675_v26 = vld [vmem:[%s5299_s3 + $0x48] ss:$16 sps:$4 sm:$0xff]   ;;  %v3680_v27 = vld [vmem:[%s5299_s3 + $0x64] ss:$16 sps:$4 sm:$0xff]  }
   0xb   :  { %5401 = vst [vmem:[#allocation13_spill] sm:$0xff] %v3675_v26  ;;  %5402 = vst [vmem:[#allocation14_spill] sm:$0xff] %v3680_v27  ;;  %v3687_v28 = vld [vmem:[%s5299_s3 + $0x6c] ss:$16 sps:$4 sm:$0xff]   ;;  %v3694_v29 = vld [vmem:[%s5299_s3 + $0x60] ss:$16 sps:$4 sm:$0xff]  }
   0xc   :  { %5403 = vst [vmem:[#allocation15_spill] sm:$0xff] %v3687_v28  ;;  %5404 = vst [vmem:[#allocation16_spill] sm:$0xff] %v3694_v29  ;;  %v3699_v30 = vld [vmem:[%s5299_s3 + $0x68] ss:$16 sps:$4 sm:$0xff]   ;;  %v3706_v31 = vld [vmem:[%s5299_s3 + $0x84] ss:$16 sps:$4 sm:$0xff]  }
   0xd   :  { %5405 = vst [vmem:[#allocation17_spill] sm:$0xff] %v3699_v30  ;;  %5406 = vst [vmem:[#allocation18_spill] sm:$0xff] %v3706_v31  ;;  %v3713_v32 = vld [vmem:[%s5299_s3 + $0x8c] ss:$16 sps:$4 sm:$0xff]   ;;  %v3059_v33 = vld [vmem:[%s5300_s1 + $0x10] sm:$0xff]  }
   0xe   :  { %2838 = vmatmul.mubr.msk.bf16.gmra.mrb[4].mxu0 %vm123_vm0, %v3023_v10  ;;  %2842 = vmatmul.mubr.msk.bf16.gmra.mrb[4].mxu1 %vm123_vm0, %v3023_v10  ;;  %5407 = vst [vmem:[#allocation19_spill] sm:$0xff] %v3713_v32  ;;  %v3723_v34 = vld [vmem:[%s5299_s3 + $0x80] ss:$16 sps:$4 sm:$0xff]   ;;  %v3730_v35 = vld [vmem:[%s5299_s3 + $0x88] ss:$16 sps:$4 sm:$0xff]  }
   0xf   :  { %188 = vmatprep.mubr.bf16.mxu0 %v5303_v1  ;;  %261 = vmatprep.mubr.bf16.mxu1 %v5303_v1  ;;  %5408 = vst [vmem:[#allocation20_spill] sm:$0xff] %v3723_v34  ;;  %5409 = vst [vmem:[#allocation21_spill] sm:$0xff] %v3730_v35  ;;  %v3735_v36 = vld [vmem:[%s5299_s3 + $0xa4] ss:$16 sps:$4 sm:$0xff]   ;;  %v3742_v37 = vld [vmem:[%s5299_s3 + $0xac] ss:$16 sps:$4 sm:$0xff]  }
  0x10   :  { %5410 = vst [vmem:[#allocation22_spill] sm:$0xff] %v3735_v36  ;;  %5411 = vst [vmem:[#allocation23_spill] sm:$0xff] %v3742_v37  ;;  %v3751_v38 = vld [vmem:[%s5299_s3 + $0xa0] ss:$16 sps:$4 sm:$0xff]   ;;  %v3756_v39 = vld [vmem:[%s5299_s3 + $0xa8] ss:$16 sps:$4 sm:$0xff]  }
  0x11   :  { %5412 = vst [vmem:[#allocation24_spill] sm:$0xff] %v3751_v38  ;;  %5413 = vst [vmem:[#allocation25_spill] sm:$0xff] %v3756_v39  ;;  %v3763_v40 = vld [vmem:[%s5299_s3 + $0xc4] ss:$16 sps:$4 sm:$0xff]   ;;  %v3768_v41 = vld [vmem:[%s5299_s3 + $0xcc] ss:$16 sps:$4 sm:$0xff]  }
  0x12   :  { %5414 = vst [vmem:[#allocation26_spill] sm:$0xff] %v3763_v40  ;;  %5415 = vst [vmem:[#allocation27_spill] sm:$0xff] %v3768_v41  ;;  %v3072_v42 = vld [vmem:[%s5300_s1 + $0x18] sm:$0xff]   ;;  %v3780_v43 = vld [vmem:[%s5299_s3 + $0xc0] ss:$16 sps:$4 sm:$0xff]  }
  0x13   :  { %5416 = vst [vmem:[#allocation28_spill] sm:$0xff] %v3780_v43  ;;  %v3785_v44 = vld [vmem:[%s5299_s3 + $0xc8] ss:$16 sps:$4 sm:$0xff]   ;;  %v3792_v45 = vld [vmem:[%s5299_s3 + $0xe4] ss:$16 sps:$4 sm:$0xff]  }
  0x14   :  { %5417 = vst [vmem:[#allocation29_spill] sm:$0xff] %v3785_v44  ;;  %5418 = vst [vmem:[#allocation30_spill] sm:$0xff] %v3792_v45  ;;  %v3797_v46 = vld [vmem:[%s5299_s3 + $0xec] ss:$16 sps:$4 sm:$0xff]   ;;  %v3806_v47 = vld [vmem:[%s5299_s3 + $0xe0] ss:$16 sps:$4 sm:$0xff]  }
  0x15   :  { %5419 = vst [vmem:[#allocation31_spill] sm:$0xff] %v3797_v46  ;;  %5420 = vst [vmem:[#allocation32_spill] sm:$0xff] %v3806_v47  ;;  %v3811_v48 = vld [vmem:[%s5299_s3 + $0xe8] ss:$16 sps:$4 sm:$0xff]   ;;  %v3818_v49 = vld [vmem:[%s5299_s3 + $0x104] ss:$16 sps:$4 sm:$0xff]  }
  0x16   :  { %2839 = vmatmul.mubr.msk.bf16.gmra.mrb[8].mxu0 %vm123_vm0, %v3027_v13  ;;  %2843 = vmatmul.mubr.msk.bf16.gmra.mrb[8].mxu1 %vm123_vm0, %v3027_v13  ;;  %5421 = vst [vmem:[#allocation33_spill] sm:$0xff] %v3811_v48  ;;  %5422 = vst [vmem:[#allocation34_spill] sm:$0xff] %v3818_v49  ;;  %v3823_v50 = vld [vmem:[%s5299_s3 + $0x10c] ss:$16 sps:$4 sm:$0xff]   ;;  %v3832_v51 = vld [vmem:[%s5299_s3 + $0x100] ss:$16 sps:$4 sm:$0xff]  }
  0x17   :  { %198 = vmatprep.mubr.bf16.mxu0 %v5303_v1  ;;  %271 = vmatprep.mubr.bf16.mxu1 %v5303_v1  ;;  %5423 = vst [vmem:[#allocation35_spill] sm:$0xff] %v3823_v50  ;;  %v3837_v52 = vld [vmem:[%s5299_s3 + $0x108] ss:$16 sps:$4 sm:$0xff]   ;;  %v3844_v53 = vld [vmem:[%s5299_s3 + $0x124] ss:$16 sps:$4 sm:$0xff]  }
  0x18   :  { %v3849_v54 = vld [vmem:[%s5299_s3 + $0x12c] ss:$16 sps:$4 sm:$0xff]   ;;  %v3858_v56 = vld [vmem:[%s5299_s3 + $0x120] ss:$16 sps:$4 sm:$0xff]   ;;  %v3863_v57 = vld [vmem:[%s5299_s3 + $0x128] ss:$16 sps:$4 sm:$0xff]  }
  0x19   :  { %v3870_v58 = vld [vmem:[%s5299_s3 + $0x144] ss:$16 sps:$4 sm:$0xff]   ;;  %v3875_v59 = vld [vmem:[%s5299_s3 + $0x14c] ss:$16 sps:$4 sm:$0xff]   ;;  %v3884_v60 = vld [vmem:[%s5299_s3 + $0x140] ss:$16 sps:$4 sm:$0xff]  }
  0x1a   :  { %v3889_v61 = vld [vmem:[%s5299_s3 + $0x148] ss:$16 sps:$4 sm:$0xff]   ;;  %v3896_v62 = vld [vmem:[%s5299_s3 + $0x164] ss:$16 sps:$4 sm:$0xff]   ;;  %v3901_v63 = vld [vmem:[%s5299_s3 + $0x16c] ss:$16 sps:$4 sm:$0xff]  }
  0x1b   :  { %v3908_v0 = vld [vmem:[%s5299_s3 + $0x160] ss:$16 sps:$4 sm:$0xff]   ;;  %v3913_v2 = vld [vmem:[%s5299_s3 + $0x168] ss:$16 sps:$4 sm:$0xff]   ;;  %v3920_v3 = vld [vmem:[%s5299_s3 + $0x184] ss:$16 sps:$4 sm:$0xff]  }
  0x1c   :  { %v3925_v4 = vld [vmem:[%s5299_s3 + $0x18c] ss:$16 sps:$4 sm:$0xff]   ;;  %v3932_v5 = vld [vmem:[%s5299_s3 + $0x180] ss:$16 sps:$4 sm:$0xff]   ;;  %v3937_v6 = vld [vmem:[%s5299_s3 + $0x188] ss:$16 sps:$4 sm:$0xff]  }
  0x1d   :  { %v3944_v7 = vld [vmem:[%s5299_s3 + $0x1a4] ss:$16 sps:$4 sm:$0xff]   ;;  %v3949_v8 = vld [vmem:[%s5299_s3 + $0x1ac] ss:$16 sps:$4 sm:$0xff]   ;;  %v3956_v9 = vld [vmem:[%s5299_s3 + $0x1a0] ss:$16 sps:$4 sm:$0xff]  }
  0x1e   :  { %2840 = vmatmul.mubr.msk.bf16.gmra.mrb[12].mxu0 %vm123_vm0, %v3028_v14  ;;  %2844 = vmatmul.mubr.msk.bf16.gmra.mrb[12].mxu1 %vm123_vm0, %v3028_v14  ;;  %v3961_v10 = vld [vmem:[%s5299_s3 + $0x1a8] ss:$16 sps:$4 sm:$0xff]   ;;  %v3968_v13 = vld [vmem:[%s5299_s3 + $0x1c4] ss:$16 sps:$4 sm:$0xff]   ;;  %v3973_v14 = vld [vmem:[%s5299_s3 + $0x1cc] ss:$16 sps:$4 sm:$0xff]  }
  0x1f   :  { %434 = vmatprep.mubr.bf16.mxu0 %v5303_v1  ;;  %507 = vmatprep.mubr.bf16.mxu1 %v5303_v1 }
  0x26   :  { %2858 = vmatmul.mubr.msk.bf16.vlgmr.msra.gmra.mrb[16].mxu0 %vm123_vm0, %v3033_v15  ;;  %2862 = vmatmul.mubr.msk.bf16.vlgmr.msra.gmra.mrb[16].mxu1 %vm123_vm0, %v3033_v15  ;;  %v3980_v15 = vld [vmem:[%s5299_s3 + $0x1c0] ss:$16 sps:$4 sm:$0xff]  }
  0x27   :  { %815 = vmatpush1.bf16.msra.mxu0 %v3617_v16  ;;  %856 = vmatpush1.bf16.msra.mxu1 %v3622_v17 }
  0x28   :  { %816 = vmatprep.subr.bf16.mxu0 %v3627_v18  ;;  %857 = vmatprep.subr.bf16.mxu1 %v3632_v19 }
  0x29   :  { %444 = vmatprep.mubr.bf16.mxu0 %v5303_v1  ;;  %517 = vmatprep.mubr.bf16.mxu1 %v5303_v1 }
  0x2b   :  { %817 = vmatpush1.bf16.msra.mxu0 %v3639_v20  ;;  %858 = vmatpush1.bf16.msra.mxu1 %v3644_v21 }
  0x2c   :  { %818 = vmatprep.subr.bf16.mxu0 %v3651_v22  ;;  %859 = vmatprep.subr.bf16.mxu1 %v3658_v23 }
  0x2e   :  { %2859 = vmatmul.mubr.msk.bf16.gmra.mrb[20].mxu0 %vm123_vm0, %v3046_v24  ;;  %2863 = vmatmul.mubr.msk.bf16.gmra.mrb[20].mxu1 %vm123_vm0, %v3046_v24  ;;  %v3985_v24 = vld [vmem:[%s5299_s3 + $0x1c8] ss:$16 sps:$4 sm:$0xff]  }
  0x2f   :  { %819 = vmatpush1.bf16.msra.mxu0 %v3668_v25  ;;  %860 = vmatpush1.bf16.msra.mxu1 %v3675_v26  ;;  %5424 = vst [vmem:[#allocation36_spill] sm:$0xff] %v3985_v24 }
  0x30   :  { %820 = vmatprep.subr.bf16.mxu0 %v3680_v27  ;;  %861 = vmatprep.subr.bf16.mxu1 %v3687_v28 }
  0x31   :  { %454 = vmatprep.mubr.bf16.mxu0 %v5303_v1  ;;  %527 = vmatprep.mubr.bf16.mxu1 %v5303_v1 }
  0x33   :  { %821 = vmatpush1.bf16.msra.mxu0 %v3694_v29  ;;  %862 = vmatpush1.bf16.msra.mxu1 %v3699_v30 }
  0x34   :  { %822 = vmatprep.subr.bf16.mxu0 %v3706_v31  ;;  %863 = vmatprep.subr.bf16.mxu1 %v3713_v32 }
  0x36   :  { %2860 = vmatmul.mubr.msk.bf16.gmra.mrb[24].mxu0 %vm123_vm0, %v3059_v33  ;;  %2864 = vmatmul.mubr.msk.bf16.gmra.mrb[24].mxu1 %vm123_vm0, %v3059_v33  ;;  %v3992_v33 = vld [vmem:[%s5299_s3 + $0x1e4] ss:$16 sps:$4 sm:$0xff]  }
  0x37   :  { %823 = vmatpush1.bf16.msra.mxu0 %v3723_v34  ;;  %864 = vmatpush1.bf16.msra.mxu1 %v3730_v35 }
  0x38   :  { %824 = vmatprep.subr.bf16.mxu0 %v3735_v36  ;;  %865 = vmatprep.subr.bf16.mxu1 %v3742_v37 }
  0x39   :  { %464 = vmatprep.mubr.bf16.mxu0 %v5303_v1  ;;  %537 = vmatprep.mubr.bf16.mxu1 %v5303_v1 }
  0x3b   :  { %825 = vmatpush1.bf16.msra.mxu0 %v3751_v38  ;;  %866 = vmatpush1.bf16.msra.mxu1 %v3756_v39 }
  0x3c   :  { %826 = vmatprep.subr.bf16.mxu0 %v3763_v40  ;;  %867 = vmatprep.subr.bf16.mxu1 %v3768_v41 }
  0x3e   :  { %2861 = vmatmul.mubr.msk.bf16.gmra.mrb[28].mxu0 %vm123_vm0, %v3072_v42  ;;  %2865 = vmatmul.mubr.msk.bf16.gmra.mrb[28].mxu1 %vm123_vm0, %v3072_v42  ;;  %v3997_v42 = vld [vmem:[%s5299_s3 + $0x1ec] ss:$16 sps:$4 sm:$0xff]  }
  0x3f   :  { %827 = vmatpush1.bf16.msra.mxu0 %v3780_v43  ;;  %868 = vmatpush1.bf16.msra.mxu1 %v3785_v44  ;;  %5425 = vst [vmem:[#allocation37_spill] sm:$0xff] %v3997_v42 }
  0x40   :  { %828 = vmatprep.subr.bf16.mxu0 %v3792_v45  ;;  %869 = vmatprep.subr.bf16.mxu1 %v3797_v46 }
  0x41   :  { %846 = vmatprep.mubr.bf16.mxu0 %v5303_v1  ;;  %887 = vmatprep.mubr.bf16.mxu1 %v5303_v1 }
  0x43   :  { %829 = vmatpush1.bf16.msra.mxu0 %v3806_v47  ;;  %870 = vmatpush1.bf16.msra.mxu1 %v3811_v48 }
  0x44   :  { %1065 = vmatprep.subr.bf16.mxu0 %v3818_v49  ;;  %1106 = vmatprep.subr.bf16.mxu1 %v3823_v50 }
  0x46   :  { %847 = vmatmul.mubr.bf16.vlgmr.msra.gmra.mrb[32].mxu0 %v5305_v55  ;;  %888 = vmatmul.mubr.bf16.vlgmr.msra.gmra.mrb[32].mxu1 %v5305_v55  ;;  %v4009_v55 = vld [vmem:[%s5299_s3 + $0x1e8] ss:$16 sps:$4 sm:$0xff]  }
  0x47   :  { %1066 = vmatpush1.bf16.msra.mxu0 %v3832_v51  ;;  %1107 = vmatpush1.bf16.msra.mxu1 %v3837_v52 }
  0x48   :  { %1067 = vmatprep.subr.bf16.mxu0 %v3844_v53  ;;  %1108 = vmatprep.subr.bf16.mxu1 %v3849_v54 }
  0x49   :  { %1097 = vmatprep.mubr.bf16.mxu0 %v5303_v1  ;;  %1138 = vmatprep.mubr.bf16.mxu1 %v5303_v1  ;;  %v4004_v1 = vld [vmem:[%s5299_s3 + $0x1e0] ss:$16 sps:$4 sm:$0xff]  }
  0x4b   :  { %1068 = vmatpush1.bf16.msra.mxu0 %v3858_v56  ;;  %1109 = vmatpush1.bf16.msra.mxu1 %v3863_v57 }
  0x4c   :  { %1069 = vmatprep.subr.bf16.mxu0 %v3870_v58  ;;  %1110 = vmatprep.subr.bf16.mxu1 %v3875_v59 }
  0x4f   :  { %1070 = vmatpush1.bf16.msra.mxu0 %v3884_v60  ;;  %1111 = vmatpush1.bf16.msra.mxu1 %v3889_v61 }
  0x50   :  { %1071 = vmatprep.subr.bf16.mxu0 %v3896_v62  ;;  %1112 = vmatprep.subr.bf16.mxu1 %v3901_v63 }
  0x53   :  { %1072 = vmatpush1.bf16.msra.mxu0 %v3908_v0  ;;  %1113 = vmatpush1.bf16.msra.mxu1 %v3913_v2 }
  0x54   :  { %1073 = vmatprep.subr.bf16.mxu0 %v3920_v3  ;;  %1114 = vmatprep.subr.bf16.mxu1 %v3925_v4 }
  0x57   :  { %1074 = vmatpush1.bf16.msra.mxu0 %v3932_v5  ;;  %1115 = vmatpush1.bf16.msra.mxu1 %v3937_v6 }
  0x58   :  { %1075 = vmatprep.subr.bf16.mxu0 %v3944_v7  ;;  %1116 = vmatprep.subr.bf16.mxu1 %v3949_v8 }
  0x5b   :  { %1076 = vmatpush1.bf16.msra.mxu0 %v3956_v9  ;;  %1117 = vmatpush1.bf16.msra.mxu1 %v3961_v10 }
  0x5c   :  { %1077 = vmatprep.subr.bf16.mxu0 %v3968_v13  ;;  %1118 = vmatprep.subr.bf16.mxu1 %v3973_v14 }
  0x5f   :  { %1078 = vmatpush1.bf16.msra.mxu0 %v3980_v15  ;;  %1119 = vmatpush1.bf16.msra.mxu1 %v3985_v24  ;;  %v5426_v24 = vmov 0.0|0.0  }
  0x60   :  { %1079 = vmatprep.subr.bf16.mxu0 %v3992_v33  ;;  %1120 = vmatprep.subr.bf16.mxu1 %v3997_v42  ;;  %v5427_v42 = vmov 0  }
  0x63   :  { %1080 = vmatpush1.bf16.msra.mxu0 %v4004_v1  ;;  %1121 = vmatpush1.bf16.msra.mxu1 %v4009_v55 }
  0x64   :  { %1204 = vmatprep.subr.bf16.mxu0 %v3584_v11  ;;  %1245 = vmatprep.subr.bf16.mxu1 %v3589_v12  ;;  %v63_v11 = vlaneseq }
  0x66   :  { %1098 = vmatmul.mubr.bf16.vlgmr.msra.gmra.mrb[36].mxu0 %v5426_v24  ;;  %1139 = vmatmul.mubr.bf16.vlgmr.msra.gmra.mrb[36].mxu1 %v5426_v24  ;;  %v4053_v12 = vshrl.u32 %v63_v11, 7 }
  0x67   :  { %1205 = vmatpush1.bf16.msra.mxu0 %v3617_v16  ;;  %1246 = vmatpush1.bf16.msra.mxu1 %v3622_v17 }
  0x68   :  { %1206 = vmatprep.subr.bf16.mxu0 %v3627_v18  ;;  %1247 = vmatprep.subr.bf16.mxu1 %v3632_v19  ;;  %v5321_v24 = vsub.s32 2, %v4053_v12 }
  0x69   :  { %1236 = vmatprep.mubr.bf16.mxu0 %v5427_v42  ;;  %1277 = vmatprep.mubr.bf16.mxu1 %v5427_v42 }
  0x6b   :  { %1207 = vmatpush1.bf16.msra.mxu0 %v3639_v20  ;;  %1248 = vmatpush1.bf16.msra.mxu1 %v3644_v21 }
  0x6c   :  { %1208 = vmatprep.subr.bf16.mxu0 %v3651_v22  ;;  %1249 = vmatprep.subr.bf16.mxu1 %v3658_v23 }
  0x6f   :  { %1209 = vmatpush1.bf16.msra.mxu0 %v3668_v25  ;;  %1250 = vmatpush1.bf16.msra.mxu1 %v3675_v26 }
  0x70   :  { %1210 = vmatprep.subr.bf16.mxu0 %v3680_v27  ;;  %1251 = vmatprep.subr.bf16.mxu1 %v3687_v28 }
  0x73   :  { %1211 = vmatpush1.bf16.msra.mxu0 %v3694_v29  ;;  %1252 = vmatpush1.bf16.msra.mxu1 %v3699_v30 }
  0x74   :  { %1212 = vmatprep.subr.bf16.mxu0 %v3706_v31  ;;  %1253 = vmatprep.subr.bf16.mxu1 %v3713_v32 }
  0x77   :  { %1213 = vmatpush1.bf16.msra.mxu0 %v3723_v34  ;;  %1254 = vmatpush1.bf16.msra.mxu1 %v3730_v35 }
  0x78   :  { %1214 = vmatprep.subr.bf16.mxu0 %v3735_v36  ;;  %1255 = vmatprep.subr.bf16.mxu1 %v3742_v37 }
  0x7b   :  { %1215 = vmatpush1.bf16.msra.mxu0 %v3751_v38  ;;  %1256 = vmatpush1.bf16.msra.mxu1 %v3756_v39 }
  0x7c   :  { %1216 = vmatprep.subr.bf16.mxu0 %v3763_v40  ;;  %1257 = vmatprep.subr.bf16.mxu1 %v3768_v41 }
  0x7f   :  { %1217 = vmatpush1.bf16.msra.mxu0 %v3780_v43  ;;  %1258 = vmatpush1.bf16.msra.mxu1 %v3785_v44  ;;  %v5326_v43 = vsub.s32 3, %v4053_v12  ;;  %v5328_v44 = vsub.s32 0, %v4053_v12 }
  0x80   :  { %1218 = vmatprep.subr.bf16.mxu0 %v3792_v45  ;;  %1259 = vmatprep.subr.bf16.mxu1 %v3797_v46  ;;  %v61_v46 = vld [vmem:[%s5301_s4] sm:$0xf] }
  0x81   :  { %v4076_v45 = vrot.slane %v61_v46, %v5328_v44 }
  0x83   :  { %1219 = vmatpush1.bf16.msra.mxu0 %v3806_v47  ;;  %1260 = vmatpush1.bf16.msra.mxu1 %v3811_v48  ;;  %v5332_v47 = vsub.s32 1, %v4053_v12  ;;  %v4072_v48 = vrot.slane %v61_v46, %v5326_v43 }
  0x84   :  { %1295 = vmatprep.subr.bf16.mxu0 %v3818_v49  ;;  %1336 = vmatprep.subr.bf16.mxu1 %v3823_v50  ;;  %v4064_v49 = vrot.slane %v61_v46, %v5321_v24 }
  0x85   :  { %v4084_v24 = vrot.slane %v61_v46, %v5332_v47 }
  0xd9   :  { %v4066_v50 = vpop.f32.mrb[0].mxu0  ;;  %v4068_v11 = vpop.f32.mrb[0].mxu1 }
  0xda   :  { %v4078_v41 = vpop.f32.mrb[1].mxu0  ;;  %v4080_v40 = vpop.f32.mrb[1].mxu1  ;;  %v171_v27 = vadd.f32 %v4066_v50, %v4076_v45 }
  0xdb   :  { %v174_v39 = vpop.f32.mrb[2].mxu0  ;;  %v247_v38 = vpop.f32.mrb[2].mxu1 }
  0xdc   :  { %v4087_v37 = vadd.f32 %v174_v39, %v4076_v45  ;;  %v176_v36 = vpop.f32.mrb[3].mxu0  ;;  %v4090_v43 = vadd.f32 %v247_v38, %v4064_v49  ;;  %v249_v35 = vpop.f32.mrb[3].mxu1 }
  0xdd   :  { %v4093_v44 = vadd.f32 %v176_v36, %v4084_v24  ;;  %v4096_v34 = vadd.f32 %v249_v35, %v4072_v48 }
  0xde   :  { %5428 = vst [vmem:[#allocation38_spill] sm:$0xff] %v4087_v37  ;;  %5429 = vst [vmem:[#allocation39_spill] sm:$0xff] %v4090_v43 }
  0xdf   :  { %5430 = vst [vmem:[#allocation40_spill] sm:$0xff] %v4093_v44  ;;  %5431 = vst [vmem:[#allocation41_spill] sm:$0xff] %v4096_v34 }
  0xe1   :  { %v180_v32 = vpop.f32.mrb[4].mxu0  ;;  %v253_v31 = vpop.f32.mrb[4].mxu1 }
  0xe2   :  { %v4099_v46 = vadd.f32 %v180_v32, %v4076_v45  ;;  %v182_v47 = vpop.f32.mrb[5].mxu0  ;;  %v4102_v39 = vadd.f32 %v253_v31, %v4064_v49  ;;  %v255_v37 = vpop.f32.mrb[5].mxu1 }
  0xe3   :  { %v4105_v38 = vadd.f32 %v182_v47, %v4084_v24  ;;  %v184_v43 = vpop.f32.mrb[6].mxu0  ;;  %v4108_v36 = vadd.f32 %v255_v37, %v4072_v48  ;;  %v257_v44 = vpop.f32.mrb[6].mxu1 }
  0xe4   :  { %5432 = vst [vmem:[#allocation42_spill] sm:$0xff] %v4099_v46  ;;  %5433 = vst [vmem:[#allocation43_spill] sm:$0xff] %v4102_v39  ;;  %v4111_v35 = vadd.f32 %v184_v43, %v4076_v45  ;;  %v186_v34 = vpop.f32.mrb[7].mxu0  ;;  %v4114_v32 = vadd.f32 %v257_v44, %v4064_v49  ;;  %v259_v46 = vpop.f32.mrb[7].mxu1 }
  0xe5   :  { %5434 = vst [vmem:[#allocation44_spill] sm:$0xff] %v4105_v38  ;;  %5435 = vst [vmem:[#allocation45_spill] sm:$0xff] %v4108_v36  ;;  %v4117_v31 = vadd.f32 %v186_v34, %v4084_v24  ;;  %v4120_v39 = vadd.f32 %v259_v46, %v4072_v48 }
  0xe6   :  { %5436 = vst [vmem:[#allocation46_spill] sm:$0xff] %v4111_v35  ;;  %5437 = vst [vmem:[#allocation47_spill] sm:$0xff] %v4114_v32 }
  0xe7   :  { %5438 = vst [vmem:[#allocation48_spill] sm:$0xff] %v4117_v31  ;;  %5439 = vst [vmem:[#allocation49_spill] sm:$0xff] %v4120_v39 }
  0xe9   :  { %v190_v47 = vpop.f32.mrb[8].mxu0  ;;  %v263_v38 = vpop.f32.mrb[8].mxu1 }
  0xea   :  { %v4123_v37 = vadd.f32 %v190_v47, %v4076_v45  ;;  %v192_v36 = vpop.f32.mrb[9].mxu0  ;;  %v4126_v43 = vadd.f32 %v263_v38, %v4064_v49  ;;  %v265_v35 = vpop.f32.mrb[9].mxu1 }
  0xeb   :  { %v4129_v44 = vadd.f32 %v192_v36, %v4084_v24  ;;  %v194_v32 = vpop.f32.mrb[10].mxu0  ;;  %v4132_v34 = vadd.f32 %v265_v35, %v4072_v48  ;;  %v267_v31 = vpop.f32.mrb[10].mxu1 }
  0xec   :  { %5440 = vst [vmem:[#allocation50_spill] sm:$0xff] %v4123_v37  ;;  %5441 = vst [vmem:[#allocation51_spill] sm:$0xff] %v4126_v43  ;;  %v4135_v46 = vadd.f32 %v194_v32, %v4076_v45  ;;  %v196_v39 = vpop.f32.mrb[11].mxu0  ;;  %v4138_v47 = vadd.f32 %v267_v31, %v4064_v49  ;;  %v269_v37 = vpop.f32.mrb[11].mxu1 }
  0xed   :  { %5442 = vst [vmem:[#allocation52_spill] sm:$0xff] %v4129_v44  ;;  %5443 = vst [vmem:[#allocation53_spill] sm:$0xff] %v4132_v34  ;;  %v4141_v38 = vadd.f32 %v196_v39, %v4084_v24  ;;  %v4144_v43 = vadd.f32 %v269_v37, %v4072_v48  ;;  %v2849_v39 = vld [vmem:[%s5301_s4 + $0x4] sm:$0xf] }
  0xee   :  { %5444 = vst [vmem:[#allocation54_spill] sm:$0xff] %v4135_v46  ;;  %5445 = vst [vmem:[#allocation55_spill] sm:$0xff] %v4138_v47 }
  0xef   :  { %5446 = vst [vmem:[#allocation56_spill] sm:$0xff] %v4141_v38  ;;  %5447 = vst [vmem:[#allocation57_spill] sm:$0xff] %v4144_v43  ;;  %v5456_v38 = vsub.s32 0, %v4053_v12 }
  0xf1   :  { %v200_v36 = vpop.f32.mrb[12].mxu0  ;;  %v273_v44 = vpop.f32.mrb[12].mxu1  ;;  %v4175_v30 = vrot.slane %v2849_v39, %v5456_v38 }
  0xf2   :  { %v4147_v35 = vadd.f32 %v200_v36, %v4076_v45  ;;  %v202_v34 = vpop.f32.mrb[13].mxu0  ;;  %v4150_v32 = vadd.f32 %v273_v44, %v4064_v49  ;;  %v275_v46 = vpop.f32.mrb[13].mxu1 }
  0xf3   :  { %v4153_v31 = vadd.f32 %v202_v34, %v4084_v24  ;;  %v204_v47 = vpop.f32.mrb[14].mxu0  ;;  %v4159_v37 = vadd.f32 %v275_v46, %v4072_v48  ;;  %v277_v43 = vpop.f32.mrb[14].mxu1  ;;  %v5457_v46 = vsub.s32 2, %v4053_v12 }
  0xf4   :  { %5448 = vst [vmem:[#allocation58_spill] sm:$0xff] %v4147_v35  ;;  %5449 = vst [vmem:[#allocation59_spill] sm:$0xff] %v4150_v32  ;;  %v4162_v36 = vadd.f32 %v204_v47, %v4076_v45  ;;  %v206_v35 = vpop.f32.mrb[15].mxu0  ;;  %v4165_v44 = vadd.f32 %v277_v43, %v4064_v49  ;;  %v279_v32 = vpop.f32.mrb[15].mxu1  ;;  %v5458_v47 = vsub.s32 1, %v4053_v12  ;;  %v5459_v43 = vsub.s32 3, %v4053_v12 }
  0xf5   :  { %5450 = vst [vmem:[#allocation60_spill] sm:$0xff] %v4153_v31  ;;  %5451 = vst [vmem:[#allocation61_spill] sm:$0xff] %v4159_v37  ;;  %v4168_v34 = vadd.f32 %v206_v35, %v4084_v24  ;;  %v4171_v31 = vadd.f32 %v279_v32, %v4072_v48  ;;  %v4179_v37 = vrot.slane %v2849_v39, %v5457_v46 }
  0xf6   :  { %5452 = vst [vmem:[#allocation62_spill] sm:$0xff] %v4162_v36  ;;  %5453 = vst [vmem:[#allocation63_spill] sm:$0xff] %v4165_v44  ;;  %v4183_v36 = vrot.slane %v2849_v39, %v5458_v47  ;;  %v4187_v44 = vrot.slane %v2849_v39, %v5459_v43 }
  0xf7   :  { %5454 = vst [vmem:[#allocation64_spill] sm:$0xff] %v4168_v34  ;;  %5455 = vst [vmem:[#allocation65_spill] sm:$0xff] %v4171_v31 }
  0xf9   :  { %v436_v35 = vpop.f32.mrb[16].mxu0  ;;  %v509_v34 = vpop.f32.mrb[16].mxu1 }
  0xfa   :  { %v4190_v32 = vadd.f32 %v436_v35, %v4175_v30  ;;  %v438_v31 = vpop.f32.mrb[17].mxu0  ;;  %v4193_v38 = vadd.f32 %v509_v34, %v4179_v37  ;;  %v511_v29 = vpop.f32.mrb[17].mxu1 }
  0xfb   :  { %v4196_v46 = vadd.f32 %v438_v31, %v4183_v36  ;;  %v440_v28 = vpop.f32.mrb[18].mxu0  ;;  %v4199_v47 = vadd.f32 %v511_v29, %v4187_v44  ;;  %v513_v12 = vpop.f32.mrb[18].mxu1 }
  0xfc   :  { %5460 = vst [vmem:[#allocation66_spill] sm:$0xff] %v4190_v32  ;;  %5461 = vst [vmem:[#allocation67_spill] sm:$0xff] %v4193_v38  ;;  %v4202_v39 = vadd.f32 %v440_v28, %v4175_v30  ;;  %v442_v43 = vpop.f32.mrb[19].mxu0  ;;  %v4205_v35 = vadd.f32 %v513_v12, %v4179_v37  ;;  %v515_v32 = vpop.f32.mrb[19].mxu1 }
  0xfd   :  { %5462 = vst [vmem:[#allocation68_spill] sm:$0xff] %v4196_v46  ;;  %5463 = vst [vmem:[#allocation69_spill] sm:$0xff] %v4199_v47  ;;  %v4208_v34 = vadd.f32 %v442_v43, %v4183_v36  ;;  %v4211_v38 = vadd.f32 %v515_v32, %v4187_v44 }
  0xfe   :  { %5464 = vst [vmem:[#allocation70_spill] sm:$0xff] %v4202_v39  ;;  %5465 = vst [vmem:[#allocation71_spill] sm:$0xff] %v4205_v35 }
  0xff   :  { %5466 = vst [vmem:[#allocation72_spill] sm:$0xff] %v4208_v34  ;;  %5467 = vst [vmem:[#allocation73_spill] sm:$0xff] %v4211_v38 }
 0x101   :  { %v446_v31 = vpop.f32.mrb[20].mxu0  ;;  %v519_v46 = vpop.f32.mrb[20].mxu1 }
 0x102   :  { %v4214_v29 = vadd.f32 %v446_v31, %v4175_v30  ;;  %v448_v47 = vpop.f32.mrb[21].mxu0  ;;  %v4217_v28 = vadd.f32 %v519_v46, %v4179_v37  ;;  %v521_v39 = vpop.f32.mrb[21].mxu1 }
 0x103   :  { %v4220_v12 = vadd.f32 %v448_v47, %v4183_v36  ;;  %v450_v35 = vpop.f32.mrb[22].mxu0  ;;  %v4223_v43 = vadd.f32 %v521_v39, %v4187_v44  ;;  %v523_v34 = vpop.f32.mrb[22].mxu1 }
 0x104   :  { %5468 = vst [vmem:[#allocation74_spill] sm:$0xff] %v4214_v29  ;;  %5469 = vst [vmem:[#allocation75_spill] sm:$0xff] %v4217_v28  ;;  %v4226_v32 = vadd.f32 %v450_v35, %v4175_v30  ;;  %v452_v38 = vpop.f32.mrb[23].mxu0  ;;  %v4229_v31 = vadd.f32 %v523_v34, %v4179_v37  ;;  %v525_v29 = vpop.f32.mrb[23].mxu1 }
 0x105   :  { %5470 = vst [vmem:[#allocation76_spill] sm:$0xff] %v4220_v12  ;;  %5471 = vst [vmem:[#allocation77_spill] sm:$0xff] %v4223_v43  ;;  %v4232_v46 = vadd.f32 %v452_v38, %v4183_v36  ;;  %v4235_v28 = vadd.f32 %v525_v29, %v4187_v44 }
 0x106   :  { %5472 = vst [vmem:[#allocation78_spill] sm:$0xff] %v4226_v32  ;;  %5473 = vst [vmem:[#allocation79_spill] sm:$0xff] %v4229_v31 }
 0x107   :  { %5474 = vst [vmem:[#allocation80_spill] sm:$0xff] %v4232_v46  ;;  %5475 = vst [vmem:[#allocation81_spill] sm:$0xff] %v4235_v28 }
 0x109   :  { %v456_v47 = vpop.f32.mrb[24].mxu0  ;;  %v529_v12 = vpop.f32.mrb[24].mxu1 }
 0x10a   :  { %v4238_v39 = vadd.f32 %v456_v47, %v4175_v30  ;;  %v458_v43 = vpop.f32.mrb[25].mxu0  ;;  %v4241_v35 = vadd.f32 %v529_v12, %v4179_v37  ;;  %v531_v32 = vpop.f32.mrb[25].mxu1 }
 0x10b   :  { %v4244_v34 = vadd.f32 %v458_v43, %v4183_v36  ;;  %v460_v31 = vpop.f32.mrb[26].mxu0  ;;  %v4247_v38 = vadd.f32 %v531_v32, %v4187_v44  ;;  %v533_v46 = vpop.f32.mrb[26].mxu1 }
 0x10c   :  { %5476 = vst [vmem:[#allocation82_spill] sm:$0xff] %v4238_v39  ;;  %5477 = vst [vmem:[#allocation83_spill] sm:$0xff] %v4241_v35  ;;  %v4250_v29 = vadd.f32 %v460_v31, %v4175_v30  ;;  %v462_v28 = vpop.f32.mrb[27].mxu0  ;;  %v4253_v47 = vadd.f32 %v533_v46, %v4179_v37  ;;  %v535_v39 = vpop.f32.mrb[27].mxu1 }
 0x10d   :  { %5478 = vst [vmem:[#allocation84_spill] sm:$0xff] %v4244_v34  ;;  %5479 = vst [vmem:[#allocation85_spill] sm:$0xff] %v4247_v38  ;;  %v4256_v12 = vadd.f32 %v462_v28, %v4183_v36  ;;  %v4259_v35 = vadd.f32 %v535_v39, %v4187_v44 }
 0x10e   :  { %5480 = vst [vmem:[#allocation86_spill] sm:$0xff] %v4250_v29  ;;  %5481 = vst [vmem:[#allocation87_spill] sm:$0xff] %v4253_v47 }
 0x10f   :  { %5482 = vst [vmem:[#allocation88_spill] sm:$0xff] %v4256_v12  ;;  %5483 = vst [vmem:[#allocation89_spill] sm:$0xff] %v4259_v35 }
 0x111   :  { %v466_v43 = vpop.f32.mrb[28].mxu0  ;;  %v539_v34 = vpop.f32.mrb[28].mxu1 }
 0x112   :  { %v4262_v32 = vadd.f32 %v466_v43, %v4175_v30  ;;  %v468_v38 = vpop.f32.mrb[29].mxu0  ;;  %v4265_v31 = vadd.f32 %v539_v34, %v4179_v37  ;;  %v541_v29 = vpop.f32.mrb[29].mxu1  ;;  %v244_v43 = vadd.f32 %v4068_v11, %v4064_v49  ;;  %v173_v34 = vadd.f32 %v4078_v41, %v4084_v24 }
 0x113   :  { %v4268_v46 = vadd.f32 %v468_v38, %v4183_v36  ;;  %v470_v47 = vpop.f32.mrb[30].mxu0  ;;  %v4271_v28 = vadd.f32 %v541_v29, %v4187_v44  ;;  %v543_v12 = vpop.f32.mrb[30].mxu1  ;;  %v246_v38 = vadd.f32 %v4080_v40, %v4072_v48 }
 0x114   :  { %5484 = vst [vmem:[#allocation90_spill] sm:$0xff] %v4262_v32  ;;  %5485 = vst [vmem:[#allocation91_spill] sm:$0xff] %v4265_v31  ;;  %v472_v39 = vpop.f32.mrb[31].mxu0  ;;  %v545_v35 = vpop.f32.mrb[31].mxu1 }
 0x115   :  { %5486 = vst [vmem:[#allocation92_spill] sm:$0xff] %v4268_v46  ;;  %5487 = vst [vmem:[#allocation93_spill] sm:$0xff] %v4271_v28 }
 0x119   :  { %v848_v46 = vpop.f32.mrb[32].mxu0  ;;  %v889_v31 = vpop.f32.mrb[32].mxu1 }
 0x11a   :  { %v896_v32 = vadd.f32 %v848_v46, %v171_v27  ;;  %v898_v29 = vadd.f32 %v889_v31, %v244_v43  ;;  %v850_v28 = vpop.f32.mrb[33].mxu0  ;;  %v891_v26 = vpop.f32.mrb[33].mxu1 }
 0x11b   :  { %v897_v25 = vadd.f32 %v850_v28, %v173_v34  ;;  %v899_v23 = vadd.f32 %v891_v26, %v246_v38  ;;  %v852_v22 = vpop.f32.mrb[34].mxu0  ;;  %v893_v21 = vpop.f32.mrb[34].mxu1  ;;  %v546_v28 = vadd.f32 %v545_v35, %v4187_v44 }
 0x11c   :  { %v2962_v45 = vmul.f32 -1.442695, %v896_v32  ;;  %v853_v50 = vpop.f32.mrb[35].mxu0  ;;  %v894_v20 = vpop.f32.mrb[35].mxu1 }
 0x11d   :  { %v2964_v49 = vmul.f32 -1.442695, %v897_v25  ;;  %v2966_v41 = vmul.f32 -1.442695, %v899_v23  ;;  %v471_v20 = vadd.f32 %v470_v47, %v4175_v30  ;;  %v544_v25 = vadd.f32 %v543_v12, %v4179_v37 }
 0x11e   :  { %3129 = vpow2.f32 %v2962_v45  ;;  %v473_v23 = vadd.f32 %v472_v39, %v4183_v36 }
 0x11f   :  { %3131 = vpow2.f32 %v2964_v49 }
 0x120   :  { %3133 = vpow2.f32 %v2966_v41 }
 0x121   :  { %3135 = vtanh.f32 %v898_v29 }
 0x128   :  { %v3130_v24 = vpop.eup %3129 }
 0x129   :  { %v3132_v11 = vpop.eup %3131  ;;  %v1154_v40 = vadd.f32 1.0, %v3130_v24 }
 0x12a   :  { %v1166_v27 = vadd.f32 1.0, %v3132_v11  ;;  %v3134_v48 = vpop.eup %3133 }
 0x12b   :  { %3137 = vrcp.f32 %v1154_v40  ;;  %v3136_v31 = vpop.eup %3135  ;;  %v1180_v32 = vadd.f32 1.0, %v3134_v48 }
 0x12c   :  { %3139 = vrcp.f32 %v1166_v27 }
 0x12d   :  { %3141 = vrcp.f32 %v1180_v32 }
 0x135   :  { %v3138_v26 = vpop.eup %3137 }
 0x136   :  { %v3140_v22 = vpop.eup %3139  ;;  %v1190_v21 = vmul.f32 %v3138_v26, %v3136_v31 }
 0x137   :  { %v1189_v46 = vmul.f32 0.0, %v3140_v22  ;;  %v3142_v44 = vpop.eup %3141 }
 0x139   :  { %v4285_v43 = vadd.f32 %v1190_v21, %v1189_v46  ;;  %v1099_v34 = vpop.f32.mrb[36].mxu0  ;;  %v1140_v38 = vpop.f32.mrb[36].mxu1 }
 0x13a   :  { %v1147_v29 = vadd.f32 %v1099_v34, %v471_v20  ;;  %v1149_v45 = vadd.f32 %v1140_v38, %v544_v25  ;;  %v1101_v50 = vpop.f32.mrb[37].mxu0  ;;  %v1142_v49 = vpop.f32.mrb[37].mxu1  ;;  %v5488_v38 = vld [vmem:[#allocation36_spill] sm:$0xff] }
 0x13b   :  { %3143 = vtanh.f32 %v4285_v43  ;;  %v1148_v41 = vadd.f32 %v1101_v50, %v473_v23  ;;  %v1150_v24 = vadd.f32 %v1142_v49, %v546_v28  ;;  %v1103_v30 = vpop.f32.mrb[38].mxu0  ;;  %v1144_v47 = vpop.f32.mrb[38].mxu1 }
 0x13c   :  { %v2963_v37 = vmul.f32 -1.442695, %v1147_v29  ;;  %v1104_v12 = vpop.f32.mrb[39].mxu0  ;;  %v1145_v36 = vpop.f32.mrb[39].mxu1  ;;  %v4332_v30 = vld [vmem:[%s5299_s3 + $0xc] ss:$16 sps:$4 sm:$0xff]  }
 0x13d   :  { %v2965_v39 = vmul.f32 -1.442695, %v1148_v41  ;;  %v2967_v11 = vmul.f32 -1.442695, %v1150_v24  ;;  %v4326_v24 = vld [vmem:[%s5299_s3 + $0x4] ss:$16 sps:$4 sm:$0xff]  }
 0x13e   :  { %3145 = vpow2.f32 %v2963_v37  ;;  %v5490_v47 = vld [vmem:[#allocation8_spill] sm:$0xff]  ;;  %v5491_v37 = vld [vmem:[#allocation9_spill] sm:$0xff]  ;;  %v5492_v12 = vld [vmem:[#allocation10_spill] sm:$0xff] }
 0x13f   :  { %3147 = vpow2.f32 %v2965_v39  ;;  %v5493_v36 = vld [vmem:[#allocation11_spill] sm:$0xff]  ;;  %v5494_v39 = vld [vmem:[#allocation12_spill] sm:$0xff] }
 0x140   :  { %3149 = vpow2.f32 %v2967_v11  ;;  %v5501_v11 = vld [vmem:[#allocation19_spill] sm:$0xff] }
 0x141   :  { %3151 = vtanh.f32 %v1149_v45  ;;  %v5489_v45 = vld [vmem:[#allocation37_spill] sm:$0xff] }
 0x145   :  { %v3144_v35 = vpop.eup %3143 }
 0x146   :  { %v1196_v40 = vmul.f32 %v3144_v35, %v3142_v44  ;;  %v5499_v44 = vld [vmem:[#allocation17_spill] sm:$0xff]  ;;  %v5500_v35 = vld [vmem:[#allocation18_spill] sm:$0xff] }
 0x148   :  { %v3146_v27 = vpop.eup %3145  ;;  %v1203_v48 = vpack.c.bf16 %v1196_v40, %v1196_v40  ;;  %v5502_v40 = vld [vmem:[#allocation20_spill] sm:$0xff] }
 0x149   :  { %v3148_v31 = vpop.eup %3147  ;;  %v1160_v26 = vadd.f32 1.0, %v3146_v27  ;;  %v5503_v27 = vld [vmem:[#allocation21_spill] sm:$0xff] }
 0x14a   :  { %v1172_v22 = vadd.f32 1.0, %v3148_v31  ;;  %1237 = vmatmul.mubr.bf16.vlgmr.msra.gmra.mrb[40].mxu0 %v1203_v48  ;;  %1278 = vmatmul.mubr.bf16.vlgmr.msra.gmra.mrb[40].mxu1 %v1203_v48  ;;  %v3150_v21 = vpop.eup %3149  ;;  %v5504_v48 = vld [vmem:[#allocation22_spill] sm:$0xff]  ;;  %v5505_v31 = vld [vmem:[#allocation23_spill] sm:$0xff] }
 0x14b   :  { %3153 = vrcp.f32 %v1160_v26  ;;  %1296 = vmatpush1.bf16.msra.mxu0 %v3832_v51  ;;  %1337 = vmatpush1.bf16.msra.mxu1 %v3837_v52  ;;  %v3152_v32 = vpop.eup %3151  ;;  %v1186_v23 = vadd.f32 1.0, %v3150_v21  ;;  %v5506_v26 = vld [vmem:[#allocation24_spill] sm:$0xff]  ;;  %v5508_v21 = vld [vmem:[#allocation26_spill] sm:$0xff] }
 0x14c   :  { %3155 = vrcp.f32 %v1172_v22  ;;  %1297 = vmatprep.subr.bf16.mxu0 %v3844_v53  ;;  %1338 = vmatprep.subr.bf16.mxu1 %v3849_v54  ;;  %v5507_v22 = vld [vmem:[#allocation25_spill] sm:$0xff] }
 0x14d   :  { %1327 = vmatprep.mubr.bf16.mxu0 %v5427_v42  ;;  %1368 = vmatprep.mubr.bf16.mxu1 %v5427_v42  ;;  %3157 = vrcp.f32 %v1186_v23  ;;  %v5513_v23 = vld [vmem:[#allocation31_spill] sm:$0xff] }
 0x14f   :  { %1298 = vmatpush1.bf16.msra.mxu0 %v3858_v56  ;;  %1339 = vmatpush1.bf16.msra.mxu1 %v3863_v57 }
 0x150   :  { %1299 = vmatprep.subr.bf16.mxu0 %v3870_v58  ;;  %1340 = vmatprep.subr.bf16.mxu1 %v3875_v59 }
 0x153   :  { %1300 = vmatpush1.bf16.msra.mxu0 %v3884_v60  ;;  %1341 = vmatpush1.bf16.msra.mxu1 %v3889_v61 }
 0x154   :  { %1301 = vmatprep.subr.bf16.mxu0 %v3896_v62  ;;  %1342 = vmatprep.subr.bf16.mxu1 %v3901_v63 }
 0x155   :  { %v3154_v46 = vpop.eup %3153 }
 0x156   :  { %v3156_v20 = vpop.eup %3155  ;;  %v1193_v25 = vmul.f32 %v3154_v46, %v3152_v32  ;;  %v5509_v32 = vld [vmem:[#allocation27_spill] sm:$0xff]  ;;  %v5510_v46 = vld [vmem:[#allocation28_spill] sm:$0xff] }
 0x157   :  { %v1192_v28 = vmul.f32 0.0, %v3156_v20  ;;  %1302 = vmatpush1.bf16.msra.mxu0 %v3908_v0  ;;  %1343 = vmatpush1.bf16.msra.mxu1 %v3913_v2  ;;  %v3158_v29 = vpop.eup %3157  ;;  %v5511_v20 = vld [vmem:[#allocation29_spill] sm:$0xff] }
 0x158   :  { %1303 = vmatprep.subr.bf16.mxu0 %v3920_v3  ;;  %1344 = vmatprep.subr.bf16.mxu1 %v3925_v4 }
 0x159   :  { %v4306_v34 = vadd.f32 %v1193_v25, %v1192_v28  ;;  %v5512_v25 = vld [vmem:[#allocation30_spill] sm:$0xff]  ;;  %v5514_v28 = vld [vmem:[#allocation32_spill] sm:$0xff] }
 0x15b   :  { %3159 = vtanh.f32 %v4306_v34  ;;  %1304 = vmatpush1.bf16.msra.mxu0 %v3932_v5  ;;  %1345 = vmatpush1.bf16.msra.mxu1 %v3937_v6 }
 0x15c   :  { %1305 = vmatprep.subr.bf16.mxu0 %v3944_v7  ;;  %1346 = vmatprep.subr.bf16.mxu1 %v3949_v8 }
 0x15f   :  { %1306 = vmatpush1.bf16.msra.mxu0 %v3956_v9  ;;  %1347 = vmatpush1.bf16.msra.mxu1 %v3961_v10 }
 0x160   :  { %1307 = vmatprep.subr.bf16.mxu0 %v3968_v13  ;;  %1348 = vmatprep.subr.bf16.mxu1 %v3973_v14 }
 0x163   :  { %1308 = vmatpush1.bf16.msra.mxu0 %v3980_v15  ;;  %1349 = vmatpush1.bf16.msra.mxu1 %v5488_v38 }
 0x164   :  { %1309 = vmatprep.subr.bf16.mxu0 %v3992_v33  ;;  %1350 = vmatprep.subr.bf16.mxu1 %v5489_v45 }
 0x165   :  { %v3160_v50 = vpop.eup %3159 }
 0x166   :  { %v1198_v49 = vmul.f32 %v3160_v50, %v3158_v29  ;;  %v5515_v29 = vld [vmem:[#allocation33_spill] sm:$0xff]  ;;  %v5516_v50 = vld [vmem:[#allocation34_spill] sm:$0xff] }
 0x167   :  { %1310 = vmatpush1.bf16.msra.mxu0 %v4004_v1  ;;  %1351 = vmatpush1.bf16.msra.mxu1 %v4009_v55 }
 0x168   :  { %v1294_v41 = vpack.c.bf16 %v1198_v49, %v1198_v49  ;;  %1434 = vmatprep.subr.bf16.mxu0 %v4326_v24  ;;  %1475 = vmatprep.subr.bf16.mxu1 %v4332_v30  ;;  %v5517_v49 = vld [vmem:[#allocation35_spill] sm:$0xff] }
 0x16a   :  { %1328 = vmatmul.mubr.bf16.vlgmr.msra.gmra.mrb[44].mxu0 %v1294_v41  ;;  %1369 = vmatmul.mubr.bf16.vlgmr.msra.gmra.mrb[44].mxu1 %v1294_v41 }
 0x16b   :  { %1435 = vmatpush1.bf16.msra.mxu0 %v3617_v16  ;;  %1476 = vmatpush1.bf16.msra.mxu1 %v3622_v17  ;;  %v5495_v16 = vld [vmem:[#allocation13_spill] sm:$0xff]  ;;  %v5496_v17 = vld [vmem:[#allocation14_spill] sm:$0xff] }
 0x16c   :  { %1436 = vmatprep.subr.bf16.mxu0 %v3627_v18  ;;  %1477 = vmatprep.subr.bf16.mxu1 %v3632_v19  ;;  %v5497_v18 = vld [vmem:[#allocation15_spill] sm:$0xff]  ;;  %v5498_v19 = vld [vmem:[#allocation16_spill] sm:$0xff] }
 0x16d   :  { %1466 = vmatprep.mubr.bf16.mxu0 %v5427_v42  ;;  %1507 = vmatprep.mubr.bf16.mxu1 %v5427_v42 }
 0x16f   :  { %1437 = vmatpush1.bf16.msra.mxu0 %v5490_v47  ;;  %1478 = vmatpush1.bf16.msra.mxu1 %v5491_v37  ;;  %v5518_v37 = vld [vmem:[#allocation38_spill] sm:$0xff] }
 0x170   :  { %1438 = vmatprep.subr.bf16.mxu0 %v5492_v12  ;;  %1479 = vmatprep.subr.bf16.mxu1 %v5493_v36  ;;  %v5519_v36 = vld [vmem:[#allocation39_spill] sm:$0xff] }
 0x173   :  { %1439 = vmatpush1.bf16.msra.mxu0 %v5494_v39  ;;  %1480 = vmatpush1.bf16.msra.mxu1 %v5495_v16 }
 0x174   :  { %1440 = vmatprep.subr.bf16.mxu0 %v5496_v17  ;;  %1481 = vmatprep.subr.bf16.mxu1 %v5497_v18  ;;  %v5520_v18 = vld [vmem:[#allocation40_spill] sm:$0xff] }
 0x177   :  { %1441 = vmatpush1.bf16.msra.mxu0 %v5498_v19  ;;  %1482 = vmatpush1.bf16.msra.mxu1 %v5499_v44  ;;  %v5521_v44 = vld [vmem:[#allocation41_spill] sm:$0xff] }
 0x178   :  { %1442 = vmatprep.subr.bf16.mxu0 %v5500_v35  ;;  %1483 = vmatprep.subr.bf16.mxu1 %v5501_v11 }
 0x17b   :  { %1443 = vmatpush1.bf16.msra.mxu0 %v5502_v40  ;;  %1484 = vmatpush1.bf16.msra.mxu1 %v5503_v27 }
 0x17c   :  { %1444 = vmatprep.subr.bf16.mxu0 %v5504_v48  ;;  %1485 = vmatprep.subr.bf16.mxu1 %v5505_v31 }
 0x17f   :  { %1445 = vmatpush1.bf16.msra.mxu0 %v5506_v26  ;;  %1486 = vmatpush1.bf16.msra.mxu1 %v5507_v22 }
 0x180   :  { %1446 = vmatprep.subr.bf16.mxu0 %v5508_v21  ;;  %1487 = vmatprep.subr.bf16.mxu1 %v5509_v32 }
 0x183   :  { %1447 = vmatpush1.bf16.msra.mxu0 %v5510_v46  ;;  %1488 = vmatpush1.bf16.msra.mxu1 %v5511_v20 }
 0x184   :  { %1448 = vmatprep.subr.bf16.mxu0 %v5512_v25  ;;  %1489 = vmatprep.subr.bf16.mxu1 %v5513_v23 }
 0x187   :  { %1449 = vmatpush1.bf16.msra.mxu0 %v5514_v28  ;;  %1490 = vmatpush1.bf16.msra.mxu1 %v5515_v29 }
 0x188   :  { %1525 = vmatprep.subr.bf16.mxu0 %v5516_v50  ;;  %1566 = vmatprep.subr.bf16.mxu1 %v5517_v49 }
 0x21d   :  { %v1238_v41 = vpop.f32.mrb[40].mxu0  ;;  %v1279_v47 = vpop.f32.mrb[40].mxu1 }
 0x21e   :  { %v1286_v12 = vadd.f32 %v1238_v41, %v5518_v37  ;;  %v1288_v39 = vadd.f32 %v1279_v47, %v5519_v36  ;;  %v1240_v16 = vpop.f32.mrb[41].mxu0  ;;  %v1281_v17 = vpop.f32.mrb[41].mxu1  ;;  %v5522_v36 = vld [vmem:[#allocation90_spill] sm:$0xff] }
 0x21f   :  { %v1287_v19 = vadd.f32 %v1240_v16, %v5520_v18  ;;  %v1289_v35 = vadd.f32 %v1281_v17, %v5521_v44  ;;  %v1242_v11 = vpop.f32.mrb[42].mxu0  ;;  %v1283_v40 = vpop.f32.mrb[42].mxu1  ;;  %v5523_v17 = vld [vmem:[#allocation91_spill] sm:$0xff]  ;;  %v5524_v44 = vld [vmem:[#allocation92_spill] sm:$0xff] }
 0x220   :  { %v2968_v27 = vmul.f32 -1.442695, %v1286_v12  ;;  %v1243_v48 = vpop.f32.mrb[43].mxu0  ;;  %v1284_v31 = vpop.f32.mrb[43].mxu1  ;;  %v5525_v11 = vld [vmem:[#allocation93_spill] sm:$0xff] }
 0x221   :  { %v2970_v26 = vmul.f32 -1.442695, %v1287_v19  ;;  %v2972_v22 = vmul.f32 -1.442695, %v1289_v35 }
 0x222   :  { %3161 = vpow2.f32 %v2968_v27 }
 0x223   :  { %3163 = vpow2.f32 %v2970_v26 }
 0x224   :  { %3165 = vpow2.f32 %v2972_v22 }
 0x225   :  { %3167 = vtanh.f32 %v1288_v39 }
 0x22c   :  { %v3162_v21 = vpop.eup %3161 }
 0x22d   :  { %v3164_v32 = vpop.eup %3163  ;;  %v1384_v46 = vadd.f32 1.0, %v3162_v21 }
 0x22e   :  { %v1396_v20 = vadd.f32 1.0, %v3164_v32  ;;  %v3166_v25 = vpop.eup %3165 }
 0x22f   :  { %3169 = vrcp.f32 %v1384_v46  ;;  %v3168_v23 = vpop.eup %3167  ;;  %v1410_v49 = vadd.f32 1.0, %v3166_v25 }
 0x230   :  { %3171 = vrcp.f32 %v1396_v20 }
 0x231   :  { %3173 = vrcp.f32 %v1410_v49 }
 0x239   :  { %v3170_v28 = vpop.eup %3169 }
 0x23a   :  { %v3172_v29 = vpop.eup %3171  ;;  %v1420_v50 = vmul.f32 %v3170_v28, %v3168_v23 }
 0x23b   :  { %v1419_v41 = vmul.f32 %v3172_v29, %v4285_v43  ;;  %v3174_v21 = vpop.eup %3173 }
 0x23d   :  { %v4374_v47 = vadd.f32 %v1420_v50, %v1419_v41  ;;  %v1329_v37 = vpop.f32.mrb[44].mxu0  ;;  %v1370_v12 = vpop.f32.mrb[44].mxu1  ;;  %v4544_v41 = vld [vmem:[%s5299_s3 + $0xa0] ss:$16 sps:$4 sm:$0xff]  }
 0x23e   :  { %v1377_v16 = vadd.f32 %v1329_v37, %v5522_v36  ;;  %v1379_v39 = vadd.f32 %v1370_v12, %v5523_v17  ;;  %v1331_v18 = vpop.f32.mrb[45].mxu0  ;;  %v1372_v19 = vpop.f32.mrb[45].mxu1  ;;  %5536 = vst [vmem:[#allocation16_spill] sm:$0xff] %v4544_v41  ;;  %v4550_v37 = vld [vmem:[%s5299_s3 + $0xa8] ss:$16 sps:$4 sm:$0xff]  }
 0x23f   :  { %v1378_v35 = vadd.f32 %v1331_v18, %v5524_v44  ;;  %v1380_v40 = vadd.f32 %v1372_v19, %v5525_v11  ;;  %v1333_v27 = vpop.f32.mrb[46].mxu0  ;;  %v1374_v48 = vpop.f32.mrb[46].mxu1  ;;  %3175 = vtanh.f32 %v4374_v47  ;;  %5537 = vst [vmem:[#allocation17_spill] sm:$0xff] %v4550_v37  ;;  %v4556_v12 = vld [vmem:[%s5299_s3 + $0xc4] ss:$16 sps:$4 sm:$0xff]  }
 0x240   :  { %v2969_v43 = vmul.f32 -1.442695, %v1377_v16  ;;  %v1334_v31 = vpop.f32.mrb[47].mxu0  ;;  %v1375_v26 = vpop.f32.mrb[47].mxu1  ;;  %5538 = vst [vmem:[#allocation18_spill] sm:$0xff] %v4556_v12  ;;  %v5548_v48 = vld [vmem:[#allocation42_spill] sm:$0xff] }
 0x241   :  { %v2971_v22 = vmul.f32 -1.442695, %v1378_v35  ;;  %v2973_v46 = vmul.f32 -1.442695, %v1380_v40  ;;  %v4562_v36 = vld [vmem:[%s5299_s3 + $0xcc] ss:$16 sps:$4 sm:$0xff]  }
 0x242   :  { %3177 = vpow2.f32 %v2969_v43  ;;  %5539 = vst [vmem:[#allocation19_spill] sm:$0xff] %v4562_v36  ;;  %v4568_v16 = vld [vmem:[%s5299_s3 + $0xc0] ss:$16 sps:$4 sm:$0xff]   ;;  %v4574_v17 = vld [vmem:[%s5299_s3 + $0xc8] ss:$16 sps:$4 sm:$0xff]  }
 0x243   :  { %3179 = vpow2.f32 %v2971_v22  ;;  %5540 = vst [vmem:[#allocation20_spill] sm:$0xff] %v4568_v16  ;;  %5541 = vst [vmem:[#allocation21_spill] sm:$0xff] %v4574_v17  ;;  %v4586_v18 = vld [vmem:[%s5299_s3 + $0xec] ss:$16 sps:$4 sm:$0xff]   ;;  %v4592_v19 = vld [vmem:[%s5299_s3 + $0xe0] ss:$16 sps:$4 sm:$0xff]  }
 0x244   :  { %3181 = vpow2.f32 %v2973_v46  ;;  %5543 = vst [vmem:[#allocation23_spill] sm:$0xff] %v4586_v18  ;;  %5544 = vst [vmem:[#allocation24_spill] sm:$0xff] %v4592_v19  ;;  %v4598_v44 = vld [vmem:[%s5299_s3 + $0xe8] ss:$16 sps:$4 sm:$0xff]   ;;  %v4604_v35 = vld [vmem:[%s5299_s3 + $0x104] ss:$16 sps:$4 sm:$0xff]  }
 0x245   :  { %3183 = vtanh.f32 %v1379_v39  ;;  %v4580_v39 = vld [vmem:[%s5299_s3 + $0xe4] ss:$16 sps:$4 sm:$0xff]   ;;  %5545 = vst [vmem:[#allocation25_spill] sm:$0xff] %v4598_v44  ;;  %5546 = vst [vmem:[#allocation26_spill] sm:$0xff] %v4604_v35  ;;  %v4610_v11 = vld [vmem:[%s5299_s3 + $0x10c] ss:$16 sps:$4 sm:$0xff]  }
 0x246   :  { %5542 = vst [vmem:[#allocation22_spill] sm:$0xff] %v4580_v39  ;;  %5547 = vst [vmem:[#allocation27_spill] sm:$0xff] %v4610_v11  ;;  %v5549_v31 = vld [vmem:[#allocation43_spill] sm:$0xff] }
 0x249   :  { %v3176_v32 = vpop.eup %3175 }
 0x24a   :  { %v1426_v20 = vmul.f32 %v3176_v32, %v3174_v21  ;;  %v5550_v32 = vld [vmem:[#allocation44_spill] sm:$0xff] }
 0x24c   :  { %v3178_v25 = vpop.eup %3177  ;;  %v1433_v23 = vpack.c.bf16 %v1426_v20, %v1426_v20  ;;  %v5551_v20 = vld [vmem:[#allocation45_spill] sm:$0xff] }
 0x24d   :  { %v3180_v28 = vpop.eup %3179  ;;  %v1390_v29 = vadd.f32 1.0, %v3178_v25 }
 0x24e   :  { %v1402_v50 = vadd.f32 1.0, %v3180_v28  ;;  %1467 = vmatmul.mubr.bf16.vlgmr.msra.gmra.mrb[48].mxu0 %v1433_v23  ;;  %1508 = vmatmul.mubr.bf16.vlgmr.msra.gmra.mrb[48].mxu1 %v1433_v23 }
 0x24f   :  { %3185 = vrcp.f32 %v1390_v29  ;;  %1526 = vmatpush1.bf16.msra.mxu0 %v3832_v51  ;;  %1567 = vmatpush1.bf16.msra.mxu1 %v3837_v52  ;;  %v3182_v51 = vpop.eup %3181 }
 0x250   :  { %3187 = vrcp.f32 %v1402_v50  ;;  %1527 = vmatprep.subr.bf16.mxu0 %v3844_v53  ;;  %1568 = vmatprep.subr.bf16.mxu1 %v3849_v54  ;;  %v3184_v52 = vpop.eup %3183 }
 0x251   :  { %1557 = vmatprep.mubr.bf16.mxu0 %v5427_v42  ;;  %1598 = vmatprep.mubr.bf16.mxu1 %v5427_v42 }
 0x253   :  { %1528 = vmatpush1.bf16.msra.mxu0 %v3858_v56  ;;  %1569 = vmatpush1.bf16.msra.mxu1 %v3863_v57  ;;  %v1416_v56 = vadd.f32 1.0, %v3182_v51 }
 0x254   :  { %1529 = vmatprep.subr.bf16.mxu0 %v3870_v58  ;;  %1570 = vmatprep.subr.bf16.mxu1 %v3875_v59 }
 0x255   :  { %3189 = vrcp.f32 %v1416_v56 }
 0x257   :  { %1530 = vmatpush1.bf16.msra.mxu0 %v3884_v60  ;;  %1571 = vmatpush1.bf16.msra.mxu1 %v3889_v61 }
 0x258   :  { %1531 = vmatprep.subr.bf16.mxu0 %v3896_v62  ;;  %1572 = vmatprep.subr.bf16.mxu1 %v3901_v63  ;;  %v4422_v63 = vld [vmem:[%s5299_s3] ss:$16 sps:$4 sm:$0xff]  }
 0x259   :  { %v3186_v53 = vpop.eup %3185 }
 0x25a   :  { %v3188_v54 = vpop.eup %3187  ;;  %v1423_v49 = vmul.f32 %v3186_v53, %v3184_v52 }
 0x25b   :  { %v1422_v57 = vmul.f32 %v3188_v54, %v4306_v34  ;;  %1532 = vmatpush1.bf16.msra.mxu0 %v3908_v0  ;;  %1573 = vmatpush1.bf16.msra.mxu1 %v3913_v2  ;;  %v4440_v0 = vld [vmem:[%s5299_s3 + $0x2c] ss:$16 sps:$4 sm:$0xff]   ;;  %v4448_v2 = vld [vmem:[%s5299_s3 + $0x20] ss:$16 sps:$4 sm:$0xff]   ;;  %v4526_v34 = vld [vmem:[%s5299_s3 + $0x88] ss:$16 sps:$4 sm:$0xff]  }
 0x25c   :  { %1533 = vmatprep.subr.bf16.mxu0 %v3920_v3  ;;  %1574 = vmatprep.subr.bf16.mxu1 %v3925_v4  ;;  %v4454_v3 = vld [vmem:[%s5299_s3 + $0x28] ss:$16 sps:$4 sm:$0xff]   ;;  %v4460_v4 = vld [vmem:[%s5299_s3 + $0x44] ss:$16 sps:$4 sm:$0xff]   ;;  %5533 = vst [vmem:[#allocation13_spill] sm:$0xff] %v4526_v34 }
 0x25d   :  { %v4400_v58 = vadd.f32 %v1423_v49, %v1422_v57 }
 0x25f   :  { %1534 = vmatpush1.bf16.msra.mxu0 %v3932_v5  ;;  %1575 = vmatpush1.bf16.msra.mxu1 %v3937_v6  ;;  %3191 = vtanh.f32 %v4400_v58  ;;  %v3190_v59 = vpop.eup %3189  ;;  %v4466_v5 = vld [vmem:[%s5299_s3 + $0x4c] ss:$16 sps:$4 sm:$0xff]   ;;  %v4472_v6 = vld [vmem:[%s5299_s3 + $0x40] ss:$16 sps:$4 sm:$0xff]  }
 0x260   :  { %1535 = vmatprep.subr.bf16.mxu0 %v3944_v7  ;;  %1576 = vmatprep.subr.bf16.mxu1 %v3949_v8  ;;  %v4478_v7 = vld [vmem:[%s5299_s3 + $0x48] ss:$16 sps:$4 sm:$0xff]   ;;  %v4484_v8 = vld [vmem:[%s5299_s3 + $0x64] ss:$16 sps:$4 sm:$0xff]  }
 0x261   :  { %5526 = vst [vmem:[#allocation36_spill] sm:$0xff] %v4484_v8 }
 0x263   :  { %1536 = vmatpush1.bf16.msra.mxu0 %v3956_v9  ;;  %1577 = vmatpush1.bf16.msra.mxu1 %v3961_v10  ;;  %v4490_v9 = vld [vmem:[%s5299_s3 + $0x6c] ss:$16 sps:$4 sm:$0xff]   ;;  %v4496_v10 = vld [vmem:[%s5299_s3 + $0x60] ss:$16 sps:$4 sm:$0xff]  }
 0x264   :  { %1537 = vmatprep.subr.bf16.mxu0 %v3968_v13  ;;  %1578 = vmatprep.subr.bf16.mxu1 %v3973_v14  ;;  %5527 = vst [vmem:[#allocation37_spill] sm:$0xff] %v4490_v9  ;;  %5528 = vst [vmem:[#allocation8_spill] sm:$0xff] %v4496_v10  ;;  %v4502_v13 = vld [vmem:[%s5299_s3 + $0x68] ss:$16 sps:$4 sm:$0xff]   ;;  %v4508_v14 = vld [vmem:[%s5299_s3 + $0x84] ss:$16 sps:$4 sm:$0xff]  }
 0x265   :  { %5529 = vst [vmem:[#allocation9_spill] sm:$0xff] %v4502_v13  ;;  %5530 = vst [vmem:[#allocation10_spill] sm:$0xff] %v4508_v14 }
 0x267   :  { %1538 = vmatpush1.bf16.msra.mxu0 %v3980_v15  ;;  %1579 = vmatpush1.bf16.msra.mxu1 %v5488_v38  ;;  %v4514_v15 = vld [vmem:[%s5299_s3 + $0x8c] ss:$16 sps:$4 sm:$0xff]   ;;  %v4532_v38 = vld [vmem:[%s5299_s3 + $0xa4] ss:$16 sps:$4 sm:$0xff]  }
 0x268   :  { %1539 = vmatprep.subr.bf16.mxu0 %v3992_v33  ;;  %1580 = vmatprep.subr.bf16.mxu1 %v5489_v45  ;;  %5531 = vst [vmem:[#allocation11_spill] sm:$0xff] %v4514_v15  ;;  %v4520_v33 = vld [vmem:[%s5299_s3 + $0x80] ss:$16 sps:$4 sm:$0xff]   ;;  %5534 = vst [vmem:[#allocation14_spill] sm:$0xff] %v4532_v38  ;;  %v4538_v45 = vld [vmem:[%s5299_s3 + $0xac] ss:$16 sps:$4 sm:$0xff]  }
 0x269   :  { %v3192_v60 = vpop.eup %3191  ;;  %5532 = vst [vmem:[#allocation12_spill] sm:$0xff] %v4520_v33  ;;  %5535 = vst [vmem:[#allocation15_spill] sm:$0xff] %v4538_v45 }
 0x26a   :  { %v1428_v61 = vmul.f32 %v3192_v60, %v3190_v59 }
 0x26b   :  { %1540 = vmatpush1.bf16.msra.mxu0 %v4004_v1  ;;  %1581 = vmatpush1.bf16.msra.mxu1 %v4009_v55  ;;  %v4428_v1 = vld [vmem:[%s5299_s3 + $0x8] ss:$16 sps:$4 sm:$0xff]   ;;  %v4434_v55 = vld [vmem:[%s5299_s3 + $0x24] ss:$16 sps:$4 sm:$0xff]  }
 0x26c   :  { %v1524_v62 = vpack.c.bf16 %v1428_v61, %v1428_v61  ;;  %1664 = vmatprep.subr.bf16.mxu0 %v4326_v24  ;;  %1705 = vmatprep.subr.bf16.mxu1 %v4332_v30 }
 0x26e   :  { %1558 = vmatmul.mubr.bf16.vlgmr.msra.gmra.mrb[52].mxu0 %v1524_v62  ;;  %1599 = vmatmul.mubr.bf16.vlgmr.msra.gmra.mrb[52].mxu1 %v1524_v62 }
 0x26f   :  { %1665 = vmatpush1.bf16.msra.mxu0 %v4422_v63  ;;  %1706 = vmatpush1.bf16.msra.mxu1 %v4428_v1 }
 0x270   :  { %1666 = vmatprep.subr.bf16.mxu0 %v4434_v55  ;;  %1707 = vmatprep.subr.bf16.mxu1 %v4440_v0 }
 0x271   :  { %1696 = vmatprep.mubr.bf16.mxu0 %v5427_v42  ;;  %1737 = vmatprep.mubr.bf16.mxu1 %v5427_v42 }
 0x273   :  { %1667 = vmatpush1.bf16.msra.mxu0 %v4448_v2  ;;  %1708 = vmatpush1.bf16.msra.mxu1 %v4454_v3 }
 0x274   :  { %1668 = vmatprep.subr.bf16.mxu0 %v4460_v4  ;;  %1709 = vmatprep.subr.bf16.mxu1 %v4466_v5 }
 0x277   :  { %1669 = vmatpush1.bf16.msra.mxu0 %v4472_v6  ;;  %1710 = vmatpush1.bf16.msra.mxu1 %v4478_v7 }
 0x278   :  { %1670 = vmatprep.subr.bf16.mxu0 %v4484_v8  ;;  %1711 = vmatprep.subr.bf16.mxu1 %v4490_v9 }
 0x27b   :  { %1671 = vmatpush1.bf16.msra.mxu0 %v4496_v10  ;;  %1712 = vmatpush1.bf16.msra.mxu1 %v4502_v13 }
 0x27c   :  { %1672 = vmatprep.subr.bf16.mxu0 %v4508_v14  ;;  %1713 = vmatprep.subr.bf16.mxu1 %v4514_v15 }
 0x27f   :  { %1673 = vmatpush1.bf16.msra.mxu0 %v4520_v33  ;;  %1714 = vmatpush1.bf16.msra.mxu1 %v4526_v34 }
 0x280   :  { %1674 = vmatprep.subr.bf16.mxu0 %v4532_v38  ;;  %1715 = vmatprep.subr.bf16.mxu1 %v4538_v45 }
 0x283   :  { %1675 = vmatpush1.bf16.msra.mxu0 %v4544_v41  ;;  %1716 = vmatpush1.bf16.msra.mxu1 %v4550_v37 }
 0x284   :  { %1676 = vmatprep.subr.bf16.mxu0 %v4556_v12  ;;  %1717 = vmatprep.subr.bf16.mxu1 %v4562_v36 }
 0x287   :  { %1677 = vmatpush1.bf16.msra.mxu0 %v4568_v16  ;;  %1718 = vmatpush1.bf16.msra.mxu1 %v4574_v17 }
 0x288   :  { %1678 = vmatprep.subr.bf16.mxu0 %v4580_v39  ;;  %1719 = vmatprep.subr.bf16.mxu1 %v4586_v18 }
 0x28b   :  { %1679 = vmatpush1.bf16.msra.mxu0 %v4592_v19  ;;  %1720 = vmatpush1.bf16.msra.mxu1 %v4598_v44 }
 0x28c   :  { %1755 = vmatprep.subr.bf16.mxu0 %v4604_v35  ;;  %1796 = vmatprep.subr.bf16.mxu1 %v4610_v11 }
 0x321   :  { %v1468_v40 = vpop.f32.mrb[48].mxu0  ;;  %v1509_v27 = vpop.f32.mrb[48].mxu1 }
 0x322   :  { %v1516_v43 = vadd.f32 %v1468_v40, %v5548_v48  ;;  %v1518_v26 = vadd.f32 %v1509_v27, %v5549_v31  ;;  %v1470_v22 = vpop.f32.mrb[49].mxu0  ;;  %v1511_v21 = vpop.f32.mrb[49].mxu1 }
 0x323   :  { %v1517_v46 = vadd.f32 %v1470_v22, %v5550_v32  ;;  %v1519_v25 = vadd.f32 %v1511_v21, %v5551_v20  ;;  %v1472_v23 = vpop.f32.mrb[50].mxu0  ;;  %v1513_v28 = vpop.f32.mrb[50].mxu1  ;;  %v5552_v21 = vld [vmem:[#allocation86_spill] sm:$0xff] }
 0x324   :  { %v2974_v29 = vmul.f32 -1.442695, %v1516_v43  ;;  %v1473_v50 = vpop.f32.mrb[51].mxu0  ;;  %v1514_v51 = vpop.f32.mrb[51].mxu1  ;;  %v5554_v23 = vld [vmem:[#allocation88_spill] sm:$0xff] }
 0x325   :  { %v2976_v52 = vmul.f32 -1.442695, %v1517_v46  ;;  %v2978_v53 = vmul.f32 -1.442695, %v1519_v25  ;;  %v5553_v46 = vld [vmem:[#allocation87_spill] sm:$0xff] }
 0x326   :  { %3193 = vpow2.f32 %v2974_v29  ;;  %v5555_v29 = vld [vmem:[#allocation89_spill] sm:$0xff] }
 0x327   :  { %3195 = vpow2.f32 %v2976_v52 }
 0x328   :  { %3197 = vpow2.f32 %v2978_v53 }
 0x329   :  { %3199 = vtanh.f32 %v1518_v26 }
 0x330   :  { %v3194_v54 = vpop.eup %3193 }
 0x331   :  { %v3196_v49 = vpop.eup %3195  ;;  %v1614_v56 = vadd.f32 1.0, %v3194_v54 }
 0x332   :  { %v1626_v57 = vadd.f32 1.0, %v3196_v49  ;;  %v3198_v59 = vpop.eup %3197 }
 0x333   :  { %3201 = vrcp.f32 %v1614_v56  ;;  %v3200_v60 = vpop.eup %3199  ;;  %v1640_v27 = vadd.f32 1.0, %v3198_v59 }
 0x334   :  { %3203 = vrcp.f32 %v1626_v57 }
 0x335   :  { %3205 = vrcp.f32 %v1640_v27 }
 0x33d   :  { %v3202_v61 = vpop.eup %3201 }
 0x33e   :  { %v3204_v62 = vpop.eup %3203  ;;  %v1650_v40 = vmul.f32 %v3202_v61, %v3200_v60 }
 0x33f   :  { %v1649_v48 = vmul.f32 %v3204_v62, %v4374_v47  ;;  %v3206_v56 = vpop.eup %3205 }
 0x341   :  { %v4618_v43 = vadd.f32 %v1650_v40, %v1649_v48  ;;  %v1559_v31 = vpop.f32.mrb[52].mxu0  ;;  %v1600_v22 = vpop.f32.mrb[52].mxu1 }
 0x342   :  { %v1607_v32 = vadd.f32 %v1559_v31, %v5552_v21  ;;  %v1609_v26 = vadd.f32 %v1600_v22, %v5553_v46  ;;  %v1561_v20 = vpop.f32.mrb[53].mxu0  ;;  %v1602_v25 = vpop.f32.mrb[53].mxu1  ;;  %v4628_v31 = vld [vmem:[%s5299_s3 + $0x100] ss:$16 sps:$4 sm:$0xff]   ;;  %v4634_v22 = vld [vmem:[%s5299_s3 + $0x108] ss:$16 sps:$4 sm:$0xff]  }
 0x343   :  { %v1608_v28 = vadd.f32 %v1561_v20, %v5554_v23  ;;  %v1610_v50 = vadd.f32 %v1602_v25, %v5555_v29  ;;  %v1563_v51 = vpop.f32.mrb[54].mxu0  ;;  %v1604_v52 = vpop.f32.mrb[54].mxu1  ;;  %3207 = vtanh.f32 %v4618_v43  ;;  %v4640_v21 = vld [vmem:[%s5299_s3 + $0x124] ss:$16 sps:$4 sm:$0xff]   ;;  %v4654_v46 = vld [vmem:[%s5299_s3 + $0x120] ss:$16 sps:$4 sm:$0xff]  }
 0x344   :  { %v2975_v47 = vmul.f32 -1.442695, %v1607_v32  ;;  %v1564_v53 = vpop.f32.mrb[55].mxu0  ;;  %v1605_v54 = vpop.f32.mrb[55].mxu1  ;;  %v4646_v32 = vld [vmem:[%s5299_s3 + $0x12c] ss:$16 sps:$4 sm:$0xff]  }
 0x345   :  { %v2977_v49 = vmul.f32 -1.442695, %v1608_v28  ;;  %v2979_v59 = vmul.f32 -1.442695, %v1610_v50  ;;  %v4666_v20 = vld [vmem:[%s5299_s3 + $0x144] ss:$16 sps:$4 sm:$0xff]  }
 0x346   :  { %3209 = vpow2.f32 %v2975_v47  ;;  %v4672_v25 = vld [vmem:[%s5299_s3 + $0x14c] ss:$16 sps:$4 sm:$0xff]   ;;  %v4678_v28 = vld [vmem:[%s5299_s3 + $0x140] ss:$16 sps:$4 sm:$0xff]   ;;  %v4684_v29 = vld [vmem:[%s5299_s3 + $0x148] ss:$16 sps:$4 sm:$0xff]  }
 0x347   :  { %3211 = vpow2.f32 %v2977_v49  ;;  %v4690_v51 = vld [vmem:[%s5299_s3 + $0x164] ss:$16 sps:$4 sm:$0xff]   ;;  %v4696_v52 = vld [vmem:[%s5299_s3 + $0x16c] ss:$16 sps:$4 sm:$0xff]  }
 0x348   :  { %3213 = vpow2.f32 %v2979_v59  ;;  %v4709_v59 = vld [vmem:[%s5299_s3 + $0x168] ss:$16 sps:$4 sm:$0xff]  }
 0x349   :  { %3215 = vtanh.f32 %v1609_v26  ;;  %v4660_v26 = vld [vmem:[%s5299_s3 + $0x128] ss:$16 sps:$4 sm:$0xff]  }
 0x34d   :  { %v3208_v57 = vpop.eup %3207 }
 0x34e   :  { %v1656_v60 = vmul.f32 %v3208_v57, %v3206_v56  ;;  %v4703_v57 = vld [vmem:[%s5299_s3 + $0x160] ss:$16 sps:$4 sm:$0xff]  }
 0x350   :  { %v3210_v61 = vpop.eup %3209  ;;  %v1663_v62 = vpack.c.bf16 %v1656_v60, %v1656_v60  ;;  %v4715_v60 = vld [vmem:[%s5299_s3 + $0x184] ss:$16 sps:$4 sm:$0xff]  }
 0x351   :  { %v3212_v40 = vpop.eup %3211  ;;  %v1620_v27 = vadd.f32 1.0, %v3210_v61 }
 0x352   :  { %v1632_v48 = vadd.f32 1.0, %v3212_v40  ;;  %1697 = vmatmul.mubr.bf16.vlgmr.msra.gmra.mrb[56].mxu0 %v1663_v62  ;;  %1738 = vmatmul.mubr.bf16.vlgmr.msra.gmra.mrb[56].mxu1 %v1663_v62  ;;  %v3214_v23 = vpop.eup %3213  ;;  %v4729_v62 = vld [vmem:[%s5299_s3 + $0x180] ss:$16 sps:$4 sm:$0xff]   ;;  %v4735_v40 = vld [vmem:[%s5299_s3 + $0x188] ss:$16 sps:$4 sm:$0xff]  }
 0x353   :  { %3217 = vrcp.f32 %v1620_v27  ;;  %1756 = vmatpush1.bf16.msra.mxu0 %v4628_v31  ;;  %1797 = vmatpush1.bf16.msra.mxu1 %v4634_v22  ;;  %v3216_v50 = vpop.eup %3215  ;;  %v1646_v49 = vadd.f32 1.0, %v3214_v23  ;;  %v4742_v27 = vld [vmem:[%s5299_s3 + $0x1a4] ss:$16 sps:$4 sm:$0xff]   ;;  %v4754_v23 = vld [vmem:[%s5299_s3 + $0x1a0] ss:$16 sps:$4 sm:$0xff]  }
 0x354   :  { %3219 = vrcp.f32 %v1632_v48  ;;  %1757 = vmatprep.subr.bf16.mxu0 %v4640_v21  ;;  %1798 = vmatprep.subr.bf16.mxu1 %v4646_v32  ;;  %v4748_v48 = vld [vmem:[%s5299_s3 + $0x1ac] ss:$16 sps:$4 sm:$0xff]   ;;  %5556 = vst [vmem:[#allocation28_spill] sm:$0xff] %v4754_v23 }
 0x355   :  { %1787 = vmatprep.mubr.bf16.mxu0 %v5427_v42  ;;  %1828 = vmatprep.mubr.bf16.mxu1 %v5427_v42  ;;  %3221 = vrcp.f32 %v1646_v49  ;;  %v4784_v49 = vld [vmem:[%s5299_s3 + $0x1c8] ss:$16 sps:$4 sm:$0xff]  }
 0x356   :  { %5561 = vst [vmem:[#allocation33_spill] sm:$0xff] %v4784_v49 }
 0x357   :  { %1758 = vmatpush1.bf16.msra.mxu0 %v4654_v46  ;;  %1799 = vmatpush1.bf16.msra.mxu1 %v4660_v26 }
 0x358   :  { %1759 = vmatprep.subr.bf16.mxu0 %v4666_v20  ;;  %1800 = vmatprep.subr.bf16.mxu1 %v4672_v25 }
 0x35b   :  { %1760 = vmatpush1.bf16.msra.mxu0 %v4678_v28  ;;  %1801 = vmatpush1.bf16.msra.mxu1 %v4684_v29 }
 0x35c   :  { %1761 = vmatprep.subr.bf16.mxu0 %v4690_v51  ;;  %1802 = vmatprep.subr.bf16.mxu1 %v4696_v52 }
 0x35d   :  { %v3218_v47 = vpop.eup %3217 }
 0x35e   :  { %v3220_v53 = vpop.eup %3219  ;;  %v1653_v54 = vmul.f32 %v3218_v47, %v3216_v50  ;;  %v4760_v50 = vld [vmem:[%s5299_s3 + $0x1a8] ss:$16 sps:$4 sm:$0xff]   ;;  %v4766_v47 = vld [vmem:[%s5299_s3 + $0x1c4] ss:$16 sps:$4 sm:$0xff]  }
 0x35f   :  { %v1652_v56 = vmul.f32 %v3220_v53, %v4400_v58  ;;  %1762 = vmatpush1.bf16.msra.mxu0 %v4703_v57  ;;  %1803 = vmatpush1.bf16.msra.mxu1 %v4709_v59  ;;  %v4721_v58 = vld [vmem:[%s5299_s3 + $0x18c] ss:$16 sps:$4 sm:$0xff]   ;;  %5557 = vst [vmem:[#allocation29_spill] sm:$0xff] %v4760_v50  ;;  %5558 = vst [vmem:[#allocation30_spill] sm:$0xff] %v4766_v47 }
 0x360   :  { %1763 = vmatprep.subr.bf16.mxu0 %v4715_v60  ;;  %1804 = vmatprep.subr.bf16.mxu1 %v4721_v58  ;;  %v4772_v53 = vld [vmem:[%s5299_s3 + $0x1cc] ss:$16 sps:$4 sm:$0xff]  }
 0x361   :  { %v4724_v61 = vadd.f32 %v1653_v54, %v1652_v56  ;;  %5559 = vst [vmem:[#allocation31_spill] sm:$0xff] %v4772_v53  ;;  %v4778_v54 = vld [vmem:[%s5299_s3 + $0x1c0] ss:$16 sps:$4 sm:$0xff]   ;;  %v3222_v56 = vpop.eup %3221 }
 0x362   :  { %5560 = vst [vmem:[#allocation32_spill] sm:$0xff] %v4778_v54 }
 0x363   :  { %1764 = vmatpush1.bf16.msra.mxu0 %v4729_v62  ;;  %1805 = vmatpush1.bf16.msra.mxu1 %v4735_v40  ;;  %3223 = vtanh.f32 %v4724_v61 }
 0x364   :  { %1765 = vmatprep.subr.bf16.mxu0 %v4742_v27  ;;  %1806 = vmatprep.subr.bf16.mxu1 %v4748_v48 }
 0x367   :  { %1766 = vmatpush1.bf16.msra.mxu0 %v4754_v23  ;;  %1807 = vmatpush1.bf16.msra.mxu1 %v4760_v50 }
 0x368   :  { %1767 = vmatprep.subr.bf16.mxu0 %v4766_v47  ;;  %1808 = vmatprep.subr.bf16.mxu1 %v4772_v53  ;;  %v4790_v47 = vld [vmem:[%s5299_s3 + $0x1e4] ss:$16 sps:$4 sm:$0xff]   ;;  %v4796_v53 = vld [vmem:[%s5299_s3 + $0x1ec] ss:$16 sps:$4 sm:$0xff]  }
 0x369   :  { %5562 = vst [vmem:[#allocation34_spill] sm:$0xff] %v4790_v47 }
 0x36b   :  { %1768 = vmatpush1.bf16.msra.mxu0 %v4778_v54  ;;  %1809 = vmatpush1.bf16.msra.mxu1 %v4784_v49  ;;  %v4802_v49 = vld [vmem:[%s5299_s3 + $0x1e0] ss:$16 sps:$4 sm:$0xff]  }
 0x36c   :  { %1769 = vmatprep.subr.bf16.mxu0 %v4790_v47  ;;  %1810 = vmatprep.subr.bf16.mxu1 %v4796_v53  ;;  %v4808_v47 = vld [vmem:[%s5299_s3 + $0x1e8] ss:$16 sps:$4 sm:$0xff]  }
 0x36d   :  { %v3224_v54 = vpop.eup %3223 }
 0x36e   :  { %v1658_v50 = vmul.f32 %v3224_v54, %v3222_v56  ;;  %v5563_v54 = vld [vmem:[#allocation46_spill] sm:$0xff] }
 0x36f   :  { %1770 = vmatpush1.bf16.msra.mxu0 %v4802_v49  ;;  %1811 = vmatpush1.bf16.msra.mxu1 %v4808_v47 }
 0x370   :  { %v1754_v23 = vpack.c.bf16 %v1658_v50, %v1658_v50  ;;  %1894 = vmatprep.subr.bf16.mxu0 %v4326_v24  ;;  %1935 = vmatprep.subr.bf16.mxu1 %v4332_v30 }
 0x372   :  { %1788 = vmatmul.mubr.bf16.vlgmr.msra.gmra.mrb[60].mxu0 %v1754_v23  ;;  %1829 = vmatmul.mubr.bf16.vlgmr.msra.gmra.mrb[60].mxu1 %v1754_v23 }
 0x373   :  { %1895 = vmatpush1.bf16.msra.mxu0 %v4422_v63  ;;  %1936 = vmatpush1.bf16.msra.mxu1 %v4428_v1 }
 0x374   :  { %1896 = vmatprep.subr.bf16.mxu0 %v4434_v55  ;;  %1937 = vmatprep.subr.bf16.mxu1 %v4440_v0 }
 0x375   :  { %1926 = vmatprep.mubr.bf16.mxu0 %v5427_v42  ;;  %1967 = vmatprep.mubr.bf16.mxu1 %v5427_v42 }
 0x377   :  { %1897 = vmatpush1.bf16.msra.mxu0 %v4448_v2  ;;  %1938 = vmatpush1.bf16.msra.mxu1 %v4454_v3 }
 0x378   :  { %1898 = vmatprep.subr.bf16.mxu0 %v4460_v4  ;;  %1939 = vmatprep.subr.bf16.mxu1 %v4466_v5 }
 0x37b   :  { %1899 = vmatpush1.bf16.msra.mxu0 %v4472_v6  ;;  %1940 = vmatpush1.bf16.msra.mxu1 %v4478_v7 }
 0x37c   :  { %1900 = vmatprep.subr.bf16.mxu0 %v4484_v8  ;;  %1941 = vmatprep.subr.bf16.mxu1 %v4490_v9 }
 0x37f   :  { %1901 = vmatpush1.bf16.msra.mxu0 %v4496_v10  ;;  %1942 = vmatpush1.bf16.msra.mxu1 %v4502_v13 }
 0x380   :  { %1902 = vmatprep.subr.bf16.mxu0 %v4508_v14  ;;  %1943 = vmatprep.subr.bf16.mxu1 %v4514_v15 }
 0x383   :  { %1903 = vmatpush1.bf16.msra.mxu0 %v4520_v33  ;;  %1944 = vmatpush1.bf16.msra.mxu1 %v4526_v34 }
 0x384   :  { %1904 = vmatprep.subr.bf16.mxu0 %v4532_v38  ;;  %1945 = vmatprep.subr.bf16.mxu1 %v4538_v45 }
 0x387   :  { %1905 = vmatpush1.bf16.msra.mxu0 %v4544_v41  ;;  %1946 = vmatpush1.bf16.msra.mxu1 %v4550_v37  ;;  %v5565_v37 = vld [vmem:[#allocation48_spill] sm:$0xff]  ;;  %v5566_v41 = vld [vmem:[#allocation49_spill] sm:$0xff] }
 0x388   :  { %1906 = vmatprep.subr.bf16.mxu0 %v4556_v12  ;;  %1947 = vmatprep.subr.bf16.mxu1 %v4562_v36  ;;  %v5564_v36 = vld [vmem:[#allocation47_spill] sm:$0xff] }
 0x38b   :  { %1907 = vmatpush1.bf16.msra.mxu0 %v4568_v16  ;;  %1948 = vmatpush1.bf16.msra.mxu1 %v4574_v17 }
 0x38c   :  { %1908 = vmatprep.subr.bf16.mxu0 %v4580_v39  ;;  %1949 = vmatprep.subr.bf16.mxu1 %v4586_v18 }
 0x38f   :  { %1909 = vmatpush1.bf16.msra.mxu0 %v4592_v19  ;;  %1950 = vmatpush1.bf16.msra.mxu1 %v4598_v44 }
 0x390   :  { %1985 = vmatprep.subr.bf16.mxu0 %v4604_v35  ;;  %2026 = vmatprep.subr.bf16.mxu1 %v4610_v11 }
 0x425   :  { %v1698_v23 = vpop.f32.mrb[56].mxu0  ;;  %v1739_v50 = vpop.f32.mrb[56].mxu1 }
 0x426   :  { %v1746_v56 = vadd.f32 %v1698_v23, %v5563_v54  ;;  %v1748_v16 = vadd.f32 %v1739_v50, %v5564_v36  ;;  %v1700_v12 = vpop.f32.mrb[57].mxu0  ;;  %v1741_v17 = vpop.f32.mrb[57].mxu1  ;;  %v5569_v50 = vld [vmem:[#allocation84_spill] sm:$0xff] }
 0x427   :  { %v1747_v39 = vadd.f32 %v1700_v12, %v5565_v37  ;;  %v1749_v18 = vadd.f32 %v1741_v17, %v5566_v41  ;;  %v1702_v45 = vpop.f32.mrb[58].mxu0  ;;  %v1743_v19 = vpop.f32.mrb[58].mxu1 }
 0x428   :  { %v2980_v38 = vmul.f32 -1.442695, %v1746_v56  ;;  %v1703_v44 = vpop.f32.mrb[59].mxu0  ;;  %v1744_v34 = vpop.f32.mrb[59].mxu1  ;;  %v5570_v56 = vld [vmem:[#allocation85_spill] sm:$0xff] }
 0x429   :  { %v2982_v35 = vmul.f32 -1.442695, %v1747_v39  ;;  %v2984_v11 = vmul.f32 -1.442695, %v1749_v18  ;;  %v5567_v44 = vld [vmem:[#allocation82_spill] sm:$0xff] }
 0x42a   :  { %3225 = vpow2.f32 %v2980_v38 }
 0x42b   :  { %3227 = vpow2.f32 %v2982_v35  ;;  %v5568_v35 = vld [vmem:[#allocation83_spill] sm:$0xff] }
 0x42c   :  { %3229 = vpow2.f32 %v2984_v11 }
 0x42d   :  { %3231 = vtanh.f32 %v1748_v16 }
 0x434   :  { %v3226_v33 = vpop.eup %3225 }
 0x435   :  { %v3228_v15 = vpop.eup %3227  ;;  %v1844_v23 = vadd.f32 1.0, %v3226_v33 }
 0x436   :  { %v1856_v36 = vadd.f32 1.0, %v3228_v15  ;;  %v3230_v37 = vpop.eup %3229 }
 0x437   :  { %3233 = vrcp.f32 %v1844_v23  ;;  %v3232_v12 = vpop.eup %3231  ;;  %v1870_v19 = vadd.f32 1.0, %v3230_v37 }
 0x438   :  { %3235 = vrcp.f32 %v1856_v36 }
 0x439   :  { %3237 = vrcp.f32 %v1870_v19 }
 0x441   :  { %v3234_v41 = vpop.eup %3233 }
 0x442   :  { %v3236_v45 = vpop.eup %3235  ;;  %v1880_v17 = vmul.f32 %v3234_v41, %v3232_v12 }
 0x443   :  { %v1879_v34 = vmul.f32 %v3236_v45, %v4618_v43 }
 0x445   :  { %v4852_v39 = vadd.f32 %v1880_v17, %v1879_v34  ;;  %v1789_v38 = vpop.f32.mrb[60].mxu0  ;;  %v1830_v18 = vpop.f32.mrb[60].mxu1 }
 0x446   :  { %v1837_v33 = vadd.f32 %v1789_v38, %v5567_v44  ;;  %v1839_v16 = vadd.f32 %v1830_v18, %v5568_v35  ;;  %v1791_v15 = vpop.f32.mrb[61].mxu0  ;;  %v1832_v11 = vpop.f32.mrb[61].mxu1 }
 0x447   :  { %v1838_v54 = vadd.f32 %v1791_v15, %v5569_v50  ;;  %v1840_v23 = vadd.f32 %v1832_v11, %v5570_v56  ;;  %v1793_v36 = vpop.f32.mrb[62].mxu0  ;;  %v1834_v12 = vpop.f32.mrb[62].mxu1  ;;  %3239 = vtanh.f32 %v4852_v39 }
 0x448   :  { %v2981_v43 = vmul.f32 -1.442695, %v1837_v33  ;;  %v1794_v37 = vpop.f32.mrb[63].mxu0  ;;  %v1835_v41 = vpop.f32.mrb[63].mxu1 }
 0x449   :  { %v2983_v45 = vmul.f32 -1.442695, %v1838_v54  ;;  %v3238_v17 = vpop.eup %3237  ;;  %v2985_v34 = vmul.f32 -1.442695, %v1840_v23  ;;  %v5573_v37 = vld [vmem:[#allocation30_spill] sm:$0xff]  ;;  %v5574_v41 = vld [vmem:[#allocation31_spill] sm:$0xff] }
 0x44a   :  { %3241 = vpow2.f32 %v2981_v43  ;;  %v5572_v43 = vld [vmem:[#allocation29_spill] sm:$0xff] }
 0x44b   :  { %3243 = vpow2.f32 %v2983_v45  ;;  %v5575_v45 = vld [vmem:[#allocation32_spill] sm:$0xff] }
 0x44c   :  { %3245 = vpow2.f32 %v2985_v34  ;;  %v5577_v34 = vld [vmem:[#allocation34_spill] sm:$0xff] }
 0x44d   :  { %3247 = vtanh.f32 %v1839_v16 }
 0x451   :  { %v3240_v19 = vpop.eup %3239 }
 0x452   :  { %v1886_v38 = vmul.f32 %v3240_v19, %v3238_v17  ;;  %v5576_v17 = vld [vmem:[#allocation33_spill] sm:$0xff] }
 0x454   :  { %v3242_v18 = vpop.eup %3241  ;;  %v1893_v44 = vpack.c.bf16 %v1886_v38, %v1886_v38 }
 0x455   :  { %v3244_v35 = vpop.eup %3243  ;;  %v1850_v15 = vadd.f32 1.0, %v3242_v18 }
 0x456   :  { %v1862_v11 = vadd.f32 1.0, %v3244_v35  ;;  %1927 = vmatmul.mubr.bf16.vlgmr.msra.gmra.mrb[64].mxu0 %v1893_v44  ;;  %1968 = vmatmul.mubr.bf16.vlgmr.msra.gmra.mrb[64].mxu1 %v1893_v44  ;;  %v3246_v33 = vpop.eup %3245  ;;  %v5580_v35 = vld [vmem:[#allocation13_spill] sm:$0xff] }
 0x457   :  { %3249 = vrcp.f32 %v1850_v15  ;;  %1986 = vmatpush1.bf16.msra.mxu0 %v4628_v31  ;;  %2027 = vmatpush1.bf16.msra.mxu1 %v4634_v22  ;;  %v3248_v16 = vpop.eup %3247  ;;  %v1876_v23 = vadd.f32 1.0, %v3246_v33  ;;  %v5581_v15 = vld [vmem:[#allocation14_spill] sm:$0xff]  ;;  %v5583_v33 = vld [vmem:[#allocation16_spill] sm:$0xff] }
 0x458   :  { %3251 = vrcp.f32 %v1862_v11  ;;  %1987 = vmatprep.subr.bf16.mxu0 %v4640_v21  ;;  %2028 = vmatprep.subr.bf16.mxu1 %v4646_v32  ;;  %v5582_v11 = vld [vmem:[#allocation15_spill] sm:$0xff] }
 0x459   :  { %2017 = vmatprep.mubr.bf16.mxu0 %v5427_v42  ;;  %2058 = vmatprep.mubr.bf16.mxu1 %v5427_v42  ;;  %3253 = vrcp.f32 %v1876_v23  ;;  %v5588_v23 = vld [vmem:[#allocation21_spill] sm:$0xff] }
 0x45b   :  { %1988 = vmatpush1.bf16.msra.mxu0 %v4654_v46  ;;  %2029 = vmatpush1.bf16.msra.mxu1 %v4660_v26 }
 0x45c   :  { %1989 = vmatprep.subr.bf16.mxu0 %v4666_v20  ;;  %2030 = vmatprep.subr.bf16.mxu1 %v4672_v25 }
 0x45f   :  { %1990 = vmatpush1.bf16.msra.mxu0 %v4678_v28  ;;  %2031 = vmatpush1.bf16.msra.mxu1 %v4684_v29 }
 0x460   :  { %1991 = vmatprep.subr.bf16.mxu0 %v4690_v51  ;;  %2032 = vmatprep.subr.bf16.mxu1 %v4696_v52 }
 0x461   :  { %v3250_v50 = vpop.eup %3249 }
 0x462   :  { %v3252_v54 = vpop.eup %3251  ;;  %v1883_v56 = vmul.f32 %v3250_v50, %v3248_v16  ;;  %v5584_v16 = vld [vmem:[#allocation17_spill] sm:$0xff]  ;;  %v5585_v50 = vld [vmem:[#allocation18_spill] sm:$0xff] }
 0x463   :  { %v1882_v36 = vmul.f32 %v3252_v54, %v4724_v61  ;;  %1992 = vmatpush1.bf16.msra.mxu0 %v4703_v57  ;;  %2033 = vmatpush1.bf16.msra.mxu1 %v4709_v59  ;;  %v5571_v61 = vld [vmem:[#allocation28_spill] sm:$0xff]  ;;  %v3254_v19 = vpop.eup %3253  ;;  %v5586_v54 = vld [vmem:[#allocation19_spill] sm:$0xff] }
 0x464   :  { %1993 = vmatprep.subr.bf16.mxu0 %v4715_v60  ;;  %2034 = vmatprep.subr.bf16.mxu1 %v4721_v58 }
 0x465   :  { %v4878_v12 = vadd.f32 %v1883_v56, %v1882_v36  ;;  %v5587_v56 = vld [vmem:[#allocation20_spill] sm:$0xff]  ;;  %v5589_v36 = vld [vmem:[#allocation22_spill] sm:$0xff] }
 0x467   :  { %1994 = vmatpush1.bf16.msra.mxu0 %v4729_v62  ;;  %2035 = vmatpush1.bf16.msra.mxu1 %v4735_v40  ;;  %3255 = vtanh.f32 %v4878_v12 }
 0x468   :  { %1995 = vmatprep.subr.bf16.mxu0 %v4742_v27  ;;  %2036 = vmatprep.subr.bf16.mxu1 %v4748_v48 }
 0x46b   :  { %1996 = vmatpush1.bf16.msra.mxu0 %v5571_v61  ;;  %2037 = vmatpush1.bf16.msra.mxu1 %v5572_v43 }
 0x46c   :  { %1997 = vmatprep.subr.bf16.mxu0 %v5573_v37  ;;  %2038 = vmatprep.subr.bf16.mxu1 %v5574_v41 }
 0x46f   :  { %1998 = vmatpush1.bf16.msra.mxu0 %v5575_v45  ;;  %2039 = vmatpush1.bf16.msra.mxu1 %v5576_v17 }
 0x470   :  { %1999 = vmatprep.subr.bf16.mxu0 %v5577_v34  ;;  %2040 = vmatprep.subr.bf16.mxu1 %v4796_v53 }
 0x471   :  { %v3256_v38 = vpop.eup %3255 }
 0x472   :  { %v1888_v18 = vmul.f32 %v3256_v38, %v3254_v19  ;;  %v5590_v19 = vld [vmem:[#allocation23_spill] sm:$0xff]  ;;  %v5591_v38 = vld [vmem:[#allocation24_spill] sm:$0xff] }
 0x473   :  { %2000 = vmatpush1.bf16.msra.mxu0 %v4802_v49  ;;  %2041 = vmatpush1.bf16.msra.mxu1 %v4808_v47 }
 0x474   :  { %v1984_v44 = vpack.c.bf16 %v1888_v18, %v1888_v18  ;;  %2124 = vmatprep.subr.bf16.mxu0 %v4326_v24  ;;  %2165 = vmatprep.subr.bf16.mxu1 %v4332_v30  ;;  %v5578_v24 = vld [vmem:[#allocation11_spill] sm:$0xff]  ;;  %v5579_v30 = vld [vmem:[#allocation12_spill] sm:$0xff]  ;;  %v5592_v18 = vld [vmem:[#allocation25_spill] sm:$0xff] }
 0x476   :  { %2018 = vmatmul.mubr.bf16.vlgmr.msra.gmra.mrb[68].mxu0 %v1984_v44  ;;  %2059 = vmatmul.mubr.bf16.vlgmr.msra.gmra.mrb[68].mxu1 %v1984_v44  ;;  %v5593_v44 = vld [vmem:[#allocation26_spill] sm:$0xff] }
 0x477   :  { %2125 = vmatpush1.bf16.msra.mxu0 %v4422_v63  ;;  %2166 = vmatpush1.bf16.msra.mxu1 %v4428_v1 }
 0x478   :  { %2126 = vmatprep.subr.bf16.mxu0 %v4434_v55  ;;  %2167 = vmatprep.subr.bf16.mxu1 %v4440_v0 }
 0x479   :  { %2156 = vmatprep.mubr.bf16.mxu0 %v5427_v42  ;;  %2197 = vmatprep.mubr.bf16.mxu1 %v5427_v42 }
 0x47b   :  { %2127 = vmatpush1.bf16.msra.mxu0 %v4448_v2  ;;  %2168 = vmatpush1.bf16.msra.mxu1 %v4454_v3 }
 0x47c   :  { %2128 = vmatprep.subr.bf16.mxu0 %v4460_v4  ;;  %2169 = vmatprep.subr.bf16.mxu1 %v4466_v5 }
 0x47f   :  { %2129 = vmatpush1.bf16.msra.mxu0 %v4472_v6  ;;  %2170 = vmatpush1.bf16.msra.mxu1 %v4478_v7 }
 0x480   :  { %2130 = vmatprep.subr.bf16.mxu0 %v4484_v8  ;;  %2171 = vmatprep.subr.bf16.mxu1 %v4490_v9 }
 0x483   :  { %2131 = vmatpush1.bf16.msra.mxu0 %v4496_v10  ;;  %2172 = vmatpush1.bf16.msra.mxu1 %v4502_v13 }
 0x484   :  { %2132 = vmatprep.subr.bf16.mxu0 %v4508_v14  ;;  %2173 = vmatprep.subr.bf16.mxu1 %v5578_v24  ;;  %v5598_v24 = vld [vmem:[#allocation53_spill] sm:$0xff] }
 0x487   :  { %2133 = vmatpush1.bf16.msra.mxu0 %v5579_v30  ;;  %2174 = vmatpush1.bf16.msra.mxu1 %v5580_v35  ;;  %v5597_v30 = vld [vmem:[#allocation52_spill] sm:$0xff] }
 0x488   :  { %2134 = vmatprep.subr.bf16.mxu0 %v5581_v15  ;;  %2175 = vmatprep.subr.bf16.mxu1 %v5582_v11  ;;  %v5595_v11 = vld [vmem:[#allocation50_spill] sm:$0xff]  ;;  %v5596_v15 = vld [vmem:[#allocation51_spill] sm:$0xff] }
 0x48b   :  { %2135 = vmatpush1.bf16.msra.mxu0 %v5583_v33  ;;  %2176 = vmatpush1.bf16.msra.mxu1 %v5584_v16  ;;  %v5594_v33 = vld [vmem:[#allocation27_spill] sm:$0xff] }
 0x48c   :  { %2136 = vmatprep.subr.bf16.mxu0 %v5585_v50  ;;  %2177 = vmatprep.subr.bf16.mxu1 %v5586_v54 }
 0x48f   :  { %2137 = vmatpush1.bf16.msra.mxu0 %v5587_v56  ;;  %2178 = vmatpush1.bf16.msra.mxu1 %v5588_v23 }
 0x490   :  { %2138 = vmatprep.subr.bf16.mxu0 %v5589_v36  ;;  %2179 = vmatprep.subr.bf16.mxu1 %v5590_v19 }
 0x493   :  { %2139 = vmatpush1.bf16.msra.mxu0 %v5591_v38  ;;  %2180 = vmatpush1.bf16.msra.mxu1 %v5592_v18 }
 0x494   :  { %2215 = vmatprep.subr.bf16.mxu0 %v5593_v44  ;;  %2256 = vmatprep.subr.bf16.mxu1 %v5594_v33 }
 0x529   :  { %v1928_v16 = vpop.f32.mrb[64].mxu0  ;;  %v1969_v50 = vpop.f32.mrb[64].mxu1 }
 0x52a   :  { %v1976_v54 = vadd.f32 %v1928_v16, %v5595_v11  ;;  %v1978_v56 = vadd.f32 %v1969_v50, %v5596_v15  ;;  %v1930_v35 = vpop.f32.mrb[65].mxu0  ;;  %v1971_v23 = vpop.f32.mrb[65].mxu1 }
 0x52b   :  { %v1977_v36 = vadd.f32 %v1930_v35, %v5597_v30  ;;  %v1979_v19 = vadd.f32 %v1971_v23, %v5598_v24  ;;  %v1932_v14 = vpop.f32.mrb[66].mxu0  ;;  %v1973_v38 = vpop.f32.mrb[66].mxu1 }
 0x52c   :  { %v2986_v13 = vmul.f32 -1.442695, %v1976_v54  ;;  %v1933_v18 = vpop.f32.mrb[67].mxu0  ;;  %v1974_v10 = vpop.f32.mrb[67].mxu1  ;;  %v5601_v38 = vld [vmem:[#allocation80_spill] sm:$0xff] }
 0x52d   :  { %v2988_v44 = vmul.f32 -1.442695, %v1977_v36  ;;  %v2990_v33 = vmul.f32 -1.442695, %v1979_v19  ;;  %v5599_v36 = vld [vmem:[#allocation78_spill] sm:$0xff] }
 0x52e   :  { %3257 = vpow2.f32 %v2986_v13 }
 0x52f   :  { %3259 = vpow2.f32 %v2988_v44  ;;  %v5602_v44 = vld [vmem:[#allocation81_spill] sm:$0xff] }
 0x530   :  { %3261 = vpow2.f32 %v2990_v33  ;;  %v5600_v33 = vld [vmem:[#allocation79_spill] sm:$0xff] }
 0x531   :  { %3263 = vtanh.f32 %v1978_v56 }
 0x538   :  { %v3258_v9 = vpop.eup %3257 }
 0x539   :  { %v3260_v8 = vpop.eup %3259  ;;  %v2074_v11 = vadd.f32 1.0, %v3258_v9 }
 0x53a   :  { %v2086_v15 = vadd.f32 1.0, %v3260_v8  ;;  %v3262_v30 = vpop.eup %3261 }
 0x53b   :  { %3265 = vrcp.f32 %v2074_v11  ;;  %v3264_v35 = vpop.eup %3263  ;;  %v2100_v50 = vadd.f32 1.0, %v3262_v30 }
 0x53c   :  { %3267 = vrcp.f32 %v2086_v15 }
 0x53d   :  { %3269 = vrcp.f32 %v2100_v50 }
 0x545   :  { %v3266_v24 = vpop.eup %3265 }
 0x546   :  { %v3268_v14 = vpop.eup %3267  ;;  %v2110_v16 = vmul.f32 %v3266_v24, %v3264_v35 }
 0x547   :  { %v2109_v10 = vmul.f32 %v3268_v14, %v4852_v39 }
 0x549   :  { %v4936_v54 = vadd.f32 %v2110_v16, %v2109_v10  ;;  %v2019_v13 = vpop.f32.mrb[68].mxu0  ;;  %v2060_v23 = vpop.f32.mrb[68].mxu1 }
 0x54a   :  { %v2067_v9 = vadd.f32 %v2019_v13, %v5599_v36  ;;  %v2069_v56 = vadd.f32 %v2060_v23, %v5600_v33  ;;  %v2021_v8 = vpop.f32.mrb[69].mxu0  ;;  %v2062_v19 = vpop.f32.mrb[69].mxu1 }
 0x54b   :  { %v2068_v18 = vadd.f32 %v2021_v8, %v5601_v38  ;;  %v2070_v11 = vadd.f32 %v2062_v19, %v5602_v44  ;;  %v2023_v15 = vpop.f32.mrb[70].mxu0  ;;  %v2064_v35 = vpop.f32.mrb[70].mxu1  ;;  %3271 = vtanh.f32 %v4936_v54 }
 0x54c   :  { %v2987_v39 = vmul.f32 -1.442695, %v2067_v9  ;;  %v2024_v30 = vpop.f32.mrb[71].mxu0  ;;  %v2065_v24 = vpop.f32.mrb[71].mxu1 }
 0x54d   :  { %v2989_v14 = vmul.f32 -1.442695, %v2068_v18  ;;  %v3270_v16 = vpop.eup %3269  ;;  %v2991_v10 = vmul.f32 -1.442695, %v2070_v11 }
 0x54e   :  { %3273 = vpow2.f32 %v2987_v39 }
 0x54f   :  { %3275 = vpow2.f32 %v2989_v14  ;;  %v4982_v14 = vld [vmem:[%s5299_s3 + $0x4] ss:$16 sps:$4 sm:$0xff]  }
 0x550   :  { %3277 = vpow2.f32 %v2991_v10  ;;  %v5614_v10 = vld [vmem:[#allocation17_spill] sm:$0xff] }
 0x551   :  { %3279 = vtanh.f32 %v2069_v56 }
 0x555   :  { %v3272_v50 = vpop.eup %3271 }
 0x556   :  { %v2116_v13 = vmul.f32 %v3272_v50, %v3270_v16  ;;  %v4988_v16 = vld [vmem:[%s5299_s3 + $0xc] ss:$16 sps:$4 sm:$0xff]   ;;  %v5607_v50 = vld [vmem:[#allocation10_spill] sm:$0xff] }
 0x558   :  { %v3274_v23 = vpop.eup %3273  ;;  %v2123_v36 = vpack.c.bf16 %v2116_v13, %v2116_v13  ;;  %v5615_v13 = vld [vmem:[#allocation18_spill] sm:$0xff] }
 0x559   :  { %v3276_v33 = vpop.eup %3275  ;;  %v2080_v8 = vadd.f32 1.0, %v3274_v23  ;;  %v5616_v23 = vld [vmem:[#allocation19_spill] sm:$0xff] }
 0x55a   :  { %v2092_v19 = vadd.f32 1.0, %v3276_v33  ;;  %2157 = vmatmul.mubr.bf16.vlgmr.msra.gmra.mrb[72].mxu0 %v2123_v36  ;;  %2198 = vmatmul.mubr.bf16.vlgmr.msra.gmra.mrb[72].mxu1 %v2123_v36  ;;  %v3278_v9 = vpop.eup %3277  ;;  %v5617_v36 = vld [vmem:[#allocation20_spill] sm:$0xff]  ;;  %v5618_v33 = vld [vmem:[#allocation21_spill] sm:$0xff] }
 0x55b   :  { %3281 = vrcp.f32 %v2080_v8  ;;  %2216 = vmatpush1.bf16.msra.mxu0 %v4628_v31  ;;  %2257 = vmatpush1.bf16.msra.mxu1 %v4634_v22  ;;  %v3280_v56 = vpop.eup %3279  ;;  %v2106_v11 = vadd.f32 1.0, %v3278_v9  ;;  %v5619_v8 = vld [vmem:[#allocation22_spill] sm:$0xff]  ;;  %v5621_v9 = vld [vmem:[#allocation24_spill] sm:$0xff] }
 0x55c   :  { %3283 = vrcp.f32 %v2092_v19  ;;  %2217 = vmatprep.subr.bf16.mxu0 %v4640_v21  ;;  %2258 = vmatprep.subr.bf16.mxu1 %v4646_v32  ;;  %v5620_v19 = vld [vmem:[#allocation23_spill] sm:$0xff] }
 0x55d   :  { %2247 = vmatprep.mubr.bf16.mxu0 %v5427_v42  ;;  %2288 = vmatprep.mubr.bf16.mxu1 %v5427_v42  ;;  %3285 = vrcp.f32 %v2106_v11 }
 0x55f   :  { %2218 = vmatpush1.bf16.msra.mxu0 %v4654_v46  ;;  %2259 = vmatpush1.bf16.msra.mxu1 %v4660_v26 }
 0x560   :  { %2219 = vmatprep.subr.bf16.mxu0 %v4666_v20  ;;  %2260 = vmatprep.subr.bf16.mxu1 %v4672_v25 }
 0x563   :  { %2220 = vmatpush1.bf16.msra.mxu0 %v4678_v28  ;;  %2261 = vmatpush1.bf16.msra.mxu1 %v4684_v29 }
 0x564   :  { %2221 = vmatprep.subr.bf16.mxu0 %v4690_v51  ;;  %2262 = vmatprep.subr.bf16.mxu1 %v4696_v52 }
 0x565   :  { %v3282_v38 = vpop.eup %3281 }
 0x566   :  { %v3284_v18 = vpop.eup %3283  ;;  %v2113_v44 = vmul.f32 %v3282_v38, %v3280_v56  ;;  %v5622_v56 = vld [vmem:[#allocation25_spill] sm:$0xff]  ;;  %v5623_v38 = vld [vmem:[#allocation26_spill] sm:$0xff] }
 0x567   :  { %v2112_v15 = vmul.f32 %v3284_v18, %v4878_v12  ;;  %2222 = vmatpush1.bf16.msra.mxu0 %v4703_v57  ;;  %2263 = vmatpush1.bf16.msra.mxu1 %v4709_v59  ;;  %v3286_v12 = vpop.eup %3285  ;;  %v5624_v18 = vld [vmem:[#allocation27_spill] sm:$0xff] }
 0x568   :  { %2223 = vmatprep.subr.bf16.mxu0 %v4715_v60  ;;  %2264 = vmatprep.subr.bf16.mxu1 %v4721_v58 }
 0x569   :  { %v4962_v35 = vadd.f32 %v2113_v44, %v2112_v15  ;;  %v5625_v15 = vld [vmem:[#allocation54_spill] sm:$0xff] }
 0x56b   :  { %2224 = vmatpush1.bf16.msra.mxu0 %v4729_v62  ;;  %2265 = vmatpush1.bf16.msra.mxu1 %v4735_v40  ;;  %3287 = vtanh.f32 %v4962_v35 }
 0x56c   :  { %2225 = vmatprep.subr.bf16.mxu0 %v4742_v27  ;;  %2266 = vmatprep.subr.bf16.mxu1 %v4748_v48 }
 0x56f   :  { %2226 = vmatpush1.bf16.msra.mxu0 %v5571_v61  ;;  %2267 = vmatpush1.bf16.msra.mxu1 %v5572_v43 }
 0x570   :  { %2227 = vmatprep.subr.bf16.mxu0 %v5573_v37  ;;  %2268 = vmatprep.subr.bf16.mxu1 %v5574_v41 }
 0x573   :  { %2228 = vmatpush1.bf16.msra.mxu0 %v5575_v45  ;;  %2269 = vmatpush1.bf16.msra.mxu1 %v5576_v17 }
 0x574   :  { %2229 = vmatprep.subr.bf16.mxu0 %v5577_v34  ;;  %2270 = vmatprep.subr.bf16.mxu1 %v4796_v53 }
 0x575   :  { %v3288_v39 = vpop.eup %3287 }
 0x576   :  { %v2118_v30 = vmul.f32 %v3288_v39, %v3286_v12  ;;  %v5626_v39 = vld [vmem:[#allocation55_spill] sm:$0xff] }
 0x577   :  { %2230 = vmatpush1.bf16.msra.mxu0 %v4802_v49  ;;  %2271 = vmatpush1.bf16.msra.mxu1 %v4808_v47 }
 0x578   :  { %v2214_v24 = vpack.c.bf16 %v2118_v30, %v2118_v30  ;;  %2354 = vmatprep.subr.bf16.mxu0 %v4982_v14  ;;  %2395 = vmatprep.subr.bf16.mxu1 %v4988_v16 }
 0x57a   :  { %2248 = vmatmul.mubr.bf16.vlgmr.msra.gmra.mrb[76].mxu0 %v2214_v24  ;;  %2289 = vmatmul.mubr.bf16.vlgmr.msra.gmra.mrb[76].mxu1 %v2214_v24 }
 0x57b   :  { %2355 = vmatpush1.bf16.msra.mxu0 %v4422_v63  ;;  %2396 = vmatpush1.bf16.msra.mxu1 %v4428_v1  ;;  %v5603_v63 = vld [vmem:[#allocation36_spill] sm:$0xff]  ;;  %v5604_v1 = vld [vmem:[#allocation37_spill] sm:$0xff] }
 0x57c   :  { %2356 = vmatprep.subr.bf16.mxu0 %v4434_v55  ;;  %2397 = vmatprep.subr.bf16.mxu1 %v4440_v0  ;;  %v5605_v55 = vld [vmem:[#allocation8_spill] sm:$0xff]  ;;  %v5606_v0 = vld [vmem:[#allocation9_spill] sm:$0xff] }
 0x57d   :  { %2386 = vmatprep.mubr.bf16.mxu0 %v5427_v42  ;;  %2427 = vmatprep.mubr.bf16.mxu1 %v5427_v42 }
 0x57f   :  { %2357 = vmatpush1.bf16.msra.mxu0 %v4448_v2  ;;  %2398 = vmatpush1.bf16.msra.mxu1 %v4454_v3  ;;  %v5608_v2 = vld [vmem:[#allocation11_spill] sm:$0xff]  ;;  %v5609_v3 = vld [vmem:[#allocation12_spill] sm:$0xff] }
 0x580   :  { %2358 = vmatprep.subr.bf16.mxu0 %v4460_v4  ;;  %2399 = vmatprep.subr.bf16.mxu1 %v4466_v5  ;;  %v5610_v4 = vld [vmem:[#allocation13_spill] sm:$0xff]  ;;  %v5611_v5 = vld [vmem:[#allocation14_spill] sm:$0xff] }
 0x583   :  { %2359 = vmatpush1.bf16.msra.mxu0 %v4472_v6  ;;  %2400 = vmatpush1.bf16.msra.mxu1 %v4478_v7  ;;  %v5612_v6 = vld [vmem:[#allocation15_spill] sm:$0xff]  ;;  %v5613_v7 = vld [vmem:[#allocation16_spill] sm:$0xff] }
 0x584   :  { %2360 = vmatprep.subr.bf16.mxu0 %v5603_v63  ;;  %2401 = vmatprep.subr.bf16.mxu1 %v5604_v1  ;;  %v5627_v1 = vld [vmem:[#allocation56_spill] sm:$0xff] }
 0x587   :  { %2361 = vmatpush1.bf16.msra.mxu0 %v5605_v55  ;;  %2402 = vmatpush1.bf16.msra.mxu1 %v5606_v0  ;;  %v5628_v0 = vld [vmem:[#allocation57_spill] sm:$0xff] }
 0x588   :  { %2362 = vmatprep.subr.bf16.mxu0 %v5607_v50  ;;  %2403 = vmatprep.subr.bf16.mxu1 %v5608_v2 }
 0x58b   :  { %2363 = vmatpush1.bf16.msra.mxu0 %v5609_v3  ;;  %2404 = vmatpush1.bf16.msra.mxu1 %v5610_v4 }
 0x58c   :  { %2364 = vmatprep.subr.bf16.mxu0 %v5611_v5  ;;  %2405 = vmatprep.subr.bf16.mxu1 %v5612_v6 }
 0x58f   :  { %2365 = vmatpush1.bf16.msra.mxu0 %v5613_v7  ;;  %2406 = vmatpush1.bf16.msra.mxu1 %v5614_v10 }
 0x590   :  { %2366 = vmatprep.subr.bf16.mxu0 %v5615_v13  ;;  %2407 = vmatprep.subr.bf16.mxu1 %v5616_v23 }
 0x593   :  { %2367 = vmatpush1.bf16.msra.mxu0 %v5617_v36  ;;  %2408 = vmatpush1.bf16.msra.mxu1 %v5618_v33 }
 0x594   :  { %2368 = vmatprep.subr.bf16.mxu0 %v5619_v8  ;;  %2409 = vmatprep.subr.bf16.mxu1 %v5620_v19 }
 0x597   :  { %2369 = vmatpush1.bf16.msra.mxu0 %v5621_v9  ;;  %2410 = vmatpush1.bf16.msra.mxu1 %v5622_v56 }
 0x598   :  { %2445 = vmatprep.subr.bf16.mxu0 %v5623_v38  ;;  %2486 = vmatprep.subr.bf16.mxu1 %v5624_v18 }
 0x62d   :  { %v2158_v44 = vpop.f32.mrb[72].mxu0  ;;  %v2199_v11 = vpop.f32.mrb[72].mxu1 }
 0x62e   :  { %v2206_v12 = vadd.f32 %v2158_v44, %v5625_v15  ;;  %v2208_v30 = vadd.f32 %v2199_v11, %v5626_v39  ;;  %v2160_v24 = vpop.f32.mrb[73].mxu0  ;;  %v2201_v63 = vpop.f32.mrb[73].mxu1  ;;  %v5629_v39 = vld [vmem:[#allocation74_spill] sm:$0xff] }
 0x62f   :  { %v2207_v55 = vadd.f32 %v2160_v24, %v5627_v1  ;;  %v2209_v50 = vadd.f32 %v2201_v63, %v5628_v0  ;;  %v2162_v2 = vpop.f32.mrb[74].mxu0  ;;  %v2203_v3 = vpop.f32.mrb[74].mxu1  ;;  %v5630_v63 = vld [vmem:[#allocation75_spill] sm:$0xff]  ;;  %v5631_v0 = vld [vmem:[#allocation76_spill] sm:$0xff] }
 0x630   :  { %v2992_v4 = vmul.f32 -1.442695, %v2206_v12  ;;  %v2163_v5 = vpop.f32.mrb[75].mxu0  ;;  %v2204_v6 = vpop.f32.mrb[75].mxu1  ;;  %v5632_v2 = vld [vmem:[#allocation77_spill] sm:$0xff] }
 0x631   :  { %v2994_v7 = vmul.f32 -1.442695, %v2207_v55  ;;  %v2996_v10 = vmul.f32 -1.442695, %v2209_v50 }
 0x632   :  { %3289 = vpow2.f32 %v2992_v4 }
 0x633   :  { %3291 = vpow2.f32 %v2994_v7 }
 0x634   :  { %3293 = vpow2.f32 %v2996_v10 }
 0x635   :  { %3295 = vtanh.f32 %v2208_v30 }
 0x63c   :  { %v3290_v13 = vpop.eup %3289 }
 0x63d   :  { %v3292_v23 = vpop.eup %3291  ;;  %v2304_v36 = vadd.f32 1.0, %v3290_v13 }
 0x63e   :  { %v2316_v33 = vadd.f32 1.0, %v3292_v23  ;;  %v3294_v8 = vpop.eup %3293 }
 0x63f   :  { %3297 = vrcp.f32 %v2304_v36  ;;  %v3296_v19 = vpop.eup %3295  ;;  %v2330_v18 = vadd.f32 1.0, %v3294_v8 }
 0x640   :  { %3299 = vrcp.f32 %v2316_v33 }
 0x641   :  { %3301 = vrcp.f32 %v2330_v18 }
 0x649   :  { %v3298_v9 = vpop.eup %3297 }
 0x64a   :  { %v3300_v56 = vpop.eup %3299  ;;  %v2340_v38 = vmul.f32 %v3298_v9, %v3296_v19 }
 0x64b   :  { %v2339_v44 = vmul.f32 %v3300_v56, %v4936_v54  ;;  %v3302_v13 = vpop.eup %3301 }
 0x64d   :  { %v5030_v11 = vadd.f32 %v2340_v38, %v2339_v44  ;;  %v2249_v15 = vpop.f32.mrb[76].mxu0  ;;  %v2290_v12 = vpop.f32.mrb[76].mxu1  ;;  %v3473_v44 = vld [vmem:[%s5299_s3 + $0xc4] ss:$16 sps:$4 sm:$0xff]  }
 0x64e   :  { %v2297_v24 = vadd.f32 %v2249_v15, %v5629_v39  ;;  %v2299_v30 = vadd.f32 %v2290_v12, %v5630_v63  ;;  %v2251_v1 = vpop.f32.mrb[77].mxu0  ;;  %v2292_v55 = vpop.f32.mrb[77].mxu1  ;;  %v3474_v15 = vld [vmem:[%s5299_s3 + $0xcc] ss:$16 sps:$4 sm:$0xff]   ;;  %v3475_v12 = vld [vmem:[%s5299_s3 + $0xc0] ss:$16 sps:$4 sm:$0xff]  }
 0x64f   :  { %v2298_v50 = vadd.f32 %v2251_v1, %v5631_v0  ;;  %v2300_v3 = vadd.f32 %v2292_v55, %v5632_v2  ;;  %v2253_v4 = vpop.f32.mrb[78].mxu0  ;;  %v2294_v5 = vpop.f32.mrb[78].mxu1  ;;  %3303 = vtanh.f32 %v5030_v11  ;;  %v3476_v39 = vld [vmem:[%s5299_s3 + $0xc8] ss:$16 sps:$4 sm:$0xff]   ;;  %v3478_v63 = vld [vmem:[%s5299_s3 + $0xec] ss:$16 sps:$4 sm:$0xff]  }
 0x650   :  { %v2993_v54 = vmul.f32 -1.442695, %v2297_v24  ;;  %v2254_v6 = vpop.f32.mrb[79].mxu0  ;;  %v2295_v7 = vpop.f32.mrb[79].mxu1  ;;  %v3477_v24 = vld [vmem:[%s5299_s3 + $0xe4] ss:$16 sps:$4 sm:$0xff]  }
 0x651   :  { %v2995_v10 = vmul.f32 -1.442695, %v2298_v50  ;;  %v2997_v36 = vmul.f32 -1.442695, %v2300_v3  ;;  %v3480_v1 = vld [vmem:[%s5299_s3 + $0xe8] ss:$16 sps:$4 sm:$0xff]  }
 0x652   :  { %3305 = vpow2.f32 %v2993_v54  ;;  %v3481_v55 = vld [vmem:[%s5299_s3 + $0x104] ss:$16 sps:$4 sm:$0xff]   ;;  %v3482_v0 = vld [vmem:[%s5299_s3 + $0x10c] ss:$16 sps:$4 sm:$0xff]  }
 0x653   :  { %3307 = vpow2.f32 %v2995_v10  ;;  %v5633_v3 = vld [vmem:[#allocation58_spill] sm:$0xff]  ;;  %v5634_v5 = vld [vmem:[#allocation59_spill] sm:$0xff]  ;;  %v5635_v10 = vld [vmem:[#allocation60_spill] sm:$0xff] }
 0x654   :  { %3309 = vpow2.f32 %v2997_v36 }
 0x655   :  { %3311 = vtanh.f32 %v2299_v30  ;;  %v3479_v30 = vld [vmem:[%s5299_s3 + $0xe0] ss:$16 sps:$4 sm:$0xff]  }
 0x659   :  { %v3304_v23 = vpop.eup %3303 }
 0x65a   :  { %v2346_v33 = vmul.f32 %v3304_v23, %v3302_v13  ;;  %v5636_v23 = vld [vmem:[#allocation61_spill] sm:$0xff] }
 0x65c   :  { %v3306_v8 = vpop.eup %3305  ;;  %v2353_v19 = vpack.c.bf16 %v2346_v33, %v2346_v33 }
 0x65d   :  { %v3308_v9 = vpop.eup %3307  ;;  %v2310_v56 = vadd.f32 1.0, %v3306_v8 }
 0x65e   :  { %v2322_v38 = vadd.f32 1.0, %v3308_v9  ;;  %2387 = vmatmul.mubr.bf16.vlgmr.msra.gmra.mrb[80].mxu0 %v2353_v19  ;;  %2428 = vmatmul.mubr.bf16.vlgmr.msra.gmra.mrb[80].mxu1 %v2353_v19 }
 0x65f   :  { %3313 = vrcp.f32 %v2310_v56  ;;  %2446 = vmatpush1.bf16.msra.mxu0 %v4628_v31  ;;  %2487 = vmatpush1.bf16.msra.mxu1 %v4634_v22  ;;  %v3310_v31 = vpop.eup %3309 }
 0x660   :  { %3315 = vrcp.f32 %v2322_v38  ;;  %2447 = vmatprep.subr.bf16.mxu0 %v4640_v21  ;;  %2488 = vmatprep.subr.bf16.mxu1 %v4646_v32  ;;  %v3312_v22 = vpop.eup %3311 }
 0x661   :  { %2477 = vmatprep.mubr.bf16.mxu0 %v5427_v42  ;;  %2518 = vmatprep.mubr.bf16.mxu1 %v5427_v42 }
 0x663   :  { %2448 = vmatpush1.bf16.msra.mxu0 %v4654_v46  ;;  %2489 = vmatpush1.bf16.msra.mxu1 %v4660_v26  ;;  %v2336_v46 = vadd.f32 1.0, %v3310_v31 }
 0x664   :  { %2449 = vmatprep.subr.bf16.mxu0 %v4666_v20  ;;  %2490 = vmatprep.subr.bf16.mxu1 %v4672_v25 }
 0x665   :  { %3317 = vrcp.f32 %v2336_v46 }
 0x667   :  { %2450 = vmatpush1.bf16.msra.mxu0 %v4678_v28  ;;  %2491 = vmatpush1.bf16.msra.mxu1 %v4684_v29 }
 0x668   :  { %2451 = vmatprep.subr.bf16.mxu0 %v4690_v51  ;;  %2492 = vmatprep.subr.bf16.mxu1 %v4696_v52  ;;  %v3451_v52 = vld [vmem:[%s5299_s3] ss:$16 sps:$4 sm:$0xff]  }
 0x669   :  { %v3314_v21 = vpop.eup %3313 }
 0x66a   :  { %v3316_v32 = vpop.eup %3315  ;;  %v2343_v18 = vmul.f32 %v3314_v21, %v3312_v22 }
 0x66b   :  { %v2342_v26 = vmul.f32 %v3316_v32, %v4962_v35  ;;  %2452 = vmatpush1.bf16.msra.mxu0 %v4703_v57  ;;  %2493 = vmatpush1.bf16.msra.mxu1 %v4709_v59  ;;  %v3452_v57 = vld [vmem:[%s5299_s3 + $0x8] ss:$16 sps:$4 sm:$0xff]   ;;  %v3453_v59 = vld [vmem:[%s5299_s3 + $0x24] ss:$16 sps:$4 sm:$0xff]   ;;  %v3470_v35 = vld [vmem:[%s5299_s3 + $0xac] ss:$16 sps:$4 sm:$0xff]  }
 0x66c   :  { %2453 = vmatprep.subr.bf16.mxu0 %v4715_v60  ;;  %2494 = vmatprep.subr.bf16.mxu1 %v4721_v58  ;;  %v3454_v60 = vld [vmem:[%s5299_s3 + $0x2c] ss:$16 sps:$4 sm:$0xff]   ;;  %v3455_v58 = vld [vmem:[%s5299_s3 + $0x20] ss:$16 sps:$4 sm:$0xff]  }
 0x66d   :  { %v5056_v20 = vadd.f32 %v2343_v18, %v2342_v26 }
 0x66f   :  { %2454 = vmatpush1.bf16.msra.mxu0 %v4729_v62  ;;  %2495 = vmatpush1.bf16.msra.mxu1 %v4735_v40  ;;  %3319 = vtanh.f32 %v5056_v20  ;;  %v3318_v25 = vpop.eup %3317  ;;  %v3456_v62 = vld [vmem:[%s5299_s3 + $0x28] ss:$16 sps:$4 sm:$0xff]   ;;  %v3457_v40 = vld [vmem:[%s5299_s3 + $0x44] ss:$16 sps:$4 sm:$0xff]  }
 0x670   :  { %2455 = vmatprep.subr.bf16.mxu0 %v4742_v27  ;;  %2496 = vmatprep.subr.bf16.mxu1 %v4748_v48  ;;  %v3458_v27 = vld [vmem:[%s5299_s3 + $0x4c] ss:$16 sps:$4 sm:$0xff]   ;;  %v3459_v48 = vld [vmem:[%s5299_s3 + $0x40] ss:$16 sps:$4 sm:$0xff]  }
 0x673   :  { %2456 = vmatpush1.bf16.msra.mxu0 %v5571_v61  ;;  %2497 = vmatpush1.bf16.msra.mxu1 %v5572_v43  ;;  %v3463_v61 = vld [vmem:[%s5299_s3 + $0x60] ss:$16 sps:$4 sm:$0xff]   ;;  %v3464_v43 = vld [vmem:[%s5299_s3 + $0x68] ss:$16 sps:$4 sm:$0xff]  }
 0x674   :  { %2457 = vmatprep.subr.bf16.mxu0 %v5573_v37  ;;  %2498 = vmatprep.subr.bf16.mxu1 %v5574_v41  ;;  %v3465_v37 = vld [vmem:[%s5299_s3 + $0x84] ss:$16 sps:$4 sm:$0xff]   ;;  %v3466_v41 = vld [vmem:[%s5299_s3 + $0x8c] ss:$16 sps:$4 sm:$0xff]  }
 0x677   :  { %2458 = vmatpush1.bf16.msra.mxu0 %v5575_v45  ;;  %2499 = vmatpush1.bf16.msra.mxu1 %v5576_v17  ;;  %v3467_v45 = vld [vmem:[%s5299_s3 + $0x80] ss:$16 sps:$4 sm:$0xff]   ;;  %v3468_v17 = vld [vmem:[%s5299_s3 + $0x88] ss:$16 sps:$4 sm:$0xff]  }
 0x678   :  { %2459 = vmatprep.subr.bf16.mxu0 %v5577_v34  ;;  %2500 = vmatprep.subr.bf16.mxu1 %v4796_v53  ;;  %v3461_v53 = vld [vmem:[%s5299_s3 + $0x64] ss:$16 sps:$4 sm:$0xff]  }
 0x679   :  { %v3320_v28 = vpop.eup %3319  ;;  %v3469_v34 = vld [vmem:[%s5299_s3 + $0xa4] ss:$16 sps:$4 sm:$0xff]  }
 0x67a   :  { %v2348_v29 = vmul.f32 %v3320_v28, %v3318_v25 }
 0x67b   :  { %2460 = vmatpush1.bf16.msra.mxu0 %v4802_v49  ;;  %2501 = vmatpush1.bf16.msra.mxu1 %v4808_v47  ;;  %v3460_v47 = vld [vmem:[%s5299_s3 + $0x48] ss:$16 sps:$4 sm:$0xff]   ;;  %v3462_v49 = vld [vmem:[%s5299_s3 + $0x6c] ss:$16 sps:$4 sm:$0xff]  }
 0x67c   :  { %v2444_v51 = vpack.c.bf16 %v2348_v29, %v2348_v29  ;;  %2584 = vmatprep.subr.bf16.mxu0 %v4982_v14  ;;  %2625 = vmatprep.subr.bf16.mxu1 %v4988_v16  ;;  %v3471_v14 = vld [vmem:[%s5299_s3 + $0xa0] ss:$16 sps:$4 sm:$0xff]   ;;  %v3472_v16 = vld [vmem:[%s5299_s3 + $0xa8] ss:$16 sps:$4 sm:$0xff]  }
 0x67e   :  { %2478 = vmatmul.mubr.bf16.vlgmr.msra.gmra.mrb[84].mxu0 %v2444_v51  ;;  %2519 = vmatmul.mubr.bf16.vlgmr.msra.gmra.mrb[84].mxu1 %v2444_v51 }
 0x67f   :  { %2585 = vmatpush1.bf16.msra.mxu0 %v3451_v52  ;;  %2626 = vmatpush1.bf16.msra.mxu1 %v3452_v57 }
 0x680   :  { %2586 = vmatprep.subr.bf16.mxu0 %v3453_v59  ;;  %2627 = vmatprep.subr.bf16.mxu1 %v3454_v60 }
 0x681   :  { %2616 = vmatprep.mubr.bf16.mxu0 %v5427_v42  ;;  %2657 = vmatprep.mubr.bf16.mxu1 %v5427_v42 }
 0x683   :  { %2587 = vmatpush1.bf16.msra.mxu0 %v3455_v58  ;;  %2628 = vmatpush1.bf16.msra.mxu1 %v3456_v62  ;;  %v5637_v58 = vld [vmem:[#allocation70_spill] sm:$0xff] }
 0x684   :  { %2588 = vmatprep.subr.bf16.mxu0 %v3457_v40  ;;  %2629 = vmatprep.subr.bf16.mxu1 %v3458_v27  ;;  %v5638_v40 = vld [vmem:[#allocation71_spill] sm:$0xff] }
 0x687   :  { %2589 = vmatpush1.bf16.msra.mxu0 %v3459_v48  ;;  %2630 = vmatpush1.bf16.msra.mxu1 %v3460_v47 }
 0x688   :  { %2590 = vmatprep.subr.bf16.mxu0 %v3461_v53  ;;  %2631 = vmatprep.subr.bf16.mxu1 %v3462_v49  ;;  %v5639_v53 = vld [vmem:[#allocation72_spill] sm:$0xff] }
 0x68b   :  { %2591 = vmatpush1.bf16.msra.mxu0 %v3463_v61  ;;  %2632 = vmatpush1.bf16.msra.mxu1 %v3464_v43  ;;  %v5640_v61 = vld [vmem:[#allocation73_spill] sm:$0xff] }
 0x68c   :  { %2592 = vmatprep.subr.bf16.mxu0 %v3465_v37  ;;  %2633 = vmatprep.subr.bf16.mxu1 %v3466_v41 }
 0x68f   :  { %2593 = vmatpush1.bf16.msra.mxu0 %v3467_v45  ;;  %2634 = vmatpush1.bf16.msra.mxu1 %v3468_v17 }
 0x690   :  { %2594 = vmatprep.subr.bf16.mxu0 %v3469_v34  ;;  %2635 = vmatprep.subr.bf16.mxu1 %v3470_v35 }
 0x693   :  { %2595 = vmatpush1.bf16.msra.mxu0 %v3471_v14  ;;  %2636 = vmatpush1.bf16.msra.mxu1 %v3472_v16 }
 0x694   :  { %2596 = vmatprep.subr.bf16.mxu0 %v3473_v44  ;;  %2637 = vmatprep.subr.bf16.mxu1 %v3474_v15 }
 0x697   :  { %2597 = vmatpush1.bf16.msra.mxu0 %v3475_v12  ;;  %2638 = vmatpush1.bf16.msra.mxu1 %v3476_v39 }
 0x698   :  { %2598 = vmatprep.subr.bf16.mxu0 %v3477_v24  ;;  %2639 = vmatprep.subr.bf16.mxu1 %v3478_v63 }
 0x69b   :  { %2599 = vmatpush1.bf16.msra.mxu0 %v3479_v30  ;;  %2640 = vmatpush1.bf16.msra.mxu1 %v3480_v1  ;;  %v3483_v30 = vld [vmem:[%s5299_s3 + $0x100] ss:$16 sps:$4 sm:$0xff]   ;;  %v3484_v1 = vld [vmem:[%s5299_s3 + $0x108] ss:$16 sps:$4 sm:$0xff]  }
 0x69c   :  { %2675 = vmatprep.subr.bf16.mxu0 %v3481_v55  ;;  %2716 = vmatprep.subr.bf16.mxu1 %v3482_v0  ;;  %v3485_v55 = vld [vmem:[%s5299_s3 + $0x124] ss:$16 sps:$4 sm:$0xff]   ;;  %v3486_v0 = vld [vmem:[%s5299_s3 + $0x12c] ss:$16 sps:$4 sm:$0xff]  }
 0x731   :  { %v2388_v50 = vpop.f32.mrb[80].mxu0  ;;  %v2429_v2 = vpop.f32.mrb[80].mxu1 }
 0x732   :  { %v2436_v4 = vadd.f32 %v2388_v50, %v5633_v3  ;;  %v2438_v54 = vadd.f32 %v2429_v2, %v5634_v5  ;;  %v2390_v6 = vpop.f32.mrb[81].mxu0  ;;  %v2431_v7 = vpop.f32.mrb[81].mxu1  ;;  %v3487_v50 = vld [vmem:[%s5299_s3 + $0x120] ss:$16 sps:$4 sm:$0xff]   ;;  %v3488_v2 = vld [vmem:[%s5299_s3 + $0x128] ss:$16 sps:$4 sm:$0xff]  }
 0x733   :  { %v2437_v13 = vadd.f32 %v2390_v6, %v5635_v10  ;;  %v2439_v36 = vadd.f32 %v2431_v7, %v5636_v23  ;;  %v2392_v33 = vpop.f32.mrb[82].mxu0  ;;  %v2433_v8 = vpop.f32.mrb[82].mxu1  ;;  %v3489_v3 = vld [vmem:[%s5299_s3 + $0x144] ss:$16 sps:$4 sm:$0xff]   ;;  %v3491_v5 = vld [vmem:[%s5299_s3 + $0x140] ss:$16 sps:$4 sm:$0xff]  }
 0x734   :  { %v2998_v19 = vmul.f32 -1.442695, %v2436_v4  ;;  %v2393_v9 = vpop.f32.mrb[83].mxu0  ;;  %v2434_v56 = vpop.f32.mrb[83].mxu1  ;;  %v3490_v4 = vld [vmem:[%s5299_s3 + $0x14c] ss:$16 sps:$4 sm:$0xff]  }
 0x735   :  { %v3000_v38 = vmul.f32 -1.442695, %v2437_v13  ;;  %v3002_v31 = vmul.f32 -1.442695, %v2439_v36  ;;  %v3493_v7 = vld [vmem:[%s5299_s3 + $0x164] ss:$16 sps:$4 sm:$0xff]  }
 0x736   :  { %3321 = vpow2.f32 %v2998_v19  ;;  %v3494_v10 = vld [vmem:[%s5299_s3 + $0x16c] ss:$16 sps:$4 sm:$0xff]   ;;  %v3495_v19 = vld [vmem:[%s5299_s3 + $0x160] ss:$16 sps:$4 sm:$0xff]   ;;  %v3496_v9 = vld [vmem:[%s5299_s3 + $0x168] ss:$16 sps:$4 sm:$0xff]  }
 0x737   :  { %3323 = vpow2.f32 %v3000_v38  ;;  %v3497_v56 = vld [vmem:[%s5299_s3 + $0x184] ss:$16 sps:$4 sm:$0xff]   ;;  %v3498_v38 = vld [vmem:[%s5299_s3 + $0x18c] ss:$16 sps:$4 sm:$0xff]  }
 0x738   :  { %3325 = vpow2.f32 %v3002_v31  ;;  %v3499_v31 = vld [vmem:[%s5299_s3 + $0x180] ss:$16 sps:$4 sm:$0xff]  }
 0x739   :  { %3327 = vtanh.f32 %v2438_v54  ;;  %v3492_v54 = vld [vmem:[%s5299_s3 + $0x148] ss:$16 sps:$4 sm:$0xff]  }
 0x740   :  { %v3322_v22 = vpop.eup %3321 }
 0x741   :  { %v3324_v21 = vpop.eup %3323  ;;  %v2534_v32 = vadd.f32 1.0, %v3322_v22  ;;  %v3500_v22 = vld [vmem:[%s5299_s3 + $0x188] ss:$16 sps:$4 sm:$0xff]  }
 0x742   :  { %v2546_v18 = vadd.f32 1.0, %v3324_v21  ;;  %v3326_v46 = vpop.eup %3325  ;;  %v3501_v21 = vld [vmem:[%s5299_s3 + $0x1a4] ss:$16 sps:$4 sm:$0xff]  }
 0x743   :  { %3329 = vrcp.f32 %v2534_v32  ;;  %v3328_v26 = vpop.eup %3327  ;;  %v2560_v51 = vadd.f32 1.0, %v3326_v46  ;;  %v3502_v32 = vld [vmem:[%s5299_s3 + $0x1ac] ss:$16 sps:$4 sm:$0xff]   ;;  %v3504_v46 = vld [vmem:[%s5299_s3 + $0x1a8] ss:$16 sps:$4 sm:$0xff]  }
 0x744   :  { %3331 = vrcp.f32 %v2546_v18  ;;  %v3503_v18 = vld [vmem:[%s5299_s3 + $0x1a0] ss:$16 sps:$4 sm:$0xff]  }
 0x745   :  { %3333 = vrcp.f32 %v2560_v51 }
 0x74d   :  { %v3330_v25 = vpop.eup %3329 }
 0x74e   :  { %v3332_v28 = vpop.eup %3331  ;;  %v2570_v29 = vmul.f32 %v3330_v25, %v3328_v26  ;;  %v3505_v26 = vld [vmem:[%s5299_s3 + $0x1c4] ss:$16 sps:$4 sm:$0xff]   ;;  %v3506_v25 = vld [vmem:[%s5299_s3 + $0x1cc] ss:$16 sps:$4 sm:$0xff]  }
 0x74f   :  { %v2569_v52 = vmul.f32 %v3332_v28, %v5030_v11  ;;  %v3334_v35 = vpop.eup %3333  ;;  %v3507_v28 = vld [vmem:[%s5299_s3 + $0x1c0] ss:$16 sps:$4 sm:$0xff]  }
 0x751   :  { %v5178_v57 = vadd.f32 %v2570_v29, %v2569_v52  ;;  %v2479_v59 = vpop.f32.mrb[84].mxu0  ;;  %v2520_v60 = vpop.f32.mrb[84].mxu1  ;;  %v3508_v29 = vld [vmem:[%s5299_s3 + $0x1c8] ss:$16 sps:$4 sm:$0xff]   ;;  %v3509_v52 = vld [vmem:[%s5299_s3 + $0x1e4] ss:$16 sps:$4 sm:$0xff]  }
 0x752   :  { %v2527_v62 = vadd.f32 %v2479_v59, %v5637_v58  ;;  %v2529_v27 = vadd.f32 %v2520_v60, %v5638_v40  ;;  %v2481_v48 = vpop.f32.mrb[85].mxu0  ;;  %v2522_v47 = vpop.f32.mrb[85].mxu1  ;;  %v3510_v59 = vld [vmem:[%s5299_s3 + $0x1ec] ss:$16 sps:$4 sm:$0xff]   ;;  %v3512_v40 = vld [vmem:[%s5299_s3 + $0x1e8] ss:$16 sps:$4 sm:$0xff]  }
 0x753   :  { %v2528_v49 = vadd.f32 %v2481_v48, %v5639_v53  ;;  %v2530_v43 = vadd.f32 %v2522_v47, %v5640_v61  ;;  %v2483_v37 = vpop.f32.mrb[86].mxu0  ;;  %v2524_v41 = vpop.f32.mrb[86].mxu1  ;;  %3335 = vtanh.f32 %v5178_v57  ;;  %v5641_v53 = vld [vmem:[#allocation62_spill] sm:$0xff]  ;;  %v5642_v61 = vld [vmem:[#allocation63_spill] sm:$0xff] }
 0x754   :  { %v2999_v11 = vmul.f32 -1.442695, %v2527_v62  ;;  %v2484_v45 = vpop.f32.mrb[87].mxu0  ;;  %v2525_v17 = vpop.f32.mrb[87].mxu1  ;;  %v3511_v62 = vld [vmem:[%s5299_s3 + $0x1e0] ss:$16 sps:$4 sm:$0xff]  }
 0x755   :  { %v3001_v34 = vmul.f32 -1.442695, %v2528_v49  ;;  %v3003_v16 = vmul.f32 -1.442695, %v2530_v43  ;;  %v5644_v17 = vld [vmem:[#allocation65_spill] sm:$0xff] }
 0x756   :  { %3337 = vpow2.f32 %v2999_v11  ;;  %v5643_v11 = vld [vmem:[#allocation64_spill] sm:$0xff] }
 0x757   :  { %3339 = vpow2.f32 %v3001_v34 }
 0x758   :  { %3341 = vpow2.f32 %v3003_v16 }
 0x759   :  { %3343 = vtanh.f32 %v2529_v27 }
 0x75d   :  { %v3336_v14 = vpop.eup %3335 }
 0x75e   :  { %v2576_v44 = vmul.f32 %v3336_v14, %v3334_v35 }
 0x760   :  { %v3338_v15 = vpop.eup %3337  ;;  %v2583_v12 = vpack.c.bf16 %v2576_v44, %v2576_v44 }
 0x761   :  { %v3340_v39 = vpop.eup %3339  ;;  %v2540_v24 = vadd.f32 1.0, %v3338_v15 }
 0x762   :  { %v2552_v63 = vadd.f32 1.0, %v3340_v39  ;;  %2617 = vmatmul.mubr.bf16.vlgmr.msra.gmra.mrb[88].mxu0 %v2583_v12  ;;  %2658 = vmatmul.mubr.bf16.vlgmr.msra.gmra.mrb[88].mxu1 %v2583_v12 }
 0x763   :  { %3345 = vrcp.f32 %v2540_v24  ;;  %2676 = vmatpush1.bf16.msra.mxu0 %v3483_v30  ;;  %2717 = vmatpush1.bf16.msra.mxu1 %v3484_v1 }
 0x764   :  { %3347 = vrcp.f32 %v2552_v63  ;;  %2677 = vmatprep.subr.bf16.mxu0 %v3485_v55  ;;  %2718 = vmatprep.subr.bf16.mxu1 %v3486_v0 }
 0x765   :  { %2707 = vmatprep.mubr.bf16.mxu0 %v5427_v42  ;;  %2748 = vmatprep.mubr.bf16.mxu1 %v5427_v42  ;;  %v3342_v42 = vpop.eup %3341 }
 0x766   :  { %v3344_v6 = vpop.eup %3343  ;;  %v2566_v33 = vadd.f32 1.0, %v3342_v42 }
 0x767   :  { %2678 = vmatpush1.bf16.msra.mxu0 %v3487_v50  ;;  %2719 = vmatpush1.bf16.msra.mxu1 %v3488_v2 }
 0x768   :  { %2679 = vmatprep.subr.bf16.mxu0 %v3489_v3  ;;  %2720 = vmatprep.subr.bf16.mxu1 %v3490_v4  ;;  %3349 = vrcp.f32 %v2566_v33 }
 0x76b   :  { %2680 = vmatpush1.bf16.msra.mxu0 %v3491_v5  ;;  %2721 = vmatpush1.bf16.msra.mxu1 %v3492_v54 }
 0x76c   :  { %2681 = vmatprep.subr.bf16.mxu0 %v3493_v7  ;;  %2722 = vmatprep.subr.bf16.mxu1 %v3494_v10  ;;  %v5645_v7 = vld [vmem:[#allocation66_spill] sm:$0xff] }
 0x76d   :  { %v3346_v13 = vpop.eup %3345 }
 0x76e   :  { %v3348_v23 = vpop.eup %3347  ;;  %v2573_v36 = vmul.f32 %v3346_v13, %v3344_v6  ;;  %v5646_v13 = vld [vmem:[#allocation67_spill] sm:$0xff] }
 0x76f   :  { %v2572_v8 = vmul.f32 %v3348_v23, %v5056_v20  ;;  %2682 = vmatpush1.bf16.msra.mxu0 %v3495_v19  ;;  %2723 = vmatpush1.bf16.msra.mxu1 %v3496_v9  ;;  %v5648_v9 = vld [vmem:[#allocation69_spill] sm:$0xff] }
 0x770   :  { %2683 = vmatprep.subr.bf16.mxu0 %v3497_v56  ;;  %2724 = vmatprep.subr.bf16.mxu1 %v3498_v38 }
 0x771   :  { %v5236_v20 = vadd.f32 %v2573_v36, %v2572_v8  ;;  %v5647_v8 = vld [vmem:[#allocation68_spill] sm:$0xff] }
 0x772   :  { %v3350_v51 = vpop.eup %3349 }
 0x773   :  { %2684 = vmatpush1.bf16.msra.mxu0 %v3499_v31  ;;  %2725 = vmatpush1.bf16.msra.mxu1 %v3500_v22  ;;  %3351 = vtanh.f32 %v5236_v20 }
 0x774   :  { %2685 = vmatprep.subr.bf16.mxu0 %v3501_v21  ;;  %2726 = vmatprep.subr.bf16.mxu1 %v3502_v32 }
 0x777   :  { %2686 = vmatpush1.bf16.msra.mxu0 %v3503_v18  ;;  %2727 = vmatpush1.bf16.msra.mxu1 %v3504_v46 }
 0x778   :  { %2687 = vmatprep.subr.bf16.mxu0 %v3505_v26  ;;  %2728 = vmatprep.subr.bf16.mxu1 %v3506_v25 }
 0x77b   :  { %2688 = vmatpush1.bf16.msra.mxu0 %v3507_v28  ;;  %2729 = vmatpush1.bf16.msra.mxu1 %v3508_v29 }
 0x77c   :  { %2689 = vmatprep.subr.bf16.mxu0 %v3509_v52  ;;  %2730 = vmatprep.subr.bf16.mxu1 %v3510_v59 }
 0x77d   :  { %v3352_v60 = vpop.eup %3351 }
 0x77e   :  { %v2578_v58 = vmul.f32 %v3352_v60, %v3350_v51 }
 0x77f   :  { %2690 = vmatpush1.bf16.msra.mxu0 %v3511_v62  ;;  %2731 = vmatpush1.bf16.msra.mxu1 %v3512_v40 }
 0x780   :  { %v2674_v27 = vpack.c.bf16 %v2578_v58, %v2578_v58 }
 0x782   :  { %2708 = vmatmul.mubr.bf16.vlgmr.msra.gmra.mrb[92].mxu0 %v2674_v27  ;;  %2749 = vmatmul.mubr.bf16.vlgmr.msra.gmra.mrb[92].mxu1 %v2674_v27 }
 0x835   :  { %v2618_v48 = vpop.f32.mrb[88].mxu0  ;;  %v2659_v47 = vpop.f32.mrb[88].mxu1 }
 0x836   :  { %v2666_v49 = vadd.f32 %v2618_v48, %v5641_v53  ;;  %v2668_v43 = vadd.f32 %v2659_v47, %v5642_v61  ;;  %v2620_v37 = vpop.f32.mrb[89].mxu0  ;;  %v2661_v41 = vpop.f32.mrb[89].mxu1 }
 0x837   :  { %v2667_v45 = vadd.f32 %v2620_v37, %v5643_v11  ;;  %v2669_v34 = vadd.f32 %v2661_v41, %v5644_v17  ;;  %v2622_v35 = vpop.f32.mrb[90].mxu0  ;;  %v2663_v14 = vpop.f32.mrb[90].mxu1 }
 0x838   :  { %v3004_v16 = vmul.f32 -1.442695, %v2666_v49  ;;  %v2623_v44 = vpop.f32.mrb[91].mxu0  ;;  %v2664_v15 = vpop.f32.mrb[91].mxu1 }
 0x839   :  { %v3006_v12 = vmul.f32 -1.442695, %v2667_v45  ;;  %v3008_v39 = vmul.f32 -1.442695, %v2669_v34 }
 0x83a   :  { %3353 = vpow2.f32 %v3004_v16 }
 0x83b   :  { %3355 = vpow2.f32 %v3006_v12 }
 0x83c   :  { %3357 = vpow2.f32 %v3008_v39 }
 0x83d   :  { %3359 = vtanh.f32 %v2668_v43 }
 0x844   :  { %v3354_v24 = vpop.eup %3353 }
 0x845   :  { %v3356_v63 = vpop.eup %3355  ;;  %v2764_v30 = vadd.f32 1.0, %v3354_v24 }
 0x846   :  { %v2776_v1 = vadd.f32 1.0, %v3356_v63  ;;  %v3358_v55 = vpop.eup %3357 }
 0x847   :  { %3361 = vrcp.f32 %v2764_v30  ;;  %v3360_v0 = vpop.eup %3359  ;;  %v2790_v4 = vadd.f32 1.0, %v3358_v55 }
 0x848   :  { %3363 = vrcp.f32 %v2776_v1 }
 0x849   :  { %3365 = vrcp.f32 %v2790_v4 }
 0x851   :  { %v3362_v50 = vpop.eup %3361 }
 0x852   :  { %v3364_v2 = vpop.eup %3363  ;;  %v2800_v3 = vmul.f32 %v3362_v50, %v3360_v0 }
 0x853   :  { %v2799_v42 = vmul.f32 %v3364_v2, %v5178_v57  ;;  %v3366_v18 = vpop.eup %3365 }
 0x855   :  { %v2801_v5 = vadd.f32 %v2800_v3, %v2799_v42  ;;  %v2709_v54 = vpop.f32.mrb[92].mxu0  ;;  %v2750_v6 = vpop.f32.mrb[92].mxu1 }
 0x856   :  { %v2757_v10 = vadd.f32 %v2709_v54, %v5645_v7  ;;  %v2759_v23 = vadd.f32 %v2750_v6, %v5646_v13  ;;  %v2711_v36 = vpop.f32.mrb[93].mxu0  ;;  %v2752_v33 = vpop.f32.mrb[93].mxu1 }
 0x857   :  { %3367 = vtanh.f32 %v2801_v5  ;;  %v2758_v19 = vadd.f32 %v2711_v36, %v5647_v8  ;;  %v2760_v56 = vadd.f32 %v2752_v33, %v5648_v9  ;;  %v2713_v38 = vpop.f32.mrb[94].mxu0  ;;  %v2754_v31 = vpop.f32.mrb[94].mxu1 }
 0x858   :  { %v3005_v22 = vmul.f32 -1.442695, %v2757_v10  ;;  %v2714_v21 = vpop.f32.mrb[95].mxu0  ;;  %v2755_v57 = vpop.f32.mrb[95].mxu1 }
 0x859   :  { %v3007_v32 = vmul.f32 -1.442695, %v2758_v19  ;;  %v3009_v26 = vmul.f32 -1.442695, %v2760_v56 }
 0x85a   :  { %3369 = vpow2.f32 %v3005_v22 }
 0x85b   :  { %3371 = vpow2.f32 %v3007_v32 }
 0x85c   :  { %3373 = vpow2.f32 %v3009_v26 }
 0x85d   :  { %3375 = vtanh.f32 %v2759_v23 }
 0x861   :  { %v3368_v46 = vpop.eup %3367 }
 0x862   :  { %v2806_v25 = vmul.f32 %v3368_v46, %v3366_v18 }
 0x864   :  { %v3370_v28 = vpop.eup %3369  ;;  %2816 = vst [vmem:[%s5302_s5] sm:$0xff] %v2806_v25 }
 0x865   :  { %v3372_v29 = vpop.eup %3371  ;;  %v2770_v51 = vadd.f32 1.0, %v3370_v28 }
 0x866   :  { %v2782_v52 = vadd.f32 1.0, %v3372_v29  ;;  %v3374_v59 = vpop.eup %3373 }
 0x867   :  { %3377 = vrcp.f32 %v2770_v51  ;;  %v3376_v60 = vpop.eup %3375  ;;  %v2796_v27 = vadd.f32 1.0, %v3374_v59 }
 0x868   :  { %3379 = vrcp.f32 %v2782_v52 }
 0x869   :  { %3381 = vrcp.f32 %v2796_v27 }
 0x871   :  { %v3378_v58 = vpop.eup %3377 }
 0x872   :  { %v3380_v62 = vpop.eup %3379  ;;  %v2803_v40 = vmul.f32 %v3378_v58, %v3376_v60 }
 0x873   :  { %v2802_v48 = vmul.f32 %v3380_v62, %v5236_v20  ;;  %v3382_v53 = vpop.eup %3381 }
 0x875   :  { %v2804_v47 = vadd.f32 %v2803_v40, %v2802_v48 }
 0x877   :  { %3383 = vtanh.f32 %v2804_v47 }
 0x881   :  { %v3384_v49 = vpop.eup %3383 }
 0x882   :  { %v2808_v61 = vmul.f32 %v3384_v49, %v3382_v53 }
 0x884   :  { %3010 = vst [vmem:[%s5302_s5 + $0x8] sm:$0xff] %v2808_v61 }

</bundles_post_ra>
